<compile_context>
chip_gen: v7x
topology: tpu7x:2x2x1
jax: 0.10.0
libtpu: 0.0.40
codegen_flags: <defaults>
</compile_context>

<pallas_src>
import functools

import jax
import jax.numpy as jnp
from jax.experimental import pallas as pl
from jax.experimental.pallas import tpu as pltpu


def _layernorm(x, eps=1e-5):
    # LayerNorm(elementwise_affine=False), PyTorch default eps=1e-5.
    mu = jnp.mean(x, axis=-1, keepdims=True)
    var = jnp.mean((x - mu) ** 2, axis=-1, keepdims=True)
    return (x - mu) * jax.lax.rsqrt(var + eps)


def temporal_attention_kernel(x_ref, te_ref,
                              wq_ref, bq_ref, wk_ref, bk_ref, wv_ref, bv_ref,
                              wo_ref, bo_ref, w1_ref, b1_ref, w2_ref, b2_ref,
                              out_ref, *, use_mask):
    Gb, T, N, F = x_ref.shape          # Gb batches, T steps, N vertices, F feats

    # x += te (in-place in torch) -> q/k/v input AND the residual both use x+te
    x2 = x_ref[...] + te_ref[...]                        # [Gb, T, N, F] f32

    # Single in-VMEM reorder (review item 1): bring time next to features so
    # attention runs as a leading-batch einsum.  No HBM transposes anywhere.
    x2t = jnp.transpose(x2, (0, 2, 1, 3))                # [Gb, N, T, F]
    rows = x2t.reshape(Gb * N * T, F)                    # free reshape (F stays minor)

    # q/k/v projections: three separate FxF f32 matmuls (review item 3 -- no
    # unaligned lane slices of a fused [*, 3F] output; each fits one MXU tile).
    # NOTE: the 1/sqrt(d) attention scale is pre-folded into wq/bq
    # (see prepare_params), so q is already scaled.
    q = jnp.dot(rows, wq_ref[...], preferred_element_type=jnp.float32) + bq_ref[...]
    k = jnp.dot(rows, wk_ref[...], preferred_element_type=jnp.float32) + bk_ref[...]
    v = jnp.dot(rows, wv_ref[...], preferred_element_type=jnp.float32) + bv_ref[...]
    q = q.reshape(Gb * N, T, F)
    k = k.reshape(Gb * N, T, F)
    v = v.reshape(Gb * N, T, F)

    # attention over time, batched over (batch, vertex): [Gb*N, T, T]
    # TODO(synk): review item 8 -- if a bundle dump shows the per-batch tiny
    # vmatmul + result-relayout chain binding, recompute scores/context on the
    # VPU (broadcast-mul + reduce over F) or lane-pack several slices per matmul.
    attn = jnp.einsum('btf,bsf->bts', q, k, preferred_element_type=jnp.float32)

    if use_mask:
        # causal (tril) mask from one (T, T) iota pair, broadcast over batch
        # (review item 7); masked entries get the torch constant -2**15 + 1.
        row_i = jax.lax.broadcasted_iota(jnp.int32, (T, T), 0)
        col_i = jax.lax.broadcasted_iota(jnp.int32, (T, T), 1)
        keep = (col_i <= row_i)[None, :, :]              # [1, T, T]
        attn = jnp.where(keep, attn, jnp.float32(-(2 ** 15) + 1))

    # exact softmax in f32 (approx reciprocal removed: correctness concern)
    attn = attn - jnp.max(attn, axis=-1, keepdims=True)
    e = jnp.exp(attn)
    p = e / jnp.sum(e, axis=-1, keepdims=True)

    # weighted values + output projection (ofc)
    ctx = jnp.einsum('bts,bsf->btf', p, v, preferred_element_type=jnp.float32)
    ctxf = ctx.reshape(Gb * N * T, F)
    val = jnp.dot(ctxf, wo_ref[...], preferred_element_type=jnp.float32) + bo_ref[...]

    # residual + LayerNorm (f32); the residual uses x + te (torch in-place add)
    val = _layernorm(val + rows)

    # ff = FeedForward([F, F, F], res_ln=True): Linear -> ReLU -> Linear, +res, LN
    h1 = jnp.maximum(
        jnp.dot(val, w1_ref[...], preferred_element_type=jnp.float32) + b1_ref[...],
        0.0)
    h2 = jnp.dot(h1, w2_ref[...], preferred_element_type=jnp.float32) + b2_ref[...]
    out = _layernorm(h2 + val)

    # single in-VMEM reorder back to the stored [Gb, T, N, F] layout
    out = jnp.transpose(out.reshape(Gb, N, T, F), (0, 2, 1, 3))
    out_ref[...] = out.astype(out_ref.dtype)


def prepare_params(params, d):
    """One-time weight preparation, hoisted out of the forward (review item 10).

    Folds the 1/sqrt(d) attention scale into the query projection; since
    attention = (x@wq+bq) @ (x@wk+bk)^T / sqrt(d), scaling wq/bq is
    mathematically identical and removes a [*, T, T] multiply from the kernel.
    """
    wq, bq, wk, bk, wv, bv, wo, bo, w1, b1, w2, b2 = params
    s = jnp.float32(1.0 / (float(d) ** 0.5))
    return (wq * s, bq * s, wk, bk, wv, bv, wo, bo, w1, b1, w2, b2)


def temporal_attention(x, te, prepared_params, mask=True, block_b=None):
    """x, te: [B, T, N, F]; prepared_params from prepare_params(). -> [B, T, N, F]."""
    B, T, N, F = x.shape
    (wq, bq, wk, bk, wv, bv, wo, bo, w1, b1, w2, b2) = prepared_params

    if block_b is None:
        # Default: two grid steps.  Even block count keeps both v7x TensorCores
        # busy on the "parallel" axis; the ~0.35us/step overhead on single-TC
        # v5e/v6e is negligible at 2 steps (review items 4-6).  Use block_b=B
        # for nblk == 1.
        block_b = max(1, -(-B // 2))
    nblk = -(-B // block_b)
    Bp = nblk * block_b
    if Bp != B:                                   # zero-pad: safe, no NaN paths
        pad = Bp - B
        x = jnp.pad(x, ((0, pad), (0, 0), (0, 0), (0, 0)))
        te = jnp.pad(te, ((0, pad), (0, 0), (0, 0), (0, 0)))

    # Blocks tile the batch axis of the ORIGINAL [B, T, N, F] layout -- no HBM
    # transposes in the wrapper (review item 1).  Last two block dims equal the
    # full array dims, so the (8, 128) constraint is satisfied.
    tile = pl.BlockSpec((block_b, T, N, F), lambda i: (i, 0, 0, 0))
    wspec = pl.BlockSpec((F, F), lambda i: (0, 0))
    bspec = pl.BlockSpec((1, F), lambda i: (0, 0))

    kern = functools.partial(temporal_attention_kernel, use_mask=mask)

    # advisory cost estimate for the XLA scheduler
    rows = Bp * T * N
    flops = (4 * 2 * rows * F * F                 # q/k/v/ofc projections
             + 2 * 2 * Bp * N * T * T * F         # attention scores + context
             + 2 * 2 * rows * F * F)              # ff linears
    trans = Bp * N * T * T + 4 * rows             # exp + rsqrt
    bytes_accessed = ((x.size + te.size + Bp * T * N * F) * 4
                      + 6 * F * F * 4 + 6 * F * 4)
    ce = pl.CostEstimate(flops=int(flops), transcendentals=int(trans),
                         bytes_accessed=int(bytes_accessed))

    out = pl.pallas_call(
        kern,
        out_shape=jax.ShapeDtypeStruct((Bp, T, N, F), x.dtype),
        grid_spec=pltpu.PrefetchScalarGridSpec(
            num_scalar_prefetch=0,
            grid=(nblk,),
            in_specs=[tile, tile,
                      wspec, bspec,               # qfc (scale pre-folded)
                      wspec, bspec,               # kfc
                      wspec, bspec,               # vfc
                      wspec, bspec,               # ofc
                      wspec, bspec,               # ff linear 1
                      wspec, bspec],              # ff linear 2
            out_specs=tile,
        ),
        compiler_params=pltpu.CompilerParams(
            dimension_semantics=("parallel",),
            # Per-block footprint is only a few hundred KiB; 32 MiB of scoped
            # VMEM is ample headroom on every generation (v5e defaults to
            # 16 MiB scoped, v7x has 64 MiB physical / 32 MiB default).
            vmem_limit_bytes=32 * 1024 * 1024),
        cost_estimate=ce,
    )(x, te, wq, bq, wk, bk, wv, bv, wo, bo, w1, b1, w2, b2)

    return out[:B]


def temporal_attention_ref(x, te, params, d, mask=True):
    """Pure-JAX f32 reference mirroring the PyTorch forward exactly (h = 1)."""
    wq, bq, wk, bk, wv, bv, wo, bo, w1, b1, w2, b2 = params
    hp = jax.lax.Precision.HIGHEST

    def lin(a, w, b):
        return jnp.einsum('btnf,fg->btng', a, w, precision=hp) + b[0]

    x2 = x + te
    q = jnp.transpose(lin(x2, wq, bq), (0, 2, 1, 3))          # [B,N,T,F]
    k = jnp.transpose(lin(x2, wk, bk), (0, 2, 3, 1))          # [B,N,F,T]
    v = jnp.transpose(lin(x2, wv, bv), (0, 2, 1, 3))          # [B,N,T,F]
    attn = jnp.matmul(q, k, precision=hp) / (float(d) ** 0.5)
    if mask:
        T = x.shape[1]
        tri = jnp.tril(jnp.ones((T, T), dtype=bool))
        attn = jnp.where(tri[None, None], attn, jnp.float32(-(2 ** 15) + 1))
    attn = jax.nn.softmax(attn, axis=-1)
    val = jnp.transpose(jnp.matmul(attn, v, precision=hp), (0, 2, 1, 3))
    val = _layernorm(lin(val, wo, bo) + x2)
    h1 = jax.nn.relu(lin(val, w1, b1))
    h2 = lin(h1, w2, b2)
    return _layernorm(h2 + val)


def make_params(key, F):
    """Deterministic synthetic weights. Linear weights stored as [in, out]."""
    ks = jax.random.split(key, 12)

    def w(k):
        return 0.2 * jax.random.normal(k, (F, F), jnp.float32)

    def b(k):
        return 0.05 * jax.random.normal(k, (1, F), jnp.float32)

    return (w(ks[0]), b(ks[1]),    # qfc
            w(ks[2]), b(ks[3]),    # kfc
            w(ks[4]), b(ks[5]),    # vfc
            w(ks[6]), b(ks[7]),    # ofc
            w(ks[8]), b(ks[9]),    # ff linear 1
            w(ks[10]), b(ks[11]))  # ff linear 2


if __name__ == "__main__":
    # small shapes consistent with the module: [B, T, N, F]
    B, T, N, F = 4, 8, 16, 32
    D = F   # d = features; h = 1 (the torch mask repeat only broadcasts for h == 1)

    key = jax.random.PRNGKey(0)
    k_x, k_te, k_p = jax.random.split(key, 3)
    x = jax.random.normal(k_x, (B, T, N, F), jnp.float32)
    te = jax.random.normal(k_te, (B, T, N, F), jnp.float32)
    params = make_params(k_p, F)

    # one-time weight prep (hoisted out of the forward path -- review item 10)
    pparams = prepare_params(params, d=D)

    out = jax.block_until_ready(temporal_attention(x, te, pparams, mask=True))

    ref = jax.block_until_ready(
        temporal_attention_ref(x, te, params, d=D, mask=True))
    assert out.shape == (B, T, N, F)
    assert jnp.allclose(out, ref, rtol=5e-3, atol=5e-3), "mismatch vs reference"

    print("KERNEL_OK")
</pallas_src>

<mosaic_0001>
module attributes {stable_mosaic.version = 11 : i64} {
  func.func @temporal_attention_kernel(%arg0: i32, %arg1: memref<2x8x16x32xf32, #tpu.memory_space<vmem>>, %arg2: memref<2x8x16x32xf32, #tpu.memory_space<vmem>>, %arg3: memref<32x32xf32, #tpu.memory_space<vmem>>, %arg4: memref<1x32xf32, #tpu.memory_space<vmem>>, %arg5: memref<32x32xf32, #tpu.memory_space<vmem>>, %arg6: memref<1x32xf32, #tpu.memory_space<vmem>>, %arg7: memref<32x32xf32, #tpu.memory_space<vmem>>, %arg8: memref<1x32xf32, #tpu.memory_space<vmem>>, %arg9: memref<32x32xf32, #tpu.memory_space<vmem>>, %arg10: memref<1x32xf32, #tpu.memory_space<vmem>>, %arg11: memref<32x32xf32, #tpu.memory_space<vmem>>, %arg12: memref<1x32xf32, #tpu.memory_space<vmem>>, %arg13: memref<32x32xf32, #tpu.memory_space<vmem>>, %arg14: memref<1x32xf32, #tpu.memory_space<vmem>>, %arg15: memref<2x8x16x32xf32, #tpu.memory_space<vmem>>) attributes {dimension_semantics = [#tpu.dimension_semantics<parallel>], iteration_bounds = array<i64: 2>, scalar_prefetch = 0 : i64, scratch_operands = 0 : i64, tpu.core_type = #tpu.core_type<tc>, window_params = [{transform_indices = @transform_0, window_bounds = array<i64: 2, 8, 16, 32>}, {transform_indices = @transform_1, window_bounds = array<i64: 2, 8, 16, 32>}, {pipeline_mode = #tpu.pipeline_mode<synchronous>, transform_indices = @transform_2, window_bounds = array<i64: 32, 32>}, {pipeline_mode = #tpu.pipeline_mode<synchronous>, transform_indices = @transform_3, window_bounds = array<i64: 1, 32>}, {pipeline_mode = #tpu.pipeline_mode<synchronous>, transform_indices = @transform_4, window_bounds = array<i64: 32, 32>}, {pipeline_mode = #tpu.pipeline_mode<synchronous>, transform_indices = @transform_5, window_bounds = array<i64: 1, 32>}, {pipeline_mode = #tpu.pipeline_mode<synchronous>, transform_indices = @transform_6, window_bounds = array<i64: 32, 32>}, {pipeline_mode = #tpu.pipeline_mode<synchronous>, transform_indices = @transform_7, window_bounds = array<i64: 1, 32>}, {pipeline_mode = #tpu.pipeline_mode<synchronous>, transform_indices = @transform_8, window_bounds = array<i64: 32, 32>}, {pipeline_mode = #tpu.pipeline_mode<synchronous>, transform_indices = @transform_9, window_bounds = array<i64: 1, 32>}, {pipeline_mode = #tpu.pipeline_mode<synchronous>, transform_indices = @transform_10, window_bounds = array<i64: 32, 32>}, {pipeline_mode = #tpu.pipeline_mode<synchronous>, transform_indices = @transform_11, window_bounds = array<i64: 1, 32>}, {pipeline_mode = #tpu.pipeline_mode<synchronous>, transform_indices = @transform_12, window_bounds = array<i64: 32, 32>}, {pipeline_mode = #tpu.pipeline_mode<synchronous>, transform_indices = @transform_13, window_bounds = array<i64: 1, 32>}, {transform_indices = @transform_14, window_bounds = array<i64: 2, 8, 16, 32>}]} {
    %c0 = arith.constant 0 : index
    %c0_0 = arith.constant 0 : index
    %c0_1 = arith.constant 0 : index
    %c0_2 = arith.constant 0 : index
    %0 = vector.load %arg1[%c0, %c0_0, %c0_1, %c0_2] : memref<2x8x16x32xf32, #tpu.memory_space<vmem>>, vector<2x8x16x32xf32>
    %c0_3 = arith.constant 0 : index
    %c0_4 = arith.constant 0 : index
    %c0_5 = arith.constant 0 : index
    %c0_6 = arith.constant 0 : index
    %1 = vector.load %arg2[%c0_3, %c0_4, %c0_5, %c0_6] : memref<2x8x16x32xf32, #tpu.memory_space<vmem>>, vector<2x8x16x32xf32>
    %2 = arith.addf %0, %1 : vector<2x8x16x32xf32>
    %3 = tpu.transpose %2, [0, 2, 1, 3] : vector<2x8x16x32xf32> -> vector<2x16x8x32xf32>
    %4 = vector.shape_cast %3 : vector<2x16x8x32xf32> to vector<256x32xf32>
    %c0_7 = arith.constant 0 : index
    %c0_8 = arith.constant 0 : index
    %5 = vector.load %arg3[%c0_7, %c0_8] : memref<32x32xf32, #tpu.memory_space<vmem>>, vector<32x32xf32>
    %cst = arith.constant dense<0.000000e+00> : vector<256x32xf32>
    %6 = tpu.matmul %4, %5, %cst {dimension_numbers = #tpu.dot_dimension_numbers<[1], [0], [0], [1], [0, 0, 1, 1], [], []>} : vector<256x32xf32>, vector<32x32xf32>, vector<256x32xf32> -> vector<256x32xf32>
    %c0_9 = arith.constant 0 : index
    %c0_10 = arith.constant 0 : index
    %7 = vector.load %arg4[%c0_9, %c0_10] : memref<1x32xf32, #tpu.memory_space<vmem>>, vector<1x32xf32>
    %8 = vector.broadcast %7 : vector<1x32xf32> to vector<256x32xf32>
    %9 = arith.addf %6, %8 : vector<256x32xf32>
    %c0_11 = arith.constant 0 : index
    %c0_12 = arith.constant 0 : index
    %10 = vector.load %arg5[%c0_11, %c0_12] : memref<32x32xf32, #tpu.memory_space<vmem>>, vector<32x32xf32>
    %cst_13 = arith.constant dense<0.000000e+00> : vector<256x32xf32>
    %11 = tpu.matmul %4, %10, %cst_13 {dimension_numbers = #tpu.dot_dimension_numbers<[1], [0], [0], [1], [0, 0, 1, 1], [], []>} : vector<256x32xf32>, vector<32x32xf32>, vector<256x32xf32> -> vector<256x32xf32>
    %c0_14 = arith.constant 0 : index
    %c0_15 = arith.constant 0 : index
    %12 = vector.load %arg6[%c0_14, %c0_15] : memref<1x32xf32, #tpu.memory_space<vmem>>, vector<1x32xf32>
    %13 = vector.broadcast %12 : vector<1x32xf32> to vector<256x32xf32>
    %14 = arith.addf %11, %13 : vector<256x32xf32>
    %c0_16 = arith.constant 0 : index
    %c0_17 = arith.constant 0 : index
    %15 = vector.load %arg7[%c0_16, %c0_17] : memref<32x32xf32, #tpu.memory_space<vmem>>, vector<32x32xf32>
    %cst_18 = arith.constant dense<0.000000e+00> : vector<256x32xf32>
    %16 = tpu.matmul %4, %15, %cst_18 {dimension_numbers = #tpu.dot_dimension_numbers<[1], [0], [0], [1], [0, 0, 1, 1], [], []>} : vector<256x32xf32>, vector<32x32xf32>, vector<256x32xf32> -> vector<256x32xf32>
    %c0_19 = arith.constant 0 : index
    %c0_20 = arith.constant 0 : index
    %17 = vector.load %arg8[%c0_19, %c0_20] : memref<1x32xf32, #tpu.memory_space<vmem>>, vector<1x32xf32>
    %18 = vector.broadcast %17 : vector<1x32xf32> to vector<256x32xf32>
    %19 = arith.addf %16, %18 : vector<256x32xf32>
    %20 = vector.shape_cast %9 : vector<256x32xf32> to vector<32x8x32xf32>
    %21 = vector.shape_cast %14 : vector<256x32xf32> to vector<32x8x32xf32>
    %22 = vector.shape_cast %19 : vector<256x32xf32> to vector<32x8x32xf32>
    "tpu.trace_start"() <{level = 10 : i32, message = "btf,bsf->bts"}> : () -> ()
    %cst_21 = arith.constant dense<0.000000e+00> : vector<32x8x8xf32>
    %23 = tpu.matmul %20, %21, %cst_21 {dimension_numbers = #tpu.dot_dimension_numbers<[2], [2], [1], [1], [0, 0, 0, 1, 1, 1], [0], [0]>} : vector<32x8x32xf32>, vector<32x8x32xf32>, vector<32x8x8xf32> -> vector<32x8x8xf32>
    "tpu.trace_stop"() : () -> ()
    %24 = tpu.iota {dimensions = array<i32: 0>} : vector<8x8xi32>
    %25 = tpu.iota {dimensions = array<i32: 1>} : vector<8x8xi32>
    %26 = arith.cmpi sle, %25, %24 : vector<8x8xi32>
    %27 = vector.shape_cast %26 : vector<8x8xi1> to vector<1x8x8xi1>
    %cst_22 = arith.constant -3.276700e+04 : f32
    %28 = vector.shape_cast %27 : vector<1x8x8xi1> to vector<1x8x8xi1>
    %29 = vector.broadcast %28 : vector<1x8x8xi1> to vector<32x8x8xi1>
    %30 = vector.broadcast %cst_22 : f32 to vector<32x8x8xf32>
    %31 = arith.select %29, %23, %30 : vector<32x8x8xi1>, vector<32x8x8xf32>
    %cst_23 = arith.constant dense<0xFF800000> : vector<32x8xf32>
    %32 = vector.multi_reduction <maximumf>, %31, %cst_23 [2] : vector<32x8x8xf32> to vector<32x8xf32>
    %33 = vector.shape_cast %32 : vector<32x8xf32> to vector<32x8x1xf32>
    %34 = vector.broadcast %33 : vector<32x8x1xf32> to vector<32x8x8xf32>
    %35 = arith.subf %31, %34 : vector<32x8x8xf32>
    %36 = math.exp %35 : vector<32x8x8xf32>
    %cst_24 = arith.constant dense<0.000000e+00> : vector<32x8xf32>
    %37 = vector.multi_reduction <add>, %36, %cst_24 [2] : vector<32x8x8xf32> to vector<32x8xf32>
    %38 = vector.shape_cast %37 : vector<32x8xf32> to vector<32x8x1xf32>
    %39 = vector.broadcast %38 : vector<32x8x1xf32> to vector<32x8x8xf32>
    %40 = arith.divf %36, %39 : vector<32x8x8xf32>
    "tpu.trace_start"() <{level = 10 : i32, message = "bts,bsf->btf"}> : () -> ()
    %cst_25 = arith.constant dense<0.000000e+00> : vector<32x8x32xf32>
    %41 = tpu.matmul %40, %22, %cst_25 {dimension_numbers = #tpu.dot_dimension_numbers<[2], [1], [1], [2], [0, 0, 0, 1, 1, 2], [0], [0]>} : vector<32x8x8xf32>, vector<32x8x32xf32>, vector<32x8x32xf32> -> vector<32x8x32xf32>
    "tpu.trace_stop"() : () -> ()
    %42 = vector.shape_cast %41 : vector<32x8x32xf32> to vector<256x32xf32>
    %c0_26 = arith.constant 0 : index
    %c0_27 = arith.constant 0 : index
    %43 = vector.load %arg9[%c0_26, %c0_27] : memref<32x32xf32, #tpu.memory_space<vmem>>, vector<32x32xf32>
    %cst_28 = arith.constant dense<0.000000e+00> : vector<256x32xf32>
    %44 = tpu.matmul %42, %43, %cst_28 {dimension_numbers = #tpu.dot_dimension_numbers<[1], [0], [0], [1], [0, 0, 1, 1], [], []>} : vector<256x32xf32>, vector<32x32xf32>, vector<256x32xf32> -> vector<256x32xf32>
    %c0_29 = arith.constant 0 : index
    %c0_30 = arith.constant 0 : index
    %45 = vector.load %arg10[%c0_29, %c0_30] : memref<1x32xf32, #tpu.memory_space<vmem>>, vector<1x32xf32>
    %46 = vector.broadcast %45 : vector<1x32xf32> to vector<256x32xf32>
    %47 = arith.addf %44, %46 : vector<256x32xf32>
    %48 = arith.addf %47, %4 : vector<256x32xf32>
    %cst_31 = arith.constant dense<0.000000e+00> : vector<256xf32>
    %49 = vector.multi_reduction <add>, %48, %cst_31 [1] : vector<256x32xf32> to vector<256xf32>
    %50 = vector.shape_cast %49 : vector<256xf32> to vector<256x1xf32>
    %cst_32 = arith.constant 3.200000e+01 : f32
    %51 = vector.broadcast %cst_32 : f32 to vector<256x1xf32>
    %52 = arith.divf %50, %51 : vector<256x1xf32>
    %53 = vector.broadcast %52 : vector<256x1xf32> to vector<256x32xf32>
    %54 = arith.subf %48, %53 : vector<256x32xf32>
    %55 = arith.mulf %54, %54 : vector<256x32xf32>
    %cst_33 = arith.constant dense<0.000000e+00> : vector<256xf32>
    %56 = vector.multi_reduction <add>, %55, %cst_33 [1] : vector<256x32xf32> to vector<256xf32>
    %57 = vector.shape_cast %56 : vector<256xf32> to vector<256x1xf32>
    %cst_34 = arith.constant 3.200000e+01 : f32
    %58 = vector.broadcast %cst_34 : f32 to vector<256x1xf32>
    %59 = arith.divf %57, %58 : vector<256x1xf32>
    %60 = vector.broadcast %52 : vector<256x1xf32> to vector<256x32xf32>
    %61 = arith.subf %48, %60 : vector<256x32xf32>
    %cst_35 = arith.constant 9.99999974E-6 : f32
    %62 = vector.broadcast %cst_35 : f32 to vector<256x1xf32>
    %63 = arith.addf %59, %62 : vector<256x1xf32>
    %64 = math.rsqrt %63 : vector<256x1xf32>
    %65 = vector.broadcast %64 : vector<256x1xf32> to vector<256x32xf32>
    %66 = arith.mulf %61, %65 : vector<256x32xf32>
    %c0_36 = arith.constant 0 : index
    %c0_37 = arith.constant 0 : index
    %67 = vector.load %arg11[%c0_36, %c0_37] : memref<32x32xf32, #tpu.memory_space<vmem>>, vector<32x32xf32>
    %cst_38 = arith.constant dense<0.000000e+00> : vector<256x32xf32>
    %68 = tpu.matmul %66, %67, %cst_38 {dimension_numbers = #tpu.dot_dimension_numbers<[1], [0], [0], [1], [0, 0, 1, 1], [], []>} : vector<256x32xf32>, vector<32x32xf32>, vector<256x32xf32> -> vector<256x32xf32>
    %c0_39 = arith.constant 0 : index
    %c0_40 = arith.constant 0 : index
    %69 = vector.load %arg12[%c0_39, %c0_40] : memref<1x32xf32, #tpu.memory_space<vmem>>, vector<1x32xf32>
    %70 = vector.broadcast %69 : vector<1x32xf32> to vector<256x32xf32>
    %71 = arith.addf %68, %70 : vector<256x32xf32>
    %cst_41 = arith.constant 0.000000e+00 : f32
    %72 = vector.broadcast %cst_41 : f32 to vector<256x32xf32>
    %73 = arith.maximumf %71, %72 : vector<256x32xf32>
    %c0_42 = arith.constant 0 : index
    %c0_43 = arith.constant 0 : index
    %74 = vector.load %arg13[%c0_42, %c0_43] : memref<32x32xf32, #tpu.memory_space<vmem>>, vector<32x32xf32>
    %cst_44 = arith.constant dense<0.000000e+00> : vector<256x32xf32>
    %75 = tpu.matmul %73, %74, %cst_44 {dimension_numbers = #tpu.dot_dimension_numbers<[1], [0], [0], [1], [0, 0, 1, 1], [], []>} : vector<256x32xf32>, vector<32x32xf32>, vector<256x32xf32> -> vector<256x32xf32>
    %c0_45 = arith.constant 0 : index
    %c0_46 = arith.constant 0 : index
    %76 = vector.load %arg14[%c0_45, %c0_46] : memref<1x32xf32, #tpu.memory_space<vmem>>, vector<1x32xf32>
    %77 = vector.broadcast %76 : vector<1x32xf32> to vector<256x32xf32>
    %78 = arith.addf %75, %77 : vector<256x32xf32>
    %79 = arith.addf %78, %66 : vector<256x32xf32>
    %cst_47 = arith.constant dense<0.000000e+00> : vector<256xf32>
    %80 = vector.multi_reduction <add>, %79, %cst_47 [1] : vector<256x32xf32> to vector<256xf32>
    %81 = vector.shape_cast %80 : vector<256xf32> to vector<256x1xf32>
    %cst_48 = arith.constant 3.200000e+01 : f32
    %82 = vector.broadcast %cst_48 : f32 to vector<256x1xf32>
    %83 = arith.divf %81, %82 : vector<256x1xf32>
    %84 = vector.broadcast %83 : vector<256x1xf32> to vector<256x32xf32>
    %85 = arith.subf %79, %84 : vector<256x32xf32>
    %86 = arith.mulf %85, %85 : vector<256x32xf32>
    %cst_49 = arith.constant dense<0.000000e+00> : vector<256xf32>
    %87 = vector.multi_reduction <add>, %86, %cst_49 [1] : vector<256x32xf32> to vector<256xf32>
    %88 = vector.shape_cast %87 : vector<256xf32> to vector<256x1xf32>
    %cst_50 = arith.constant 3.200000e+01 : f32
    %89 = vector.broadcast %cst_50 : f32 to vector<256x1xf32>
    %90 = arith.divf %88, %89 : vector<256x1xf32>
    %91 = vector.broadcast %83 : vector<256x1xf32> to vector<256x32xf32>
    %92 = arith.subf %79, %91 : vector<256x32xf32>
    %cst_51 = arith.constant 9.99999974E-6 : f32
    %93 = vector.broadcast %cst_51 : f32 to vector<256x1xf32>
    %94 = arith.addf %90, %93 : vector<256x1xf32>
    %95 = math.rsqrt %94 : vector<256x1xf32>
    %96 = vector.broadcast %95 : vector<256x1xf32> to vector<256x32xf32>
    %97 = arith.mulf %92, %96 : vector<256x32xf32>
    %98 = vector.shape_cast %97 : vector<256x32xf32> to vector<2x16x8x32xf32>
    %99 = tpu.transpose %98, [0, 2, 1, 3] : vector<2x16x8x32xf32> -> vector<2x8x16x32xf32>
    %c0_52 = arith.constant 0 : index
    %c0_53 = arith.constant 0 : index
    %c0_54 = arith.constant 0 : index
    %c0_55 = arith.constant 0 : index
    %100 = vector.load %arg15[%c0_52, %c0_53, %c0_54, %c0_55] : memref<2x8x16x32xf32, #tpu.memory_space<vmem>>, vector<2x8x16x32xf32>
    tpu.vector_store %arg15[%c0_52, %c0_53, %c0_54, %c0_55], %99 {strides = array<i32>} : memref<2x8x16x32xf32, #tpu.memory_space<vmem>>, vector<2x8x16x32xf32>,
    return
  }
  func.func @transform_0(%arg0: i32) -> (i32, i32, i32, i32) {
    %c0_i32 = arith.constant 0 : i32
    %c0_i32_0 = arith.constant 0 : i32
    %c0_i32_1 = arith.constant 0 : i32
    %c0_i32_2 = arith.constant 0 : i32
    return %arg0, %c0_i32, %c0_i32_0, %c0_i32_1 : i32, i32, i32, i32
  }
  func.func @transform_1(%arg0: i32) -> (i32, i32, i32, i32) {
    %c0_i32 = arith.constant 0 : i32
    %c0_i32_0 = arith.constant 0 : i32
    %c0_i32_1 = arith.constant 0 : i32
    %c0_i32_2 = arith.constant 0 : i32
    return %arg0, %c0_i32, %c0_i32_0, %c0_i32_1 : i32, i32, i32, i32
  }
  func.func @transform_2(%arg0: i32) -> (i32, i32) {
    %c0_i32 = arith.constant 0 : i32
    %c0_i32_0 = arith.constant 0 : i32
    %c0_i32_1 = arith.constant 0 : i32
    return %c0_i32, %c0_i32_0 : i32, i32
  }
  func.func @transform_3(%arg0: i32) -> (i32, i32) {
    %c0_i32 = arith.constant 0 : i32
    %c0_i32_0 = arith.constant 0 : i32
    %c0_i32_1 = arith.constant 0 : i32
    return %c0_i32, %c0_i32_0 : i32, i32
  }
  func.func @transform_4(%arg0: i32) -> (i32, i32) {
    %c0_i32 = arith.constant 0 : i32
    %c0_i32_0 = arith.constant 0 : i32
    %c0_i32_1 = arith.constant 0 : i32
    return %c0_i32, %c0_i32_0 : i32, i32
  }
  func.func @transform_5(%arg0: i32) -> (i32, i32) {
    %c0_i32 = arith.constant 0 : i32
    %c0_i32_0 = arith.constant 0 : i32
    %c0_i32_1 = arith.constant 0 : i32
    return %c0_i32, %c0_i32_0 : i32, i32
  }
  func.func @transform_6(%arg0: i32) -> (i32, i32) {
    %c0_i32 = arith.constant 0 : i32
    %c0_i32_0 = arith.constant 0 : i32
    %c0_i32_1 = arith.constant 0 : i32
    return %c0_i32, %c0_i32_0 : i32, i32
  }
  func.func @transform_7(%arg0: i32) -> (i32, i32) {
    %c0_i32 = arith.constant 0 : i32
    %c0_i32_0 = arith.constant 0 : i32
    %c0_i32_1 = arith.constant 0 : i32
    return %c0_i32, %c0_i32_0 : i32, i32
  }
  func.func @transform_8(%arg0: i32) -> (i32, i32) {
    %c0_i32 = arith.constant 0 : i32
    %c0_i32_0 = arith.constant 0 : i32
    %c0_i32_1 = arith.constant 0 : i32
    return %c0_i32, %c0_i32_0 : i32, i32
  }
  func.func @transform_9(%arg0: i32) -> (i32, i32) {
    %c0_i32 = arith.constant 0 : i32
    %c0_i32_0 = arith.constant 0 : i32
    %c0_i32_1 = arith.constant 0 : i32
    return %c0_i32, %c0_i32_0 : i32, i32
  }
  func.func @transform_10(%arg0: i32) -> (i32, i32) {
    %c0_i32 = arith.constant 0 : i32
    %c0_i32_0 = arith.constant 0 : i32
    %c0_i32_1 = arith.constant 0 : i32
    return %c0_i32, %c0_i32_0 : i32, i32
  }
  func.func @transform_11(%arg0: i32) -> (i32, i32) {
    %c0_i32 = arith.constant 0 : i32
    %c0_i32_0 = arith.constant 0 : i32
    %c0_i32_1 = arith.constant 0 : i32
    return %c0_i32, %c0_i32_0 : i32, i32
  }
  func.func @transform_12(%arg0: i32) -> (i32, i32) {
    %c0_i32 = arith.constant 0 : i32
    %c0_i32_0 = arith.constant 0 : i32
    %c0_i32_1 = arith.constant 0 : i32
    return %c0_i32, %c0_i32_0 : i32, i32
  }
  func.func @transform_13(%arg0: i32) -> (i32, i32) {
    %c0_i32 = arith.constant 0 : i32
    %c0_i32_0 = arith.constant 0 : i32
    %c0_i32_1 = arith.constant 0 : i32
    return %c0_i32, %c0_i32_0 : i32, i32
  }
  func.func @transform_14(%arg0: i32) -> (i32, i32, i32, i32) {
    %c0_i32 = arith.constant 0 : i32
    %c0_i32_0 = arith.constant 0 : i32
    %c0_i32_1 = arith.constant 0 : i32
    %c0_i32_2 = arith.constant 0 : i32
    return %arg0, %c0_i32, %c0_i32_0, %c0_i32_1 : i32, i32, i32, i32
  }
}

</mosaic_0001>

<bundles_post_ra>
// kernel: tpu_custom_call.1
= control target key start
LH: loop header
LB: loop body
LE: loop exit
PB: predicated region body
PF: predicated region fallthrough
CT: control target
= control target key end

     0   :  { %s14970_s0 = inlined_call_operand.hbm [shape: f32[4,8,16,32], index: 0, kind: input, shape index: {}]   ;;  %s14971_s1 = inlined_call_operand.hbm [shape: f32[4,8,16,32], index: 1, kind: input, shape index: {}]   ;;  %s14972_s2 = inlined_call_operand.hbm [shape: f32[32,32], index: 2, kind: input, shape index: {}]   ;;  %s14973_s3 = inlined_call_operand.vmem [shape: f32[1,32], index: 3, kind: input, shape index: {}]   ;;  %s14974_s4 = inlined_call_operand.hbm [shape: f32[32,32], index: 4, kind: input, shape index: {}]   ;;  %s14975_s5 = inlined_call_operand.vmem [shape: f32[1,32], index: 5, kind: input, shape index: {}]   ;;  %s14976_s6 = inlined_call_operand.hbm [shape: f32[32,32], index: 6, kind: input, shape index: {}]   ;;  %s14977_s7 = inlined_call_operand.vmem [shape: f32[1,32], index: 7, kind: input, shape index: {}]   ;;  %s14978_s8 = inlined_call_operand.hbm [shape: f32[32,32], index: 8, kind: input, shape index: {}]   ;;  %s14979_s9 = inlined_call_operand.vmem [shape: f32[1,32], index: 9, kind: input, shape index: {}]   ;;  %s14980_s10 = inlined_call_operand.vmem [shape: f32[32,32], index: 10, kind: input, shape index: {}]   ;;  %s14981_s11 = inlined_call_operand.vmem [shape: f32[1,32], index: 11, kind: input, shape index: {}]   ;;  %s14982_s12 = inlined_call_operand.hbm [shape: f32[32,32], index: 12, kind: input, shape index: {}]   ;;  %s14983_s13 = inlined_call_operand.vmem [shape: f32[1,32], index: 13, kind: input, shape index: {}]   ;;  %s14984_s14 = inlined_call_operand.hbm [shape: f32[4,8,16,32], index: 14, kind: output, shape index: {}]  }
   0x1   :  { %15033 = sst [smem:[#allocation69_spill]] %s14970_s0 }
   0x2   :  { %15034 = sst [smem:[#allocation70_spill]] %s14972_s2 }
   0x3   :  { %15035 = sst [smem:[#allocation71_spill]] %s14974_s4 }
   0x4   :  { %15036 = sst [smem:[#allocation72_spill]] %s14976_s6 }
   0x5   :  { %15037 = sst [smem:[#allocation73_spill]] %s14977_s7 }
   0x6   :  { %15038 = sst [smem:[#allocation74_spill]] %s14978_s8 }
   0x7   :  { %15039 = sst [smem:[#allocation75_spill]] %s14979_s9 }
   0x8   :  { %15040 = sst [smem:[#allocation76_spill]] %s14980_s10 }
   0x9   :  { %15041 = sst [smem:[#allocation77_spill]] %s14981_s11 }
   0xa   :  { %15042 = sst [smem:[#allocation78_spill]] %s14982_s12 }
   0xb   :  { %15043 = sst [smem:[#allocation79_spill]] %s14983_s13 }
   0xc   :  { %15044 = sst [smem:[#allocation80_spill]] %s14984_s14 }
   0xd   :  { %19 = vsyncpa [#allocation3], 0 }
   0xe   :  { %21 = vsyncpa [#allocation3 + $0x1], 0 }
   0xf   :  { %22 = vsyncpa [#allocation6], 0 }
  0x10   :  { %24 = vsyncpa [#allocation6 + $0x1], 0 }
  0x11   :  { %25 = vsyncpa [#allocation9], 0 }
  0x12   :  { %26 = vsyncpa [#allocation12], 0 }
  0x13   :  { %27 = vsyncpa [#allocation4], 0 }
  0x14   :  { %29 = vsyncpa [#allocation4 + $0x1], 0  ;;  %s11991_s29 = smov 0   ;;  %s11993_s30 = smov 0  }
  0x15   :  { %s11995_s15 = smov 0   ;;  %s11997_s16 = smov 0  }
  0x16 LB: > { %s11900_s17 = smov [#allocation7]   ;;  %s12012_s19 = sadd.s32 4294967295, %s11898_s16   ;;  %s11898_s16 = sphi %s11997_s16, %s15180_s16   ;;  %s11894_s15 = sphi %s11995_s15, %s15179_s15   ;;  %s11890_s30 = sphi %s11993_s30, %s15178_s30   ;;  %s11886_s29 = sphi %s11991_s29, %s15177_s29  }
  0x17   : > { %s382_s18 = sshll.u32 %s11900_s17, 4  ;;  %p9868_p0 = scmp.ge.s32.totalorder %s11898_s16, 1  ;;  %s12017_s18 = int_to_ptr.vmem [resolvable:$true] %s382_s18 }
  0x18   : > { %p14987_p1 = scmp.eq.s32.totalorder %s12012_s19, 0  ;;  %p370_p2 = scmp.lt.s32.totalorder %s11898_s16, 3 }
  0x19   : > { %s11901_s21 = smov [#allocation8]   ;;  %s11902_s24 = smov [#allocation11]  }
  0x1a   : > { %p12019_p3 = pnand %p9868_p0, %p370_p2  ;;  %s398_s22 = sshll.u32 %s11901_s21, 4  ;;  %s12032_s22 = int_to_ptr.vmem [resolvable:$true] %s398_s22 }
  0x1b   : > { %s430_s25 = sshll.u32 %s11902_s24, 4  ;;  %s15047_s2 = sld [smem:[#allocation70_spill]]  ;;  %s12034_s25 = int_to_ptr.vmem [resolvable:$true] %s430_s25 }
  0x1c   : > { %s15045_s20 = scalar_select %p12019_p3, 1, 0 }
  0x1d   : > { %p11276_p5 = pneg %p12019_p3 }
  0x1f   : > { %p12028_p6 = pnand %p11276_p5, %p14987_p1 }
  0x21   : > { %s11616_s28 = scalar_lea.hbm %s15047_s2, 512  ;;  %p12044_p8 = pneg %p12028_p6 }
  0x22   : > { %p11617_p7 = scmp.ne.s32.totalorder %s15047_s2, %s11616_s28  ;;  %p11623_p11 = scmp.lt.u32.totalorder %s11616_s28, %s15047_s2 }
  0x24   : > { %p11619_p9 = pnand %p12044_p8, %p11617_p7 }
  0x26   : > { %p11620_p10 = pneg %p11619_p9 }
  0x28   : > { %p11625_p12 = pnand %p11623_p11, %p11620_p10 }
  0x2a   : > { %11628 = shalt.err (!%p11625_p12)
}
  0x2b   : > { %s11629_s14 = scalar_lea.vmem %s12017_s18, 512  ;;  %p11637_p5 = scmp.lt.s32.totalorder %s12017_s18, %s12017_s18 }
  0x2c   : > { %p11630_p13 = scmp.ne.s32.totalorder %s12017_s18, %s11629_s14  ;;  %p11638_p4 = scmp.lt.s32.totalorder %s11629_s14, %s11629_s14 }
  0x2e   : > { %p11632_p0 = pnand %p11630_p13, %p12044_p8  ;;  %p11639_p7 = por %p11638_p4, %p11637_p5 }
  0x30   : > { %p11633_p2 = pneg %p11632_p0 }
  0x32   : > { %p11640_p9 = pnand %p11639_p7, %p11633_p2 }
  0x34   : > { %11643 = shalt.err (!%p11640_p9)
}
  0x35   : > { %s14989_s26 = smov 128   ;;  %s14991_s13 = smov 8  }
  0x36   : > { %11279 = dma.hbm_to_vmem [thread:$0]  (!%p12028_p6), %s15047_s2, 512, %s12017_s18, [#allocation6], %s14989_s26, %s14989_s26, %s14991_s13  }
  0x37   : > { %s15049_s4 = sld [smem:[#allocation71_spill]] }
  0x3d   : > { %s11644_s14 = scalar_lea.hbm %s15049_s4, 512 }
  0x3e   : > { %p11645_p4 = scmp.ne.s32.totalorder %s15049_s4, %s11644_s14  ;;  %p11651_p12 = scmp.lt.u32.totalorder %s11644_s14, %s15049_s4 }
  0x40   : > { %p11647_p10 = pnand %p11645_p4, %p12044_p8 }
  0x42   : > { %p11648_p11 = pneg %p11647_p10 }
  0x44   : > { %p11653_p13 = pnand %p11651_p12, %p11648_p11 }
  0x46   : > { %11656 = shalt.err (!%p11653_p13)
}
  0x47   : > { %s11657_s18 = scalar_lea.vmem %s12032_s22, 512  ;;  %p11665_p7 = scmp.lt.s32.totalorder %s12032_s22, %s12032_s22 }
  0x48   : > { %p11658_p0 = scmp.ne.s32.totalorder %s12032_s22, %s11657_s18  ;;  %p11666_p9 = scmp.lt.s32.totalorder %s11657_s18, %s11657_s18 }
  0x4a   : > { %p11660_p2 = pnand %p11658_p0, %p12044_p8  ;;  %p11667_p4 = por %p11666_p9, %p11665_p7 }
  0x4c   : > { %p11661_p5 = pneg %p11660_p2 }
  0x4e   : > { %p11668_p10 = pnand %p11667_p4, %p11661_p5 }
  0x50   : > { %11671 = shalt.err (!%p11668_p10)
}
  0x51   : > { %11282 = dma.hbm_to_vmem [thread:$0]  (!%p12028_p6), %s15049_s4, 512, %s12032_s22, [#allocation9], %s14989_s26, %s14989_s26, %s14991_s13  }
  0x52   : > { %s15050_s8 = sld [smem:[#allocation74_spill]] }
  0x58   : > { %s11672_s27 = scalar_lea.hbm %s15050_s8, 512 }
  0x59   : > { %p11673_p11 = scmp.ne.s32.totalorder %s15050_s8, %s11672_s27  ;;  %p11679_p0 = scmp.lt.u32.totalorder %s11672_s27, %s15050_s8 }
  0x5b   : > { %p11675_p12 = pnand %p11673_p11, %p12044_p8 }
  0x5d   : > { %p11676_p13 = pneg %p11675_p12 }
  0x5f   : > { %p11681_p2 = pnand %p11679_p0, %p11676_p13 }
  0x61   : > { %11684 = shalt.err (!%p11681_p2)
}
  0x62   : > { %s11685_s22 = scalar_lea.vmem %s12034_s25, 512  ;;  %p11693_p4 = scmp.lt.s32.totalorder %s12034_s25, %s12034_s25 }
  0x63   : > { %p11686_p5 = scmp.ne.s32.totalorder %s12034_s25, %s11685_s22  ;;  %p11694_p10 = scmp.lt.s32.totalorder %s11685_s22, %s11685_s22 }
  0x65   : > { %p11688_p7 = pnand %p11686_p5, %p12044_p8  ;;  %p11695_p11 = por %p11694_p10, %p11693_p4 }
  0x67   : > { %p11689_p9 = pneg %p11688_p7 }
  0x69   : > { %p11696_p12 = pnand %p11695_p11, %p11689_p9 }
  0x6b   : > { %11699 = shalt.err (!%p11696_p12)
}
  0x6c   : > { %11288 = dma.hbm_to_vmem [thread:$0]  (!%p12028_p6), %s15050_s8, 512, %s12034_s25, [#allocation12], %s14989_s26, %s14989_s26, %s14991_s13  }
  0x6d   : > { %s11905_s9 = smov [#allocation10]   ;;  %s11906_s11 = smov [#allocation13]  }
  0x6e   : > { %s414_s10 = sshll.u32 %s11905_s9, 4  ;;  %s452_s27 = sshll.u32 %s11906_s11, 4  ;;  %s415_s10 = int_to_ptr.vmem [resolvable:$true] %s414_s10  ;;  %s453_s27 = int_to_ptr.vmem [resolvable:$true] %s452_s27 }
  0x6f   : > { %s15051_s6 = sld [smem:[#allocation72_spill]] }
  0x75   : > { %s11700_s24 = scalar_lea.hbm %s15051_s6, 512 }
  0x76   : > { %p11701_p13 = scmp.ne.s32.totalorder %s15051_s6, %s11700_s24  ;;  %p11707_p5 = scmp.lt.u32.totalorder %s11700_s24, %s15051_s6 }
  0x78   : > { %p11703_p0 = pnand %p11701_p13, %p12044_p8 }
  0x7a   : > { %p11704_p2 = pneg %p11703_p0 }
  0x7c   : > { %p11709_p7 = pnand %p11707_p5, %p11704_p2 }
  0x7e   : > { %11712 = shalt.err (!%p11709_p7)
}
  0x7f   : > { %s11713_s25 = scalar_lea.vmem %s415_s10, 512  ;;  %p11721_p11 = scmp.lt.s32.totalorder %s415_s10, %s415_s10 }
  0x80   : > { %p11714_p9 = scmp.ne.s32.totalorder %s415_s10, %s11713_s25  ;;  %p11722_p12 = scmp.lt.s32.totalorder %s11713_s25, %s11713_s25 }
  0x82   : > { %p11716_p4 = pnand %p11714_p9, %p12044_p8  ;;  %p11723_p1 = por %p11722_p12, %p11721_p11 }
  0x84   : > { %p11717_p10 = pneg %p11716_p4 }
  0x86   : > { %p11724_p3 = pnand %p11723_p1, %p11717_p10 }
  0x88   : > { %11727 = shalt.err (!%p11724_p3)
}
  0x89   : > { %11285 = dma.hbm_to_vmem [thread:$0]  (!%p12028_p6), %s15051_s6, 512, %s415_s10, [#allocation9], %s14989_s26, %s14989_s26, %s14991_s13  }
  0x8a   : > { %s15052_s12 = sld [smem:[#allocation78_spill]] }
  0x90   : > { %s11728_s28 = scalar_lea.hbm %s15052_s12, 512 }
  0x91   : > { %p11729_p1 = scmp.ne.s32.totalorder %s15052_s12, %s11728_s28  ;;  %p11735_p0 = scmp.lt.u32.totalorder %s11728_s28, %s15052_s12 }
  0x93   : > { %p11731_p3 = pnand %p11729_p1, %p12044_p8 }
  0x95   : > { %p11732_p13 = pneg %p11731_p3 }
  0x97   : > { %p11737_p2 = pnand %p11735_p0, %p11732_p13 }
  0x99   : > { %11740 = shalt.err (!%p11737_p2)
}
  0x9a   : > { %s11741_s18 = scalar_lea.vmem %s453_s27, 512  ;;  %p11749_p4 = scmp.lt.s32.totalorder %s453_s27, %s453_s27 }
  0x9b   : > { %p11742_p5 = scmp.ne.s32.totalorder %s453_s27, %s11741_s18  ;;  %p11750_p10 = scmp.lt.s32.totalorder %s11741_s18, %s11741_s18 }
  0x9d   : > { %p11744_p7 = pnand %p11742_p5, %p12044_p8  ;;  %p11751_p11 = por %p11750_p10, %p11749_p4 }
  0x9f   : > { %p11745_p9 = pneg %p11744_p7 }
  0xa1   : > { %p11752_p12 = pnand %p11751_p11, %p11745_p9 }
  0xa3   : > { %11755 = shalt.err (!%p11752_p12)
}
  0xa4   : > { %11291 = dma.hbm_to_vmem [thread:$0]  (!%p12028_p6), %s15052_s12, 512, %s453_s27, [#allocation12], %s14989_s26, %s14989_s26, %s14991_s13  }
  0xa5   : > { %s9867_s23 = sadd.s32 4294967294, %s11898_s16   ;;  %s12164_s21 = sadd.s32 1, %s11898_s16  }
  0xa6   : > { %s42_s2 = sadd.s32 1, %s11894_s15  ;;  %s39_s7 = ssub.s32 %s11898_s16, %s12164_s21 }
  0xa7   : > { %p49_p8 = scmp.ne.s32.totalorder %s11894_s15, %s11890_s30  ;;  %p40_p1 = scmp.eq.s32.totalorder %s39_s7, 0 }
  0xa8   : > { %p50_p3 = scmp.eq.s32.totalorder %s11898_s16, 0  ;;  %p55_p13 = scmp.ne.s32.totalorder %s11890_s30, %s11886_s29 }
  0xa9   : > { %p357_p0 = scmp.eq.s32.totalorder %s12012_s19, 1  ;;  %p15054_p5 = scmp.eq.s32.totalorder %s12012_s19, 0 }
  0xaa   : > { %s12176_s9 = scalar_select %p40_p1, %s11894_s15, %s42_s2  }
  0xab   : > { %p51_p2 = por %p50_p3, %p49_p8  ;;  %p12180_p7 = por %p15054_p5, %p55_p13 }
  0xac   : > { %15053 = sst [smem:[#allocation21_spill]] %s12176_s9  ;;  %p12184_p6 = por %p357_p0, %p49_p8 }
  0xad   : > { %p363_p9 = scmp.eq.s32.totalorder %s9867_s23, 1  ;;  %p11308_p4 = scmp.lt.s32.totalorder %s11898_s16, 2 }
  0xae   : > { %s15056_s27 = scalar_select %p12184_p6, 1, 0 }
  0xaf   : > { %s469_s28 = sand.u32 1, %s11894_s15   ;;  %p12190_p10 = por %p363_p9, %p55_p13 }
  0xb0   : > { %s12194_s24 = sshll.u32 %s469_s28, 8  ;;  %s10193_s14 = sshll.u32 %s11898_s16, 12 }
  0xb1   : > { %s15057_s17 = scalar_select %p12190_p10, 1, 0 }
  0xb2   : > { %s15058_s0 = sld [smem:[#allocation69_spill]]  ;;  %s473_s25 = scalar_lea.vmem [#allocation2], %s12194_s24 }
  0xb3   : > { %s481_s23 = sshll.u32 %s473_s25, 4  ;;  %p12203_p11 = pnand %p11308_p4, %p51_p2  ;;  %s12207_s23 = int_to_ptr.vmem [resolvable:$true] %s481_s23 }
  0xb4   : > { %s12212_s22 = scalar_lea.hbm %s14971_s1, %s10193_s14  ;;  %s12214_s18 = scalar_lea.sflag [#allocation3], %s469_s28 }
  0xb5   : > { %p11758_p8 = pneg %p12203_p11 }
  0xb8   : > { %s12200_s10 = scalar_lea.hbm %s15058_s0, %s10193_s14  ;;  %s11761_s6 = scalar_lea.hbm %s15058_s0, 8192 }
  0xb9   : > { %s11756_s13 = scalar_lea.hbm %s12200_s10, 4096  ;;  %p11762_p13 = scmp.lt.u32.totalorder %s12200_s10, %s15058_s0 }
  0xba   : > { %p11757_p12 = scmp.ne.s32.totalorder %s12200_s10, %s11756_s13  ;;  %p11763_p0 = scmp.lt.u32.totalorder %s11761_s6, %s11756_s13 }
  0xbb   : > { %p11765_p5 = scmp.lt.u32.totalorder %s11756_s13, %s12200_s10 }
  0xbc   : > { %p11759_p1 = pnand %p11758_p8, %p11757_p12  ;;  %p11764_p2 = por %p11763_p0, %p11762_p13 }
  0xbe   : > { %p11760_p3 = pneg %p11759_p1  ;;  %p11766_p9 = por %p11765_p5, %p11764_p2 }
  0xc0   : > { %p11767_p4 = pnand %p11766_p9, %p11760_p3 }
  0xc2   : > { %11770 = shalt.err (!%p11767_p4)
}
  0xc3   : > { %s11771_s26 = scalar_lea.vmem %s12207_s23, 4096  ;;  %s11907_s4 = smov [#allocation2]  }
  0xc4   : > { %p11772_p12 = scmp.ne.s32.totalorder %s12207_s23, %s11771_s26  ;;  %s11776_s28 = sshll.u32 %s11907_s4, 4  ;;  %s11777_s28 = int_to_ptr.vmem [resolvable:$false] %s11776_s28 }
  0xc5   : > { %s11778_s8 = scalar_lea.vmem %s11777_s28, 8192  ;;  %p11779_p6 = scmp.lt.s32.totalorder %s12207_s23, %s11777_s28 }
  0xc6   : > { %p11774_p1 = pnand %p11772_p12, %p11758_p8  ;;  %p11780_p13 = scmp.lt.s32.totalorder %s11778_s8, %s11771_s26 }
  0xc8   : > { %p11775_p10 = pneg %p11774_p1  ;;  %p11781_p0 = por %p11780_p13, %p11779_p6 }
  0xca   : > { %p11782_p2 = pnand %p11781_p0, %p11775_p10 }
  0xcc   : > { %11785 = shalt.err (!%p11782_p2)
}
  0xcd   : > { %s15060_s6 = smov 8   ;;  %s15061_s12 = smov 128  }
  0xce   : > { %11295 = dma.hbm_to_vmem [thread:$0]  (!%p12203_p11), %s12200_s10, 4096, %s12207_s23, %s12214_s18, %s15061_s12, %s15061_s12, %s15060_s6  }
  0xcf   : > { %s495_s13 = scalar_lea.vmem [#allocation5], %s12194_s24  ;;  %s491_s7 = sand.u32 1, %s11898_s16  }
  0xd0   : > { %s503_s14 = sshll.u32 %s495_s13, 4  ;;  %s12249_s25 = scalar_lea.sflag [#allocation6], %s491_s7  ;;  %s12247_s14 = int_to_ptr.vmem [resolvable:$true] %s503_s14 }
  0xd1   : > { %s11786_s26 = scalar_lea.hbm %s12212_s22, 4096  ;;  %s11791_s8 = scalar_lea.hbm %s14971_s1, 8192 }
  0xd2   : > { %p11787_p6 = scmp.ne.s32.totalorder %s12212_s22, %s11786_s26  ;;  %p11792_p5 = scmp.lt.u32.totalorder %s12212_s22, %s14971_s1 }
  0xd3   : > { %p11793_p9 = scmp.lt.u32.totalorder %s11791_s8, %s11786_s26  ;;  %p11795_p12 = scmp.lt.u32.totalorder %s11786_s26, %s12212_s22 }
  0xd4   : > { %p11789_p10 = pnand %p11787_p6, %p11758_p8 }
  0xd5   : > { %p11794_p4 = por %p11793_p9, %p11792_p5 }
  0xd6   : > { %p11790_p3 = pneg %p11789_p10 }
  0xd7   : > { %p11796_p1 = por %p11795_p12, %p11794_p4 }
  0xd9   : > { %p11797_p13 = pnand %p11796_p1, %p11790_p3 }
  0xdb   : > { %11800 = shalt.err (!%p11797_p13)
}
  0xdc   : > { %s11801_s24 = scalar_lea.vmem %s12247_s14, 4096  ;;  %s11908_s10 = smov [#allocation5]  }
  0xdd   : > { %p11802_p0 = scmp.ne.s32.totalorder %s12247_s14, %s11801_s24  ;;  %s11806_s23 = sshll.u32 %s11908_s10, 4  ;;  %s11807_s23 = int_to_ptr.vmem [resolvable:$false] %s11806_s23 }
  0xde   : > { %s11808_s0 = scalar_lea.vmem %s11807_s23, 8192  ;;  %p11809_p10 = scmp.lt.s32.totalorder %s12247_s14, %s11807_s23 }
  0xdf   : > { %p11804_p2 = pnand %p11802_p0, %p11758_p8  ;;  %p11810_p5 = scmp.lt.s32.totalorder %s11808_s0, %s11801_s24 }
  0xe1   : > { %p11805_p6 = pneg %p11804_p2  ;;  %p11811_p9 = por %p11810_p5, %p11809_p10 }
  0xe3   : > { %p11812_p4 = pnand %p11811_p9, %p11805_p6 }
  0xe5   : > { %11815 = shalt.err (!%p11812_p4)
}
  0xe6   : > { %11298 = dma.hbm_to_vmem [thread:$0]  (!%p12203_p11), %s12212_s22, 4096, %s12247_s14, %s12249_s25, %s15061_s12, %s15061_s12, %s15060_s6  }
  0xe7   : > { %p15062_p8 = scmp.ne.s32.totalorder %s15045_s20, 0 }
  0xe9   : > { %515 = sbr.rel (%p15062_p8) target bundleno = 2665 (0xa69), region = 76 }
  0xf0   : > { %s12281_s9 = sand.u32 1, %s11890_s30  }
  0xf1   : > { %s12284_s18 = sshll.u32 %s12281_s9, 8  ;;  %s518_s2 = scalar_lea.sflag [#allocation3], %s12281_s9 }
  0xf2   : > { %s12288_s13 = scalar_lea.vmem [#allocation2], %s12284_s18 }
  0xf3   : > { %11861 = dma.done.wait (%p12180_p7), %s518_s2, 4096  }
  0xf4   : > { %11863 = vsyncadd (%p12180_p7), %s518_s2, 4294963200  ;;  %s526_s20 = sand.u32 1, %s12012_s19   ;;  %s12296_s6 = scalar_lea.vmem [#allocation5], %s12284_s18 }
  0xf5   : > { %s527_s22 = scalar_lea.sflag [#allocation6], %s526_s20 }
  0xf6   : > { %11865 = dma.done.wait (%p12180_p7), %s527_s22, 4096  }
  0xf7   : > { %11867 = vsyncadd (%p12180_p7), %s527_s22, 4294963200  ;;  %p15063_p11 = scmp.eq.s32.totalorder %s12012_s19, 0 }
  0xf9   : > { %11869 = dma.done.wait (%p15063_p11), [#allocation6], 512   ;;  %p15064_p3 = pmov %p15063_p11 }
  0xfb   : > { %11871 = vsyncadd (%p15064_p3), [#allocation6], 4294966784  ;;  %p15065_p12 = pmov %p15064_p3 }
  0xfc   : > { %p15066_p1 = pmov %p15064_p3 }
  0xfd   : > { %11873 = dma.done.wait (%p15065_p12), [#allocation9], 1024  }
  0xfe   : > { %11875 = vsyncadd (%p15066_p1), [#allocation9], 4294966272  ;;  %p15067_p13 = pmov %p15066_p1 }
  0xff   : > { %p15068_p0 = pmov %p15066_p1 }
 0x100   : > { %11877 = dma.done.wait (%p15067_p13), [#allocation12], 1024  }
 0x101   : > { %11879 = vsyncadd (%p15068_p0), [#allocation12], 4294966272  ;;  %v11909_v0 = vmov 1983009808   ;;  %v14994_v2 = vlaneseq  ;;  %v1243_v3 = vld [vmem:[#allocation7] sm:$0xff]  ;;  %v1244_v4 = vld [vmem:[#allocation7 + $0x8] sm:$0xff] }
 0x102   : > { %v702_v1 = vunpack.c.l.s4 %v11909_v0  ;;  %v1245_v5 = vld [vmem:[#allocation7 + $0x10] sm:$0xff]  ;;  %v11910_v8 = vmov 1934713408   ;;  %v11198_v10 = vpack.c.bf16 %v1244_v4, %v1243_v3  ;;  %v1246_v11 = vld [vmem:[#allocation7 + $0x18] sm:$0xff]  ;;  %v619_v12 = vld [vmem:[%s12288_s13 + $0x80] sm:$0xff]  ;;  %vm1254_vm0 = vcmask 261120  }
 0x103   : > { %v12315_v7 = vshrl.u32 %v14994_v2, 7  ;;  %v766_v9 = vunpack.c.l.s4 %v11910_v8  ;;  %v621_v13 = vld [vmem:[%s12288_s13 + $0x90] sm:$0xff]  ;;  %v11202_v14 = vpack.c.bf16 %v1246_v11, %v1245_v5  ;;  %v623_v15 = vld [vmem:[%s12288_s13 + $0xa0] sm:$0xff]  ;;  %v620_v54 = vld [vmem:[%s12288_s13 + $0x88] sm:$0xff]  ;;  %vm11912_vm1 = vmmov 0   ;;  %s15104_s4 = sld [smem:[#allocation73_spill]] }
 0x104   : > { %v703_v6 = vunpack.c.0.s8 %v702_v1  ;;  %v625_v16 = vld [vmem:[%s12288_s13 + $0xb0] sm:$0xff]  ;;  %v627_v17 = vld [vmem:[%s12288_s13 + $0xc0] sm:$0xff]  ;;  %11246 = vmatprep.subr.bf16.mxu1 %v11198_v10  ;;  %11199 = vmatprep.subr.bf16.mxu0 %v11198_v10  ;;  %v622_v55 = vld [vmem:[%s12288_s13 + $0x98] sm:$0xff]  ;;  %vm4519_vm3 = vcmask 64512   ;;  %s15134_s24 = sld [smem:[#allocation75_spill]]  ;;  %s15167_s0 = sld [smem:[#allocation76_spill]] }
 0x105   : > { %v629_v18 = vld [vmem:[%s12288_s13 + $0xd0] sm:$0xff]  ;;  %v631_v19 = vld [vmem:[%s12288_s13 + $0xe0] sm:$0xff]  ;;  %11248 = vmatpush3.bf16.msra.mxu1 %v11198_v10  ;;  %v767_v25 = vunpack.c.0.s8 %v766_v9  ;;  %11201 = vmatpush3.bf16.msra.mxu0 %v11198_v10  ;;  %v624_v60 = vld [vmem:[%s12288_s13 + $0xa8] sm:$0xff]  ;;  %s15168_s7 = sld [smem:[#allocation77_spill]]  ;;  %s14781_s28 = scalar_lea.vmem [#allocation14], %s12284_s18 }
 0x106   : > { %v633_v20 = vld [vmem:[%s12288_s13 + $0xf0] sm:$0xff]  ;;  %v651_v21 = vld [vmem:[%s12296_s6 + $0x80] sm:$0xff]  ;;  %v12329_v24 = vsub.s32 %v703_v6, %v12315_v7  ;;  %11247 = vmatprep.subr.bf16.mxu1 %v11202_v14  ;;  %11203 = vmatprep.subr.bf16.mxu0 %v11202_v14  ;;  %v626_v61 = vld [vmem:[%s12288_s13 + $0xb8] sm:$0xff]  ;;  %s10197_s18 = sshll.u32 %s12012_s19, 12  ;;  %s9724_s8 = sshll.u32 %s14781_s28, 4  ;;  %s14910_s8 = int_to_ptr.vmem [resolvable:$true] %s9724_s8 }
 0x107   : > { %v653_v22 = vld [vmem:[%s12296_s6 + $0x90] sm:$0xff]  ;;  %v655_v23 = vld [vmem:[%s12296_s6 + $0xa0] sm:$0xff]  ;;  %v683_v29 = vadd.f32 %v651_v21, %v619_v12  ;;  %v12337_v41 = vsub.s32 %v767_v25, %v12315_v7  ;;  %v652_v62 = vld [vmem:[%s12296_s6 + $0x88] sm:$0xff]  ;;  %s15172_s10 = sld [smem:[#allocation80_spill]]  ;;  %s9710_s2 = scalar_lea.sflag [#allocation4], %s12281_s9 }
 0x108   : > { %15069 = vst [vmem:[#allocation22_spill] sm:$0xff] %v12329_v24  ;;  %v657_v26 = vld [vmem:[%s12296_s6 + $0xb0] sm:$0xff]  ;;  %v659_v27 = vld [vmem:[%s12296_s6 + $0xc0] sm:$0xff]  ;;  %v685_v30 = vadd.f32 %v653_v22, %v621_v13  ;;  %v687_v31 = vadd.f32 %v655_v23, %v623_v15  ;;  %v654_v4 = vld [vmem:[%s12296_s6 + $0x98] sm:$0xff]  ;;  %p15173_p2 = scmp.ne.s32.totalorder %s15056_s27, 0  ;;  %s11913_s20 = smov [#allocation14]  }
 0x109   : > { %v661_v28 = vld [vmem:[%s12296_s6 + $0xd0] sm:$0xff]  ;;  %v663_v32 = vld [vmem:[%s12296_s6 + $0xe0] sm:$0xff]  ;;  %v689_v34 = vadd.f32 %v657_v26, %v625_v16  ;;  %v691_v35 = vadd.f32 %v659_v27, %v627_v17  ;;  %11249 = vmatpush3.bf16.msra.mxu1 %v11202_v14  ;;  %15070 = vst [vmem:[#allocation23_spill] sm:$0xff] %v12337_v41  ;;  %11205 = vmatpush3.bf16.msra.mxu0 %v11202_v14  ;;  %v656_v5 = vld [vmem:[%s12296_s6 + $0xa8] sm:$0xff]  ;;  %s11820_s22 = sshll.u32 %s11913_s20, 4  ;;  %s11821_s22 = int_to_ptr.vmem [resolvable:$false] %s11820_s22 }
 0x10a   : > { %v665_v33 = vld [vmem:[%s12296_s6 + $0xf0] sm:$0xff]  ;;  %v693_v36 = vadd.f32 %v661_v28, %v629_v18  ;;  %v695_v37 = vadd.f32 %v663_v32, %v631_v19  ;;  %v971_v39 = vcombine.low %v683_v29, %v687_v31  ;;  %v972_v40 = vcombine.high %v683_v29, %v687_v31  ;;  %v658_v6 = vld [vmem:[%s12296_s6 + $0xb8] sm:$0xff]  ;;  %v628_v12 = vld [vmem:[%s12288_s13 + $0xc8] sm:$0xff]  ;;  %p11823_p5 = scmp.lt.s32.totalorder %s14910_s8, %s11821_s22 }
 0x10b   : > { %v697_v38 = vadd.f32 %v665_v33, %v633_v20  ;;  %v987_v42 = vcombine.low %v685_v30, %v689_v34  ;;  %v988_v43 = vcombine.high %v685_v30, %v689_v34  ;;  %v630_v13 = vld [vmem:[%s12288_s13 + $0xd8] sm:$0xff]  ;;  %v632_v17 = vld [vmem:[%s12288_s13 + $0xe8] sm:$0xff]  ;;  %v684_v20 = vadd.f32 %v652_v62, %v620_v54 }
 0x10c   : > { %v979_v44 = vrot.slane %v971_v39, %v12329_v24  ;;  %v1003_v45 = vcombine.low %v691_v35, %v695_v37  ;;  %v986_v47 = vrot.slane %v972_v40, %v12329_v24  ;;  %v1004_v50 = vcombine.high %v691_v35, %v695_v37  ;;  %v634_v18 = vld [vmem:[%s12288_s13 + $0xf8] sm:$0xff]  ;;  %v660_v19 = vld [vmem:[%s12296_s6 + $0xc8] sm:$0xff] }
 0x10d   : > { %v1019_v46 = vcombine.low %v693_v36, %v697_v38  ;;  %v995_v48 = vrot.slane %v987_v42, %v12329_v24  ;;  %v1002_v49 = vrot.slane %v988_v43, %v12329_v24  ;;  %v1020_v51 = vcombine.high %v693_v36, %v697_v38  ;;  %v662_v22 = vld [vmem:[%s12296_s6 + $0xd8] sm:$0xff]  ;;  %v664_v23 = vld [vmem:[%s12296_s6 + $0xe8] sm:$0xff]  ;;  %s14908_s23 = scalar_lea.hbm %s15172_s10, %s10197_s18 }
 0x10e   : > { %v1011_v52 = vrot.slane %v1003_v45, %v12329_v24  ;;  %v1018_v58 = vrot.slane %v1004_v50, %v12329_v24  ;;  %v666_v25 = vld [vmem:[%s12296_s6 + $0xf8] sm:$0xff]  ;;  %v686_v26 = vadd.f32 %v654_v4, %v622_v55  ;;  %v688_v27 = vadd.f32 %v656_v5, %v624_v60  ;;  %v1577_v50 = vld [vmem:[#allocation8 + $0x8] sm:$0xff] }
 0x10f   : > { %v1027_v53 = vrot.slane %v1019_v46, %v12329_v24  ;;  %v1035_v56 = vcombine.low %v979_v44, %v995_v48  ;;  %v1036_v57 = vcombine.high %v979_v44, %v995_v48  ;;  %v1034_v59 = vrot.slane %v1020_v51, %v12329_v24  ;;  %v1579_v5 = vld [vmem:[#allocation8 + $0x18] sm:$0xff] }
 0x110   : > { %v1051_v1 = vcombine.low %v986_v47, %v1002_v49  ;;  %v1052_v3 = vcombine.high %v986_v47, %v1002_v49  ;;  %v690_v28 = vadd.f32 %v658_v6, %v626_v61  ;;  %v692_v36 = vadd.f32 %v660_v19, %v628_v12  ;;  %v1576_v49 = vld [vmem:[#allocation8] sm:$0xff]  ;;  %v613_v19 = vld [vmem:[%s12288_s13 + $0x50] sm:$0xff] }
 0x111   : > { %v1067_v63 = vcombine.low %v1011_v52, %v1027_v53  ;;  %v1068_v0 = vcombine.high %v1011_v52, %v1027_v53  ;;  %v1043_v8 = vrot.slane %v1035_v56, %v12337_v41  ;;  %v1050_v9 = vrot.slane %v1036_v57, %v12337_v41  ;;  %v603_v6 = vld [vmem:[%s12288_s13] sm:$0xff] }
 0x112   : > { %v1083_v10 = vcombine.low %v1018_v58, %v1034_v59  ;;  %v1084_v11 = vcombine.high %v1018_v58, %v1034_v59  ;;  %v1059_v16 = vrot.slane %v1051_v1, %v12337_v41  ;;  %v1066_v34 = vrot.slane %v1052_v3, %v12337_v41 }
 0x113   : > { %v1075_v14 = vrot.slane %v1067_v63, %v12337_v41  ;;  %v1082_v15 = vrot.slane %v1068_v0, %v12337_v41  ;;  %v694_v37 = vadd.f32 %v662_v22, %v630_v13  ;;  %v696_v38 = vadd.f32 %v664_v23, %v632_v17  ;;  %v1578_v63 = vld [vmem:[#allocation8 + $0x10] sm:$0xff]  ;;  %v607_v13 = vld [vmem:[%s12288_s13 + $0x20] sm:$0xff] }
 0x114   : > { %v1091_v21 = vrot.slane %v1083_v10, %v12337_v41  ;;  %v1098_v35 = vrot.slane %v1084_v11, %v12337_v41  ;;  %v698_v39 = vadd.f32 %v666_v25, %v634_v18  ;;  %v1107_v40 = vcombine.low %v684_v20, %v688_v27  ;;  %v637_v17 = vld [vmem:[%s12296_s6 + $0x10] sm:$0xff] }
 0x115   : > { %v12369_v29 = vcombine.low %v1043_v8, %v1075_v14  ;;  %v12371_v30 = vcombine.high %v1043_v8, %v1075_v14  ;;  %v12373_v31 = vcombine.low %v1050_v9, %v1082_v15  ;;  %v12375_v32 = vcombine.high %v1050_v9, %v1082_v15  ;;  %v605_v8 = vld [vmem:[%s12288_s13 + $0x10] sm:$0xff]  ;;  %v611_v15 = vld [vmem:[%s12288_s13 + $0x40] sm:$0xff] }
 0x116   : > { %v12377_v33 = vcombine.low %v1059_v16, %v1091_v21  ;;  %v1123_v42 = vcombine.low %v686_v26, %v690_v28  ;;  %v1108_v43 = vcombine.high %v684_v20, %v688_v27  ;;  %v1124_v44 = vcombine.high %v686_v26, %v690_v28  ;;  %v609_v14 = vld [vmem:[%s12288_s13 + $0x30] sm:$0xff]  ;;  %v615_v20 = vld [vmem:[%s12288_s13 + $0x60] sm:$0xff] }
 0x117   : > { %15071 = vst [vmem:[#allocation24_spill] sm:$0xff] %v12369_v29  ;;  %15072 = vst [vmem:[#allocation25_spill] sm:$0xff] %v12371_v30  ;;  %10574 = vmatprep.mubr.msk.f32.mxu1 %vm1254_vm0, %v12369_v29  ;;  %v1139_v45 = vcombine.low %v692_v36, %v696_v38  ;;  %v1155_v46 = vcombine.low %v694_v37, %v698_v39  ;;  %v1140_v47 = vcombine.high %v692_v36, %v696_v38  ;;  %v641_v27 = vld [vmem:[%s12296_s6 + $0x30] sm:$0xff]  ;;  %v643_v28 = vld [vmem:[%s12296_s6 + $0x40] sm:$0xff] }
 0x118   : > { %15073 = vst [vmem:[#allocation26_spill] sm:$0xff] %v12373_v31  ;;  %15074 = vst [vmem:[#allocation27_spill] sm:$0xff] %v12375_v32  ;;  %10575 = vmatmul.mubr.msk.f32.vlgmr.msra.gmra.mrb[0].mxu1 %vm1254_vm0, %v12371_v30  ;;  %v1156_v48 = vcombine.high %v694_v37, %v698_v39  ;;  %v1115_v51 = vrot.slane %v1107_v40, %v12329_v24  ;;  %v1131_v52 = vrot.slane %v1123_v42, %v12329_v24  ;;  %v645_v36 = vld [vmem:[%s12296_s6 + $0x50] sm:$0xff]  ;;  %v647_v40 = vld [vmem:[%s12296_s6 + $0x60] sm:$0xff] }
 0x119   : > { %15075 = vst [vmem:[#allocation28_spill] sm:$0xff] %v12377_v33  ;;  %10577 = vmatprep.mubr.msk.f32.mxu1 %vm1254_vm0, %v12373_v31  ;;  %v1122_v53 = vrot.slane %v1108_v43, %v12329_v24  ;;  %v1138_v54 = vrot.slane %v1124_v44, %v12329_v24  ;;  %v1147_v55 = vrot.slane %v1139_v45, %v12329_v24  ;;  %v617_v39 = vld [vmem:[%s12288_s13 + $0x70] sm:$0xff] }
 0x11a   : > { %v1163_v56 = vrot.slane %v1155_v46, %v12329_v24  ;;  %v1154_v57 = vrot.slane %v1140_v47, %v12329_v24  ;;  %v1170_v58 = vrot.slane %v1156_v48, %v12329_v24  ;;  %v12397_v59 = vcombine.high %v1059_v16, %v1091_v21  ;;  %v635_v16 = vld [vmem:[%s12296_s6] sm:$0xff]  ;;  %v649_v42 = vld [vmem:[%s12296_s6 + $0x70] sm:$0xff] }
 0x11b   : > { %v1171_v60 = vcombine.low %v1115_v51, %v1131_v52  ;;  %v1172_v61 = vcombine.high %v1115_v51, %v1131_v52  ;;  %v11206_v62 = vpack.c.bf16 %v1577_v50, %v1576_v49  ;;  %v12401_v0 = vcombine.low %v1066_v34, %v1098_v35  ;;  %v639_v21 = vld [vmem:[%s12296_s6 + $0x20] sm:$0xff] }
 0x11c   : > { %10578 = vmatmul.mubr.msk.f32.gmra.mrb[2].mxu1 %vm1254_vm0, %v12375_v32  ;;  %15076 = vst [vmem:[#allocation29_spill] sm:$0xff] %v12397_v59  ;;  %v1203_v1 = vcombine.low %v1147_v55, %v1163_v56  ;;  %v1204_v3 = vcombine.high %v1147_v55, %v1163_v56  ;;  %v1187_v4 = vcombine.low %v1122_v53, %v1138_v54 }
 0x11d   : > { %10580 = vmatprep.mubr.msk.f32.mxu1 %vm1254_vm0, %v12377_v33  ;;  %15077 = vst [vmem:[#allocation30_spill] sm:$0xff] %v12401_v0  ;;  %v1179_v9 = vrot.slane %v1171_v60, %v12337_v41  ;;  %v1219_v10 = vcombine.low %v1154_v57, %v1170_v58  ;;  %11207 = vmatprep.subr.bf16.mxu1 %v11206_v62 }
 0x11e   : > { %v1188_v11 = vcombine.high %v1122_v53, %v1138_v54  ;;  %v1220_v12 = vcombine.high %v1154_v57, %v1170_v58  ;;  %v1211_v18 = vrot.slane %v1203_v1, %v12337_v41  ;;  %11209 = vmatpush3.bf16.msra.mxu1 %v11206_v62  ;;  %v12417_v22 = vcombine.high %v1066_v34, %v1098_v35 }
 0x11f   : > { %v1186_v23 = vrot.slane %v1172_v61, %v12337_v41  ;;  %v1218_v25 = vrot.slane %v1204_v3, %v12337_v41  ;;  %v11210_v26 = vpack.c.bf16 %v1579_v5, %v1578_v63  ;;  %v1195_v38 = vrot.slane %v1187_v4, %v12337_v41 }
 0x120   : > { %10581 = vmatmul.mubr.msk.f32.gmra.mrb[4].mxu1 %vm1254_vm0, %v12397_v59  ;;  %15078 = vst [vmem:[#allocation31_spill] sm:$0xff] %v12417_v22  ;;  %v12426_v37 = vcombine.low %v1179_v9, %v1211_v18  ;;  %v667_v34 = vadd.f32 %v635_v16, %v603_v6  ;;  %v669_v35 = vadd.f32 %v637_v17, %v605_v8 }
 0x121   : > { %10583 = vmatprep.mubr.msk.f32.mxu1 %vm1254_vm0, %v12401_v0  ;;  %v12432_v43 = vcombine.high %v1179_v9, %v1211_v18  ;;  %v1227_v44 = vrot.slane %v1219_v10, %v12337_v41  ;;  %v12436_v45 = vrot.slane %v1188_v11, %v12337_v41  ;;  %v12439_v46 = vrot.slane %v1220_v12, %v12337_v41  ;;  %v604_v11 = vld [vmem:[%s12288_s13 + $0x8] sm:$0xff]  ;;  %v606_v12 = vld [vmem:[%s12288_s13 + $0x18] sm:$0xff] }
 0x122   : > { %15079 = vst [vmem:[#allocation32_spill] sm:$0xff] %v12426_v37  ;;  %11211 = vmatprep.subr.bf16.mxu1 %v11210_v26  ;;  %v671_v47 = vadd.f32 %v639_v21, %v607_v13  ;;  %v673_v48 = vadd.f32 %v641_v27, %v609_v14  ;;  %v675_v49 = vadd.f32 %v643_v28, %v611_v15  ;;  %v608_v13 = vld [vmem:[%s12288_s13 + $0x28] sm:$0xff]  ;;  %v610_v18 = vld [vmem:[%s12288_s13 + $0x38] sm:$0xff] }
 0x123   : > { %15080 = vst [vmem:[#allocation33_spill] sm:$0xff] %v12432_v43  ;;  %11213 = vmatpush3.bf16.msra.mxu1 %v11210_v26  ;;  %v677_v50 = vadd.f32 %v645_v36, %v613_v19  ;;  %v12443_v51 = vcombine.low %v1186_v23, %v1218_v25  ;;  %v12445_v52 = vcombine.high %v1186_v23, %v1218_v25  ;;  %v636_v19 = vld [vmem:[%s12296_s6 + $0x8] sm:$0xff]  ;;  %v642_v36 = vld [vmem:[%s12296_s6 + $0x38] sm:$0xff] }
 0x124   : > { %10584 = vmatmul.mubr.msk.f32.gmra.mrb[6].mxu1 %vm1254_vm0, %v12417_v22  ;;  %v679_v53 = vadd.f32 %v647_v40, %v615_v20  ;;  %v681_v54 = vadd.f32 %v649_v42, %v617_v39  ;;  %v699_v55 = vcombine.low %v667_v34, %v671_v47  ;;  %v715_v56 = vcombine.low %v669_v35, %v673_v48  ;;  %v638_v20 = vld [vmem:[%s12296_s6 + $0x18] sm:$0xff]  ;;  %v612_v27 = vld [vmem:[%s12288_s13 + $0x48] sm:$0xff] }
 0x125   : > { %15081 = vst [vmem:[#allocation34_spill] sm:$0xff] %v12443_v51  ;;  %15082 = vst [vmem:[#allocation35_spill] sm:$0xff] %v12445_v52  ;;  %10586 = vmatprep.mubr.msk.f32.mxu1 %vm1254_vm0, %v12426_v37  ;;  %v700_v57 = vcombine.high %v667_v34, %v671_v47  ;;  %v716_v58 = vcombine.high %v669_v35, %v673_v48  ;;  %v12464_v14 = vcombine.low %v1195_v38, %v1227_v44  ;;  %v640_v28 = vld [vmem:[%s12296_s6 + $0x28] sm:$0xff]  ;;  %v614_v34 = vld [vmem:[%s12288_s13 + $0x58] sm:$0xff] }
 0x126   : > { %v731_v60 = vcombine.low %v675_v49, %v679_v53  ;;  %v747_v61 = vcombine.low %v677_v50, %v681_v54  ;;  %v732_v62 = vcombine.high %v675_v49, %v679_v53  ;;  %v748_v63 = vcombine.high %v677_v50, %v681_v54  ;;  %v644_v35 = vld [vmem:[%s12296_s6 + $0x48] sm:$0xff] }
 0x127   : > { %v707_v1 = vrot.slane %v699_v55, %v12329_v24  ;;  %v723_v3 = vrot.slane %v715_v56, %v12329_v24  ;;  %v714_v4 = vrot.slane %v700_v57, %v12329_v24  ;;  %v730_v5 = vrot.slane %v716_v58, %v12329_v24  ;;  %15083 = vst [vmem:[#allocation36_spill] sm:$0xff] %v12464_v14  ;;  %v616_v49 = vld [vmem:[%s12288_s13 + $0x68] sm:$0xff]  ;;  %v618_v56 = vld [vmem:[%s12288_s13 + $0x78] sm:$0xff]  ;;  %s11816_s13 = scalar_lea.vmem %s14910_s8, 4096 }
 0x128   : > { %10587 = vmatmul.mubr.msk.f32.gmra.mrb[8].mxu1 %vm1254_vm0, %v12432_v43  ;;  %v739_v6 = vrot.slane %v731_v60, %v12329_v24  ;;  %v755_v8 = vrot.slane %v747_v61, %v12329_v24  ;;  %v746_v9 = vrot.slane %v732_v62, %v12329_v24  ;;  %v762_v10 = vrot.slane %v748_v63, %v12329_v24  ;;  %v648_v57 = vld [vmem:[%s12296_s6 + $0x68] sm:$0xff]  ;;  %v650_v58 = vld [vmem:[%s12296_s6 + $0x78] sm:$0xff]  ;;  %p11817_p7 = scmp.ne.s32.totalorder %s14910_s8, %s11816_s13 }
 0x129   : > { %10589 = vmatprep.mubr.msk.f32.mxu1 %vm1254_vm0, %v12443_v51  ;;  %v763_v15 = vcombine.low %v707_v1, %v723_v3  ;;  %v764_v16 = vcombine.high %v707_v1, %v723_v3  ;;  %v779_v17 = vcombine.low %v714_v4, %v730_v5  ;;  %v12469_v21 = vcombine.high %v1195_v38, %v1227_v44  ;;  %v646_v44 = vld [vmem:[%s12296_s6 + $0x58] sm:$0xff]  ;;  %s11822_s6 = scalar_lea.vmem %s11821_s22, 8192 }
 0x12a   : > { %v795_v23 = vcombine.low %v739_v6, %v755_v8  ;;  %v796_v25 = vcombine.high %v739_v6, %v755_v8  ;;  %v811_v26 = vcombine.low %v746_v9, %v762_v10  ;;  %v12476_v39 = vcombine.low %v12436_v45, %v12439_v46  ;;  %p11818_p6 = pnand %p11817_p7, %p15173_p2  ;;  %p11824_p9 = scmp.lt.s32.totalorder %s11822_s6, %s11816_s13 }
 0x12b   : > { %15084 = vst [vmem:[#allocation37_spill] sm:$0xff] %v12469_v21  ;;  %v771_v40 = vrot.slane %v763_v15, %v12337_v41  ;;  %v778_v42 = vrot.slane %v764_v16, %v12337_v41  ;;  %v780_v38 = vcombine.high %v714_v4, %v730_v5  ;;  %v668_v50 = vadd.f32 %v636_v19, %v604_v11  ;;  %v1813_v15 = vld [vmem:[#allocation10 + $0x8] sm:$0xff] }
 0x12c   : > { %15085 = vst [vmem:[#allocation38_spill] sm:$0xff] %v12476_v39  ;;  %10590 = vmatmul.mubr.msk.f32.gmra.mrb[10].mxu1 %vm1254_vm0, %v12445_v52  ;;  %v803_v47 = vrot.slane %v795_v23, %v12337_v41  ;;  %v810_v48 = vrot.slane %v796_v25, %v12337_v41  ;;  %v670_v53 = vadd.f32 %v638_v20, %v606_v12  ;;  %p11819_p10 = pneg %p11818_p6  ;;  %p11825_p4 = por %p11824_p9, %p11823_p5 }
 0x12d   : > { %10592 = vmatprep.mubr.msk.f32.mxu1 %vm1254_vm0, %v12464_v14  ;;  %v787_v54 = vrot.slane %v779_v17, %v12337_v41  ;;  %v812_v55 = vcombine.high %v746_v9, %v762_v10  ;;  %v672_v60 = vadd.f32 %v640_v28, %v608_v13  ;;  %v674_v61 = vadd.f32 %v642_v36, %v610_v18  ;;  %v1812_v13 = vld [vmem:[#allocation10] sm:$0xff] }
 0x12e   : > { %v12494_v62 = vcombine.low %v771_v40, %v803_v47  ;;  %v819_v63 = vrot.slane %v811_v26, %v12337_v41  ;;  %v676_v1 = vadd.f32 %v644_v35, %v612_v27  ;;  %v678_v3 = vadd.f32 %v646_v44, %v614_v34  ;;  %p11826_p8 = pnand %p11825_p4, %p11819_p10 }
 0x12f   : > { %v12499_v4 = vcombine.high %v12436_v45, %v12439_v46  ;;  %v12501_v5 = vcombine.high %v771_v40, %v803_v47  ;;  %v12503_v6 = vcombine.low %v778_v42, %v810_v48  ;;  %v794_v8 = vrot.slane %v780_v38, %v12337_v41 }
 0x130   : > { %15086 = vst [vmem:[#allocation39_spill] sm:$0xff] %v12494_v62  ;;  %10593 = vmatmul.mubr.msk.f32.gmra.mrb[12].mxu1 %vm1254_vm0, %v12469_v21  ;;  %10550 = vmatprep.mubr.msk.f32.mxu0 %vm1254_vm0, %v12494_v62  ;;  %v680_v9 = vadd.f32 %v648_v57, %v616_v49  ;;  %v682_v10 = vadd.f32 %v650_v58, %v618_v56 }
 0x131   : > { %15087 = vst [vmem:[#allocation40_spill] sm:$0xff] %v12499_v4  ;;  %15088 = vst [vmem:[#allocation41_spill] sm:$0xff] %v12501_v5  ;;  %v835_v11 = vcombine.low %v668_v50, %v672_v60  ;;  %10595 = vmatprep.mubr.msk.f32.mxu1 %vm1254_vm0, %v12476_v39  ;;  %10551 = vmatmul.mubr.msk.f32.vlgmr.msra.gmra.mrb[0].mxu0 %vm1254_vm0, %v12501_v5  ;;  %v12514_v45 = vcombine.high %v778_v42, %v810_v48 }
 0x132   : > { %15089 = vst [vmem:[#allocation42_spill] sm:$0xff] %v12503_v6  ;;  %v826_v46 = vrot.slane %v812_v55, %v12337_v41  ;;  %v851_v12 = vcombine.low %v670_v53, %v674_v61  ;;  %v12517_v16 = vcombine.low %v787_v54, %v819_v63  ;;  %10553 = vmatprep.mubr.msk.f32.mxu0 %vm1254_vm0, %v12503_v6 }
 0x133   : > { %15090 = vst [vmem:[#allocation43_spill] sm:$0xff] %v12514_v45  ;;  %v843_v17 = vrot.slane %v835_v11, %v12329_v24  ;;  %v867_v18 = vcombine.low %v676_v1, %v680_v9  ;;  %v883_v19 = vcombine.low %v678_v3, %v682_v10  ;;  %v836_v23 = vcombine.high %v668_v50, %v672_v60 }
 0x134   : > { %15091 = vst [vmem:[#allocation44_spill] sm:$0xff] %v12517_v16  ;;  %v859_v20 = vrot.slane %v851_v12, %v12329_v24  ;;  %v852_v25 = vcombine.high %v670_v53, %v674_v61  ;;  %v868_v26 = vcombine.high %v676_v1, %v680_v9  ;;  %10596 = vmatmul.mubr.msk.f32.gmra.mrb[14].mxu1 %vm1254_vm0, %v12499_v4 }
 0x135   : > { %v875_v27 = vrot.slane %v867_v18, %v12329_v24  ;;  %v891_v28 = vrot.slane %v883_v19, %v12329_v24  ;;  %v884_v36 = vcombine.high %v678_v3, %v682_v10  ;;  %v11214_v40 = vpack.c.bf16 %v1813_v15, %v1812_v13  ;;  %10606 = vmatprep.mubr.msk.f32.mxu1 %vm1254_vm0, %v12494_v62 }
 0x136   : > { %10554 = vmatmul.mubr.msk.f32.gmra.mrb[2].mxu0 %vm1254_vm0, %v12514_v45  ;;  %v899_v42 = vcombine.low %v843_v17, %v859_v20  ;;  %v12531_v38 = vcombine.high %v787_v54, %v819_v63  ;;  %v12533_v34 = vcombine.low %v794_v8, %v826_v46  ;;  %v900_v44 = vcombine.high %v843_v17, %v859_v20  ;;  %v1814_v20 = vld [vmem:[#allocation10 + $0x10] sm:$0xff] }
 0x137   : > { %v931_v35 = vcombine.low %v875_v27, %v891_v28  ;;  %10556 = vmatprep.mubr.msk.f32.mxu0 %vm1254_vm0, %v12517_v16  ;;  %v850_v47 = vrot.slane %v836_v23, %v12329_v24  ;;  %v866_v48 = vrot.slane %v852_v25, %v12329_v24  ;;  %v882_v49 = vrot.slane %v868_v26, %v12329_v24  ;;  %v1815_v23 = vld [vmem:[#allocation10 + $0x18] sm:$0xff] }
 0x138   : > { %15092 = vst [vmem:[#allocation45_spill] sm:$0xff] %v12531_v38  ;;  %15093 = vst [vmem:[#allocation46_spill] sm:$0xff] %v12533_v34  ;;  %11215 = vmatprep.subr.bf16.mxu0 %v11214_v40  ;;  %10607 = vmatmul.mubr.msk.f32.vlgmr.msra.gmra.mrb[16].mxu1 %vm1254_vm0, %v12501_v5  ;;  %v907_v50 = vrot.slane %v899_v42, %v12337_v41  ;;  %v932_v54 = vcombine.high %v875_v27, %v891_v28  ;;  %v14995_v26 = vmov 0.0   ;;  %v12724_v27 = vld [vmem:[%s14973_s3] ss:$0 sm:$0xff] }
 0x139   : > { %v939_v53 = vrot.slane %v931_v35, %v12337_v41  ;;  %v898_v55 = vrot.slane %v884_v36, %v12329_v24  ;;  %10609 = vmatprep.mubr.msk.f32.mxu1 %vm1254_vm0, %v12503_v6  ;;  %v12551_v56 = vcombine.high %v794_v8, %v826_v46  ;;  %v915_v57 = vcombine.low %v850_v47, %v866_v48 }
 0x13a   : > { %10557 = vmatmul.mubr.msk.f32.gmra.mrb[4].mxu0 %vm1254_vm0, %v12531_v38  ;;  %v914_v60 = vrot.slane %v900_v44, %v12337_v41  ;;  %v946_v61 = vrot.slane %v932_v54, %v12337_v41  ;;  %v916_v3 = vcombine.high %v850_v47, %v866_v48  ;;  %v11218_v25 = vpack.c.bf16 %v1815_v23, %v1814_v20 }
 0x13b   : > { %10559 = vmatprep.mubr.msk.f32.mxu0 %vm1254_vm0, %v12533_v34  ;;  %15094 = vst [vmem:[#allocation47_spill] sm:$0xff] %v12551_v56  ;;  %11217 = vmatpush3.bf16.msra.mxu0 %v11214_v40  ;;  %v12555_v58 = vcombine.low %v907_v50, %v939_v53  ;;  %v947_v63 = vcombine.low %v882_v49, %v898_v55 }
 0x13c   : > { %10610 = vmatmul.mubr.msk.f32.gmra.mrb[18].mxu1 %vm1254_vm0, %v12514_v45  ;;  %v12565_v1 = vcombine.high %v907_v50, %v939_v53  ;;  %v12569_v8 = vcombine.low %v914_v60, %v946_v61  ;;  %v923_v9 = vrot.slane %v915_v57, %v12337_v41  ;;  %v948_v11 = vcombine.high %v882_v49, %v898_v55 }
 0x13d   : > { %15095 = vst [vmem:[#allocation48_spill] sm:$0xff] %v12555_v58  ;;  %10612 = vmatprep.mubr.msk.f32.mxu1 %vm1254_vm0, %v12517_v16  ;;  %v955_v10 = vrot.slane %v947_v63, %v12337_v41  ;;  %v12579_v46 = vcombine.high %v914_v60, %v946_v61  ;;  %v930_v13 = vrot.slane %v916_v3, %v12337_v41 }
 0x13e   : > { %10560 = vmatmul.mubr.msk.f32.gmra.mrb[6].mxu0 %vm1254_vm0, %v12551_v56  ;;  %15096 = vst [vmem:[#allocation49_spill] sm:$0xff] %v12565_v1  ;;  %15097 = vst [vmem:[#allocation50_spill] sm:$0xff] %v12569_v8  ;;  %v962_v15 = vrot.slane %v948_v11, %v12337_v41  ;;  %11219 = vmatprep.subr.bf16.mxu0 %v11218_v25  ;;  %v15103_v41 = vmov 0.0  }
 0x13f   : > { %10562 = vmatprep.mubr.msk.f32.mxu0 %vm1254_vm0, %v12555_v58  ;;  %15098 = vst [vmem:[#allocation51_spill] sm:$0xff] %v12579_v46  ;;  %v12583_v12 = vcombine.low %v923_v9, %v955_v10  ;;  %v12593_v17 = vcombine.high %v923_v9, %v955_v10  ;;  %11221 = vmatpush3.bf16.msra.mxu0 %v11218_v25 }
 0x140   : > { %10613 = vmatmul.mubr.msk.f32.gmra.mrb[20].mxu1 %vm1254_vm0, %v12531_v38  ;;  %v12597_v18 = vcombine.low %v930_v13, %v962_v15  ;;  %v12605_v19 = vcombine.high %v930_v13, %v962_v15  ;;  %10710 = vmatprep.subr.mxu1 %v14995_v26 }
 0x141   : > { %10615 = vmatprep.mubr.msk.f32.mxu1 %vm1254_vm0, %v12533_v34  ;;  %15099 = vst [vmem:[#allocation52_spill] sm:$0xff] %v12583_v12  ;;  %15100 = vst [vmem:[#allocation53_spill] sm:$0xff] %v12593_v17  ;;  %10790 = vmatprep.subr.mxu0 %v14995_v26 }
 0x142   : > { %10563 = vmatmul.mubr.msk.f32.gmra.mrb[8].mxu0 %vm1254_vm0, %v12565_v1  ;;  %15101 = vst [vmem:[#allocation54_spill] sm:$0xff] %v12597_v18  ;;  %15102 = vst [vmem:[#allocation55_spill] sm:$0xff] %v12605_v19 }
 0x143   : > { %10565 = vmatprep.mubr.msk.f32.mxu0 %vm1254_vm0, %v12569_v8 }
 0x144   : > { %10616 = vmatmul.mubr.msk.f32.gmra.mrb[22].mxu1 %vm1254_vm0, %v12551_v56 }
 0x145   : > { %10618 = vmatprep.mubr.msk.f32.mxu1 %vm1254_vm0, %v12555_v58 }
 0x146   : > { %10566 = vmatmul.mubr.msk.f32.gmra.mrb[10].mxu0 %vm1254_vm0, %v12579_v46 }
 0x147   : > { %10568 = vmatprep.mubr.msk.f32.mxu0 %vm1254_vm0, %v12583_v12 }
 0x148   : > { %10619 = vmatmul.mubr.msk.f32.gmra.mrb[24].mxu1 %vm1254_vm0, %v12565_v1 }
 0x149   : > { %10621 = vmatprep.mubr.msk.f32.mxu1 %vm1254_vm0, %v12569_v8 }
 0x14a   : > { %10569 = vmatmul.mubr.msk.f32.gmra.mrb[12].mxu0 %vm1254_vm0, %v12593_v17 }
 0x14b   : > { %10571 = vmatprep.mubr.msk.f32.mxu0 %vm1254_vm0, %v12597_v18 }
 0x14c   : > { %10622 = vmatmul.mubr.msk.f32.gmra.mrb[26].mxu1 %vm1254_vm0, %v12579_v46 }
 0x14d   : > { %10624 = vmatprep.mubr.msk.f32.mxu1 %vm1254_vm0, %v12583_v12 }
 0x14e   : > { %10572 = vmatmul.mubr.msk.f32.gmra.mrb[14].mxu0 %vm1254_vm0, %v12605_v19 }
 0x14f   : > { %10662 = vmatprep.mubr.msk.f32.mxu0 %vm1254_vm0, %v12494_v62 }
 0x150   : > { %10625 = vmatmul.mubr.msk.f32.gmra.mrb[28].mxu1 %vm1254_vm0, %v12593_v17 }
 0x151   : > { %10627 = vmatprep.mubr.msk.f32.mxu1 %vm1254_vm0, %v12597_v18 }
 0x152   : > { %10663 = vmatmul.mubr.msk.f32.vlgmr.msra.gmra.mrb[16].mxu0 %vm1254_vm0, %v12501_v5 }
 0x153   : > { %10665 = vmatprep.mubr.msk.f32.mxu0 %vm1254_vm0, %v12503_v6 }
 0x154   : > { %10628 = vmatmul.mubr.msk.f32.gmra.mrb[30].mxu1 %vm1254_vm0, %v12605_v19 }
 0x155   : > { %10630 = vmatprep.mubr.msk.f32.mxu1 %vm1254_vm0, %v12369_v29 }
 0x156   : > { %10666 = vmatmul.mubr.msk.f32.gmra.mrb[18].mxu0 %vm1254_vm0, %v12514_v45 }
 0x157   : > { %10668 = vmatprep.mubr.msk.f32.mxu0 %vm1254_vm0, %v12517_v16 }
 0x158   : > { %10631 = vmatmul.mubr.msk.f32.gmra.mrb[32].mxu1 %vm1254_vm0, %v12371_v30 }
 0x159   : > { %10633 = vmatprep.mubr.msk.f32.mxu1 %vm1254_vm0, %v12373_v31 }
 0x15a   : > { %10669 = vmatmul.mubr.msk.f32.gmra.mrb[20].mxu0 %vm1254_vm0, %v12531_v38 }
 0x15b   : > { %10671 = vmatprep.mubr.msk.f32.mxu0 %vm1254_vm0, %v12533_v34 }
 0x15c   : > { %10634 = vmatmul.mubr.msk.f32.gmra.mrb[34].mxu1 %vm1254_vm0, %v12375_v32 }
 0x15d   : > { %10636 = vmatprep.mubr.msk.f32.mxu1 %vm1254_vm0, %v12377_v33 }
 0x15e   : > { %10672 = vmatmul.mubr.msk.f32.gmra.mrb[22].mxu0 %vm1254_vm0, %v12551_v56 }
 0x15f   : > { %10674 = vmatprep.mubr.msk.f32.mxu0 %vm1254_vm0, %v12555_v58 }
 0x160   : > { %10637 = vmatmul.mubr.msk.f32.gmra.mrb[36].mxu1 %vm1254_vm0, %v12397_v59 }
 0x161   : > { %10639 = vmatprep.mubr.msk.f32.mxu1 %vm1254_vm0, %v12401_v0 }
 0x162   : > { %10675 = vmatmul.mubr.msk.f32.gmra.mrb[24].mxu0 %vm1254_vm0, %v12565_v1 }
 0x163   : > { %10677 = vmatprep.mubr.msk.f32.mxu0 %vm1254_vm0, %v12569_v8 }
 0x164   : > { %10640 = vmatmul.mubr.msk.f32.gmra.mrb[38].mxu1 %vm1254_vm0, %v12417_v22 }
 0x165   : > { %10642 = vmatprep.mubr.msk.f32.mxu1 %vm1254_vm0, %v12426_v37 }
 0x166   : > { %10678 = vmatmul.mubr.msk.f32.gmra.mrb[26].mxu0 %vm1254_vm0, %v12579_v46 }
 0x167   : > { %10680 = vmatprep.mubr.msk.f32.mxu0 %vm1254_vm0, %v12583_v12 }
 0x168   : > { %10643 = vmatmul.mubr.msk.f32.gmra.mrb[40].mxu1 %vm1254_vm0, %v12432_v43 }
 0x169   : > { %10645 = vmatprep.mubr.msk.f32.mxu1 %vm1254_vm0, %v12443_v51 }
 0x16a   : > { %10681 = vmatmul.mubr.msk.f32.gmra.mrb[28].mxu0 %vm1254_vm0, %v12593_v17 }
 0x16b   : > { %10683 = vmatprep.mubr.msk.f32.mxu0 %vm1254_vm0, %v12597_v18 }
 0x16c   : > { %10646 = vmatmul.mubr.msk.f32.gmra.mrb[42].mxu1 %vm1254_vm0, %v12445_v52 }
 0x16d   : > { %10648 = vmatprep.mubr.msk.f32.mxu1 %vm1254_vm0, %v12464_v14 }
 0x16e   : > { %10684 = vmatmul.mubr.msk.f32.gmra.mrb[30].mxu0 %vm1254_vm0, %v12605_v19 }
 0x16f   : > { %10686 = vmatprep.mubr.msk.f32.mxu0 %vm1254_vm0, %v12369_v29 }
 0x170   : > { %10649 = vmatmul.mubr.msk.f32.gmra.mrb[44].mxu1 %vm1254_vm0, %v12469_v21 }
 0x171   : > { %10651 = vmatprep.mubr.msk.f32.mxu1 %vm1254_vm0, %v12476_v39 }
 0x172   : > { %10687 = vmatmul.mubr.msk.f32.gmra.mrb[32].mxu0 %vm1254_vm0, %v12371_v30 }
 0x173   : > { %10689 = vmatprep.mubr.msk.f32.mxu0 %vm1254_vm0, %v12373_v31 }
 0x174   : > { %10652 = vmatmul.mubr.msk.f32.gmra.mrb[46].mxu1 %vm1254_vm0, %v12499_v4 }
 0x175   : > { %10712 = vmatprep.mubr.msk.f32.mxu1 %vm11912_vm1, %v14995_v26 }
 0x176   : > { %10690 = vmatmul.mubr.msk.f32.gmra.mrb[34].mxu0 %vm1254_vm0, %v12375_v32 }
 0x177   : > { %10692 = vmatprep.mubr.msk.f32.mxu0 %vm1254_vm0, %v12377_v33 }
 0x17a   : > { %10693 = vmatmul.mubr.msk.f32.gmra.mrb[36].mxu0 %vm1254_vm0, %v12397_v59 }
 0x17b   : > { %10695 = vmatprep.mubr.msk.f32.mxu0 %vm1254_vm0, %v12401_v0 }
 0x17e   : > { %10696 = vmatmul.mubr.msk.f32.gmra.mrb[38].mxu0 %vm1254_vm0, %v12417_v22 }
 0x17f   : > { %10698 = vmatprep.mubr.msk.f32.mxu0 %vm1254_vm0, %v12426_v37 }
 0x182   : > { %10699 = vmatmul.mubr.msk.f32.gmra.mrb[40].mxu0 %vm1254_vm0, %v12432_v43 }
 0x183   : > { %10701 = vmatprep.mubr.msk.f32.mxu0 %vm1254_vm0, %v12443_v51 }
 0x186   : > { %10702 = vmatmul.mubr.msk.f32.gmra.mrb[42].mxu0 %vm1254_vm0, %v12445_v52 }
 0x187   : > { %10704 = vmatprep.mubr.msk.f32.mxu0 %vm1254_vm0, %v12464_v14 }
 0x18a   : > { %10705 = vmatmul.mubr.msk.f32.gmra.mrb[44].mxu0 %vm1254_vm0, %v12469_v21 }
 0x18b   : > { %10707 = vmatprep.mubr.msk.f32.mxu0 %vm1254_vm0, %v12476_v39 }
 0x18e   : > { %10708 = vmatmul.mubr.msk.f32.gmra.mrb[46].mxu0 %vm1254_vm0, %v12499_v4 }
 0x18f   : > { %10792 = vmatprep.mubr.msk.f32.mxu0 %vm11912_vm1, %v14995_v26 }
 0x1eb   : > { %v10576_v28 = vpop.f32.mrb[0].mxu1 }
 0x1ec   : > { %v12727_v36 = vadd.f32 %v10576_v28, %v12724_v27  ;;  %v12729_v40 = vpop.f32.mrb[1].mxu1 }
 0x1ef   : > { %v10579_v42 = vpop.f32.mrb[2].mxu1 }
 0x1f0   : > { %v12732_v35 = vadd.f32 %v10579_v42, %v12724_v27  ;;  %v12734_v44 = vpop.f32.mrb[3].mxu1 }
 0x1f3   : > { %v10582_v47 = vpop.f32.mrb[4].mxu1 }
 0x1f4   : > { %v12737_v48 = vadd.f32 %v10582_v47, %v12724_v27  ;;  %v12739_v49 = vpop.f32.mrb[5].mxu1  ;;  %v12769_v47 = vld [vmem:[%s14975_s5] ss:$0 sm:$0xff] }
 0x1f7   : > { %v10585_v50 = vpop.f32.mrb[6].mxu1 }
 0x1f8   : > { %v12742_v53 = vadd.f32 %v10585_v50, %v12724_v27  ;;  %v12744_v54 = vpop.f32.mrb[7].mxu1 }
 0x1fb   : > { %v10588_v55 = vpop.f32.mrb[8].mxu1 }
 0x1fc   : > { %v12747_v57 = vadd.f32 %v10588_v55, %v12724_v27  ;;  %v12749_v60 = vpop.f32.mrb[9].mxu1 }
 0x1ff   : > { %v10591_v61 = vpop.f32.mrb[10].mxu1 }
 0x200   : > { %v12752_v63 = vadd.f32 %v10591_v61, %v12724_v27  ;;  %v12754_v3 = vpop.f32.mrb[11].mxu1 }
 0x203   : > { %v10594_v9 = vpop.f32.mrb[12].mxu1 }
 0x204   : > { %v12757_v10 = vadd.f32 %v10594_v9, %v12724_v27  ;;  %v12759_v11 = vpop.f32.mrb[13].mxu1  ;;  %v10552_v13 = vpop.f32.mrb[0].mxu0 }
 0x205   : > { %v1417_v15 = vpop.f32.mrb[1].mxu0 }
 0x206   : > { %v1418_v26 = vadd.f32 %v12724_v27, %v1417_v15 }
 0x207   : > { %v10597_v20 = vpop.f32.mrb[14].mxu1 }
 0x208   : > { %v12762_v23 = vadd.f32 %v10597_v20, %v12724_v27  ;;  %v12764_v25 = vpop.f32.mrb[15].mxu1 }
 0x209   : > { %v10555_v28 = vpop.f32.mrb[2].mxu0 }
 0x20a   : > { %v1427_v42 = vpop.f32.mrb[3].mxu0 }
 0x20b   : > { %v10608_v50 = vpop.f32.mrb[16].mxu1 }
 0x20c   : > { %v1653_v55 = vpop.f32.mrb[17].mxu1  ;;  %v1659_v4 = vadd.f32 %v10608_v50, %v12769_v47 }
 0x20d   : > { %v10558_v61 = vpop.f32.mrb[4].mxu0  ;;  %v1654_v9 = vadd.f32 %v12769_v47, %v1653_v55 }
 0x20e   : > { %v1437_v2 = vpop.f32.mrb[5].mxu0 }
 0x20f   : > { %10711 = vmatpush3.xpose.msk.msra.mxu1 %vm1254_vm0, %v1654_v9  ;;  %v10611_v20 = vpop.f32.mrb[18].mxu1  ;;  %v1423_v9 = vadd.f32 %v10552_v13, %v12724_v27 }
 0x210   : > { %10715 = vmatprep.subr.mxu1 %v15103_v41  ;;  %v1663_v24 = vpop.f32.mrb[19].mxu1  ;;  %v1669_v50 = vadd.f32 %v10611_v20, %v12769_v47 }
 0x211   : > { %v12775_v39 = vpop.f32.mrb[6].mxu0  ;;  %v1664_v55 = vadd.f32 %v12769_v47, %v1663_v24 }
 0x212   : > { %v1447_v14 = vpop.f32.mrb[7].mxu0  ;;  %10713 = vmatmul.mubr.msk.f32.vlgmr.msra.gmra.mrb[48].mxu1 %vm1254_vm0, %v1418_v26  ;;  %v1428_v26 = vadd.f32 %v12724_v27, %v1427_v42 }
 0x213   : > { %10716 = vmatpush3.xpose.msk.msra.mxu1 %vm1254_vm0, %v1659_v4  ;;  %10717 = vmatprep.mubr.msk.f32.mxu1 %vm11912_vm1, %v15103_v41  ;;  %v10614_v15 = vpop.f32.mrb[20].mxu1 }
 0x214   : > { %10720 = vmatprep.subr.mxu1 %v15103_v41  ;;  %v1673_v21 = vpop.f32.mrb[21].mxu1  ;;  %v1679_v22 = vadd.f32 %v10614_v15, %v12769_v47  ;;  %v1448_v15 = vadd.f32 %v12724_v27, %v1447_v14  ;;  %v1453_v14 = vadd.f32 %v12775_v39, %v12724_v27  ;;  %v1498_v39 = vadd.f32 %v12724_v27, %v12729_v40 }
 0x215   : > { %v12785_v51 = vpop.f32.mrb[8].mxu0  ;;  %v1674_v42 = vadd.f32 %v12769_v47, %v1673_v21 }
 0x216   : > { %v1457_v52 = vpop.f32.mrb[9].mxu0  ;;  %10718 = vmatmul.mubr.msk.f32.vlgmr.msra.gmra.mrb[50].mxu1 %vm1254_vm0, %v1423_v9  ;;  %v1433_v9 = vadd.f32 %v10555_v28, %v12724_v27 }
 0x217   : > { %10721 = vmatpush3.xpose.msk.msra.mxu1 %vm1254_vm0, %v1664_v55  ;;  %10722 = vmatprep.mubr.msk.f32.mxu1 %vm11912_vm1, %v15103_v41  ;;  %v10617_v24 = vpop.f32.mrb[22].mxu1 }
 0x218   : > { %10725 = vmatprep.subr.mxu1 %v15103_v41  ;;  %v1683_v4 = vpop.f32.mrb[23].mxu1 }
 0x219   : > { %v12793_v13 = vpop.f32.mrb[10].mxu0 }
 0x21a   : > { %v12796_v37 = vpop.f32.mrb[11].mxu0  ;;  %10723 = vmatmul.mubr.msk.f32.vlgmr.msra.gmra.mrb[52].mxu1 %vm1254_vm0, %v1428_v26  ;;  %v1438_v26 = vadd.f32 %v12724_v27, %v1437_v2  ;;  %v1684_v2 = vadd.f32 %v12769_v47, %v1683_v4 }
 0x21b   : > { %10726 = vmatpush3.xpose.msk.msra.mxu1 %vm1254_vm0, %v1669_v50  ;;  %10727 = vmatprep.mubr.msk.f32.mxu1 %vm11912_vm1, %v15103_v41  ;;  %v10620_v55 = vpop.f32.mrb[24].mxu1 }
 0x21c   : > { %10730 = vmatprep.subr.mxu1 %v15103_v41  ;;  %v1693_v43 = vpop.f32.mrb[25].mxu1 }
 0x21d   : > { %v12805_v0 = vpop.f32.mrb[12].mxu0 }
 0x21e   : > { %v12807_v20 = vpop.f32.mrb[13].mxu0  ;;  %10728 = vmatmul.mubr.msk.f32.vlgmr.msra.gmra.mrb[54].mxu1 %vm1254_vm0, %v1433_v9  ;;  %v1443_v9 = vadd.f32 %v10558_v61, %v12724_v27  ;;  %v1689_v61 = vadd.f32 %v10617_v24, %v12769_v47 }
 0x21f   : > { %10731 = vmatpush3.xpose.msk.msra.mxu1 %vm1254_vm0, %v1674_v42  ;;  %10732 = vmatprep.mubr.msk.f32.mxu1 %vm11912_vm1, %v15103_v41  ;;  %v12814_v21 = vpop.f32.mrb[26].mxu1 }
 0x220   : > { %10735 = vmatprep.subr.mxu1 %v15103_v41  ;;  %v1703_v28 = vpop.f32.mrb[27].mxu1 }
 0x221   : > { %v12817_v50 = vpop.f32.mrb[14].mxu0  ;;  %v1704_v40 = vadd.f32 %v12769_v47, %v1703_v28 }
 0x222   : > { %v12820_v33 = vpop.f32.mrb[15].mxu0  ;;  %10733 = vmatmul.mubr.msk.f32.vlgmr.msra.gmra.mrb[56].mxu1 %vm1254_vm0, %v1438_v26  ;;  %v1694_v26 = vadd.f32 %v12769_v47, %v1693_v43  ;;  %v1458_v43 = vadd.f32 %v12724_v27, %v1457_v52 }
 0x223   : > { %10736 = vmatpush3.xpose.msk.msra.mxu1 %vm1254_vm0, %v1679_v22  ;;  %10737 = vmatprep.mubr.msk.f32.mxu1 %vm11912_vm1, %v15103_v41  ;;  %v12827_v42 = vpop.f32.mrb[28].mxu1 }
 0x224   : > { %10740 = vmatprep.subr.mxu1 %v15103_v41  ;;  %v12831_v59 = vpop.f32.mrb[29].mxu1 }
 0x226   : > { %10738 = vmatmul.mubr.msk.f32.vlgmr.msra.gmra.mrb[58].mxu1 %vm1254_vm0, %v1443_v9 }
 0x227   : > { %10741 = vmatpush3.xpose.msk.msra.mxu1 %vm1254_vm0, %v1684_v2  ;;  %v12836_v4 = vpop.f32.mrb[30].mxu1  ;;  %10742 = vmatprep.mubr.msk.f32.mxu1 %vm11912_vm1, %v15103_v41 }
 0x228   : > { %v12840_v22 = vpop.f32.mrb[31].mxu1  ;;  %10745 = vmatprep.subr.mxu1 %v15103_v41 }
 0x22a   : > { %10743 = vmatmul.mubr.msk.f32.vlgmr.msra.gmra.mrb[60].mxu1 %vm1254_vm0, %v1448_v15 }
 0x22b   : > { %v10632_v9 = vpop.f32.mrb[32].mxu1  ;;  %10746 = vmatpush3.xpose.msk.msra.mxu1 %vm1254_vm0, %v1689_v61  ;;  %10747 = vmatprep.mubr.msk.f32.mxu1 %vm11912_vm1, %v15103_v41 }
 0x22c   : > { %v12852_v2 = vadd.f32 %v10632_v9, %v12769_v47  ;;  %v1733_v31 = vpop.f32.mrb[33].mxu1  ;;  %10750 = vmatprep.subr.mxu1 %v15103_v41 }
 0x22d   : > { %v1734_v24 = vadd.f32 %v12769_v47, %v1733_v31  ;;  %v1699_v31 = vadd.f32 %v10620_v55, %v12769_v47  ;;  %v1463_v55 = vadd.f32 %v12785_v51, %v12724_v27  ;;  %v1468_v51 = vadd.f32 %v12724_v27, %v12796_v37 }
 0x22e   : > { %10748 = vmatmul.mubr.msk.f32.vlgmr.msra.gmra.mrb[62].mxu1 %vm1254_vm0, %v1453_v14  ;;  %v1508_v14 = vadd.f32 %v12724_v27, %v12734_v44  ;;  %v1709_v37 = vadd.f32 %v12814_v21, %v12769_v47  ;;  %v1528_v21 = vadd.f32 %v12724_v27, %v12744_v54  ;;  %v1478_v54 = vadd.f32 %v12724_v27, %v12807_v20 }
 0x22f   : > { %v10635_v15 = vpop.f32.mrb[34].mxu1  ;;  %10751 = vmatpush3.xpose.msk.msra.mxu1 %vm1254_vm0, %v1694_v26  ;;  %10791 = vmatpush3.xpose.msk.msra.mxu0 %vm1254_vm0, %v1734_v24  ;;  %v1719_v20 = vadd.f32 %v12827_v42, %v12769_v47  ;;  %v1548_v42 = vadd.f32 %v12724_v27, %v12754_v3  ;;  %v12970_v3 = vpop.f32.mrb[16].mxu0 }
 0x230   : > { %v12863_v61 = vadd.f32 %v10635_v15, %v12769_v47  ;;  %v1743_v9 = vpop.f32.mrb[35].mxu1  ;;  %10752 = vmatprep.mubr.msk.f32.mxu1 %vm11912_vm1, %v15103_v41  ;;  %10755 = vmatprep.subr.mxu1 %v15103_v41 }
 0x231   : > { %v1744_v52 = vadd.f32 %v12769_v47, %v1743_v9  ;;  %10800 = vmatprep.subr.mxu0 %v15103_v41 }
 0x232   : > { %10753 = vmatmul.mubr.msk.f32.vlgmr.msra.gmra.mrb[64].mxu1 %vm1254_vm0, %v1458_v43  ;;  %10793 = vmatmul.mubr.msk.f32.vlgmr.msra.gmra.mrb[48].mxu0 %vm1254_vm0, %v1498_v39  ;;  %v1518_v43 = vadd.f32 %v12724_v27, %v12739_v49  ;;  %v1714_v49 = vadd.f32 %v12769_v47, %v12831_v59 }
 0x233   : > { %v10638_v26 = vpop.f32.mrb[36].mxu1  ;;  %10756 = vmatpush3.xpose.msk.msra.mxu1 %vm1254_vm0, %v1699_v31  ;;  %10801 = vmatpush3.xpose.msk.msra.mxu0 %vm1254_vm0, %v1744_v52 }
 0x234   : > { %v12881_v24 = vadd.f32 %v10638_v26, %v12769_v47  ;;  %v1753_v15 = vpop.f32.mrb[37].mxu1  ;;  %10757 = vmatprep.mubr.msk.f32.mxu1 %vm11912_vm1, %v15103_v41  ;;  %10802 = vmatprep.mubr.msk.f32.mxu0 %vm11912_vm1, %v15103_v41 }
 0x235   : > { %v1754_v28 = vadd.f32 %v12769_v47, %v1753_v15  ;;  %10760 = vmatprep.subr.mxu1 %v15103_v41  ;;  %10810 = vmatprep.subr.mxu0 %v15103_v41 }
 0x236   : > { %10758 = vmatmul.mubr.msk.f32.vlgmr.msra.gmra.mrb[66].mxu1 %vm1254_vm0, %v1463_v55  ;;  %10803 = vmatmul.mubr.msk.f32.vlgmr.msra.gmra.mrb[50].mxu0 %vm1254_vm0, %v1508_v14  ;;  %v1538_v55 = vadd.f32 %v12724_v27, %v12749_v60  ;;  %v1724_v60 = vadd.f32 %v12769_v47, %v12840_v22 }
 0x237   : > { %v10641_v44 = vpop.f32.mrb[38].mxu1  ;;  %10761 = vmatpush3.xpose.msk.msra.mxu1 %vm1254_vm0, %v1704_v40  ;;  %10811 = vmatpush3.xpose.msk.msra.mxu0 %vm1254_vm0, %v1754_v28  ;;  %v1473_v40 = vadd.f32 %v12793_v13, %v12724_v27 }
 0x238   : > { %v12899_v39 = vadd.f32 %v10641_v44, %v12769_v47  ;;  %v1763_v9 = vpop.f32.mrb[39].mxu1  ;;  %10762 = vmatprep.mubr.msk.f32.mxu1 %vm11912_vm1, %v15103_v41  ;;  %10812 = vmatprep.mubr.msk.f32.mxu0 %vm11912_vm1, %v15103_v41 }
 0x239   : > { %v1764_v31 = vadd.f32 %v12769_v47, %v1763_v9  ;;  %10765 = vmatprep.subr.mxu1 %v15103_v41  ;;  %10820 = vmatprep.subr.mxu0 %v15103_v41 }
 0x23a   : > { %10763 = vmatmul.mubr.msk.f32.vlgmr.msra.gmra.mrb[68].mxu1 %vm1254_vm0, %v1468_v51  ;;  %10813 = vmatmul.mubr.msk.f32.vlgmr.msra.gmra.mrb[52].mxu0 %vm1254_vm0, %v1518_v43  ;;  %v1483_v43 = vadd.f32 %v12805_v0, %v12724_v27  ;;  %v1488_v0 = vadd.f32 %v12724_v27, %v12820_v33  ;;  %v1729_v33 = vadd.f32 %v12836_v4, %v12769_v47 }
 0x23b   : > { %v10644_v52 = vpop.f32.mrb[40].mxu1  ;;  %10766 = vmatpush3.xpose.msk.msra.mxu1 %vm1254_vm0, %v1709_v37  ;;  %10821 = vmatpush3.xpose.msk.msra.mxu0 %vm1254_vm0, %v1764_v31  ;;  %v1493_v4 = vadd.f32 %v12817_v50, %v12724_v27 }
 0x23c   : > { %v12921_v26 = vadd.f32 %v10644_v52, %v12769_v47  ;;  %v1773_v14 = vpop.f32.mrb[41].mxu1  ;;  %10767 = vmatprep.mubr.msk.f32.mxu1 %vm11912_vm1, %v15103_v41  ;;  %10822 = vmatprep.mubr.msk.f32.mxu0 %vm11912_vm1, %v15103_v41 }
 0x23d   : > { %v1774_v59 = vadd.f32 %v12769_v47, %v1773_v14  ;;  %10770 = vmatprep.subr.mxu1 %v15103_v41  ;;  %10830 = vmatprep.subr.mxu0 %v15103_v41 }
 0x23e   : > { %10768 = vmatmul.mubr.msk.f32.vlgmr.msra.gmra.mrb[70].mxu1 %vm1254_vm0, %v1473_v40  ;;  %10823 = vmatmul.mubr.msk.f32.vlgmr.msra.gmra.mrb[54].mxu0 %vm1254_vm0, %v1528_v21 }
 0x23f   : > { %v10647_v13 = vpop.f32.mrb[42].mxu1  ;;  %10771 = vmatpush3.xpose.msk.msra.mxu1 %vm1254_vm0, %v1714_v49  ;;  %10831 = vmatpush3.xpose.msk.msra.mxu0 %vm1254_vm0, %v1774_v59  ;;  %v1558_v49 = vadd.f32 %v12724_v27, %v12759_v11  ;;  %v1568_v11 = vadd.f32 %v12724_v27, %v12764_v25  ;;  %v13046_v27 = vld [vmem:[%s15104_s4] ss:$0 sm:$0xff]  ;;  %s15169_s4 = sld [smem:[#allocation79_spill]] }
 0x240   : > { %v12939_v15 = vadd.f32 %v10647_v13, %v12769_v47  ;;  %v1783_v28 = vpop.f32.mrb[43].mxu1  ;;  %10772 = vmatprep.mubr.msk.f32.mxu1 %vm11912_vm1, %v15103_v41  ;;  %10832 = vmatprep.mubr.msk.f32.mxu0 %vm11912_vm1, %v15103_v41 }
 0x241   : > { %v1784_v51 = vadd.f32 %v12769_v47, %v1783_v28  ;;  %10775 = vmatprep.subr.mxu1 %v15103_v41  ;;  %10840 = vmatprep.subr.mxu0 %v15103_v41 }
 0x242   : > { %10773 = vmatmul.mubr.msk.f32.vlgmr.msra.gmra.mrb[72].mxu1 %vm1254_vm0, %v1478_v54  ;;  %10833 = vmatmul.mubr.msk.f32.vlgmr.msra.gmra.mrb[56].mxu0 %vm1254_vm0, %v1538_v55 }
 0x243   : > { %v10650_v44 = vpop.f32.mrb[44].mxu1  ;;  %10776 = vmatpush3.xpose.msk.msra.mxu1 %vm1254_vm0, %v1719_v20  ;;  %10841 = vmatpush3.xpose.msk.msra.mxu0 %vm1254_vm0, %v1784_v51 }
 0x244   : > { %v12961_v9 = vadd.f32 %v10650_v44, %v12769_v47  ;;  %v1793_v37 = vpop.f32.mrb[45].mxu1  ;;  %10777 = vmatprep.mubr.msk.f32.mxu1 %vm11912_vm1, %v15103_v41  ;;  %10842 = vmatprep.mubr.msk.f32.mxu0 %vm11912_vm1, %v15103_v41 }
 0x245   : > { %v1794_v22 = vadd.f32 %v12769_v47, %v1793_v37  ;;  %10780 = vmatprep.subr.mxu1 %v15103_v41  ;;  %10850 = vmatprep.subr.mxu0 %v15103_v41 }
 0x246   : > { %10778 = vmatmul.mubr.msk.f32.vlgmr.msra.gmra.mrb[74].mxu1 %vm1254_vm0, %v1483_v43  ;;  %10843 = vmatmul.mubr.msk.f32.vlgmr.msra.gmra.mrb[58].mxu0 %vm1254_vm0, %v1548_v42 }
 0x247   : > { %v10653_v31 = vpop.f32.mrb[46].mxu1  ;;  %10781 = vmatpush3.xpose.msk.msra.mxu1 %vm1254_vm0, %v1724_v60  ;;  %10851 = vmatpush3.xpose.msk.msra.mxu0 %vm1254_vm0, %v1794_v22 }
 0x248   : > { %v1809_v52 = vadd.f32 %v10653_v31, %v12769_v47  ;;  %v1803_v21 = vpop.f32.mrb[47].mxu1  ;;  %10782 = vmatprep.mubr.msk.f32.mxu1 %vm11912_vm1, %v15103_v41  ;;  %10852 = vmatprep.mubr.msk.f32.mxu0 %vm11912_vm1, %v15103_v41 }
 0x249   : > { %v1804_v40 = vadd.f32 %v12769_v47, %v1803_v21  ;;  %10785 = vmatprep.subr.mxu1 %v15103_v41  ;;  %10860 = vmatprep.subr.mxu0 %v15103_v41 }
 0x24a   : > { %10783 = vmatmul.mubr.msk.f32.vlgmr.msra.gmra.mrb[76].mxu1 %vm1254_vm0, %v1488_v0  ;;  %10853 = vmatmul.mubr.msk.f32.vlgmr.msra.gmra.mrb[60].mxu0 %vm1254_vm0, %v1558_v49 }
 0x24b   : > { %10786 = vmatpush3.xpose.msk.msra.mxu1 %vm1254_vm0, %v1729_v33  ;;  %10861 = vmatpush3.xpose.msk.msra.mxu0 %vm1254_vm0, %v1804_v40 }
 0x24c   : > { %10787 = vmatprep.mubr.msk.f32.mxu1 %vm11912_vm1, %v15103_v41  ;;  %10862 = vmatprep.mubr.msk.f32.mxu0 %vm11912_vm1, %v15103_v41 }
 0x24d   : > { %10795 = vmatprep.subr.mxu1 %v15103_v41  ;;  %10870 = vmatprep.subr.mxu0 %v15103_v41 }
 0x24e   : > { %10788 = vmatmul.mubr.msk.f32.vlgmr.msra.gmra.mrb[78].mxu1 %vm1254_vm0, %v1493_v4  ;;  %10863 = vmatmul.mubr.msk.f32.vlgmr.msra.gmra.mrb[62].mxu0 %vm1254_vm0, %v1568_v11 }
 0x24f   : > { %10796 = vmatpush3.xpose.msk.msra.mxu1 %vm1254_vm0, %v12852_v2  ;;  %10797 = vmatprep.mubr.msk.f32.mxu1 %vm11912_vm1, %v15103_v41  ;;  %v1895_v2 = vadd.f32 %v12970_v3, %v13046_v27 }
 0x250   : > { %10805 = vmatprep.subr.mxu1 %v15103_v41  ;;  %10872 = vmatprep.mubr.msk.f32.mxu0 %vm11912_vm1, %v15103_v41 }
 0x252   : > { %10798 = vmatmul.mubr.msk.f32.vlgmr.msra.gmra.mrb[80].mxu1 %vm1254_vm0, %v12727_v36  ;;  %v1889_v36 = vpop.f32.mrb[17].mxu0 }
 0x253   : > { %10806 = vmatpush3.xpose.msk.msra.mxu1 %vm1254_vm0, %v12863_v61  ;;  %10807 = vmatprep.mubr.msk.f32.mxu1 %vm11912_vm1, %v15103_v41 }
 0x254   : > { %10815 = vmatprep.subr.mxu1 %v15103_v41 }
 0x256   : > { %10808 = vmatmul.mubr.msk.f32.vlgmr.msra.gmra.mrb[82].mxu1 %vm1254_vm0, %v12732_v35  ;;  %v1890_v35 = vadd.f32 %v13046_v27, %v1889_v36 }
 0x257   : > { %10816 = vmatpush3.xpose.msk.msra.mxu1 %vm1254_vm0, %v12881_v24  ;;  %10817 = vmatprep.mubr.msk.f32.mxu1 %vm11912_vm1, %v15103_v41 }
 0x258   : > { %10825 = vmatprep.subr.mxu1 %v15103_v41  ;;  %10871 = vmatpush3.msra.mxu0 %v1890_v35 }
 0x259   : > { %10880 = vmatprep.subr.mxu0 %v15103_v41 }
 0x25a   : > { %10818 = vmatmul.mubr.msk.f32.vlgmr.msra.gmra.mrb[84].mxu1 %vm1254_vm0, %v12737_v48  ;;  %v10667_v48 = vpop.f32.mrb[18].mxu0 }
 0x25b   : > { %10826 = vmatpush3.xpose.msk.msra.mxu1 %vm1254_vm0, %v12899_v39  ;;  %10827 = vmatprep.mubr.msk.f32.mxu1 %vm11912_vm1, %v15103_v41 }
 0x25c   : > { %10835 = vmatprep.subr.mxu1 %v15103_v41 }
 0x25e   : > { %10828 = vmatmul.mubr.msk.f32.vlgmr.msra.gmra.mrb[86].mxu1 %vm1254_vm0, %v12742_v53  ;;  %v13061_v53 = vadd.f32 %v10667_v48, %v13046_v27 }
 0x25f   : > { %10836 = vmatpush3.xpose.msk.msra.mxu1 %vm1254_vm0, %v12921_v26  ;;  %10837 = vmatprep.mubr.msk.f32.mxu1 %vm11912_vm1, %v15103_v41 }
 0x260   : > { %10845 = vmatprep.subr.mxu1 %v15103_v41 }
 0x262   : > { %10838 = vmatmul.mubr.msk.f32.vlgmr.msra.gmra.mrb[88].mxu1 %vm1254_vm0, %v12747_v57  ;;  %v1899_v57 = vpop.f32.mrb[19].mxu0 }
 0x263   : > { %10846 = vmatpush3.xpose.msk.msra.mxu1 %vm1254_vm0, %v12939_v15  ;;  %10847 = vmatprep.mubr.msk.f32.mxu1 %vm11912_vm1, %v15103_v41  ;;  %v13065_v25 = vadd.f32 %v13046_v27, %v1899_v57  ;;  %v10670_v47 = vpop.f32.mrb[20].mxu0 }
 0x264   : > { %10855 = vmatprep.subr.mxu1 %v15103_v41  ;;  %v1909_v50 = vpop.f32.mrb[21].mxu0 }
 0x265   : > { %v13079_v61 = vadd.f32 %v13046_v27, %v1909_v50  ;;  %v10673_v24 = vpop.f32.mrb[22].mxu0 }
 0x266   : > { %10848 = vmatmul.mubr.msk.f32.vlgmr.msra.gmra.mrb[90].mxu1 %vm1254_vm0, %v12752_v63  ;;  %v13068_v63 = vadd.f32 %v10670_v47, %v13046_v27  ;;  %v13082_v39 = vadd.f32 %v10673_v24, %v13046_v27  ;;  %v1919_v26 = vpop.f32.mrb[23].mxu0 }
 0x267   : > { %10856 = vmatpush3.xpose.msk.msra.mxu1 %vm1254_vm0, %v12961_v9  ;;  %10857 = vmatprep.mubr.msk.f32.mxu1 %vm11912_vm1, %v15103_v41  ;;  %v10676_v14 = vpop.f32.mrb[24].mxu0 }
 0x268   : > { %10865 = vmatprep.subr.mxu1 %v15103_v41  ;;  %v13091_v59 = vadd.f32 %v10676_v14, %v13046_v27  ;;  %v1929_v54 = vpop.f32.mrb[25].mxu0 }
 0x269   : > { %v13094_v13 = vadd.f32 %v13046_v27, %v1929_v54  ;;  %v10679_v55 = vpop.f32.mrb[26].mxu0 }
 0x26a   : > { %10858 = vmatmul.mubr.msk.f32.vlgmr.msra.gmra.mrb[92].mxu1 %vm1254_vm0, %v12757_v10  ;;  %v13086_v10 = vadd.f32 %v13046_v27, %v1919_v26  ;;  %v13099_v15 = vadd.f32 %v10679_v55, %v13046_v27  ;;  %v1939_v28 = vpop.f32.mrb[27].mxu0 }
 0x26b   : > { %10866 = vmatpush3.xpose.msk.msra.mxu1 %vm1254_vm0, %v1809_v52  ;;  %10867 = vmatprep.mubr.msk.f32.mxu1 %vm11912_vm1, %v15103_v41  ;;  %v10682_v20 = vpop.f32.mrb[28].mxu0 }
 0x26c   : > { %10875 = vmatprep.subr.mxu1 %v15103_v41  ;;  %v13106_v51 = vadd.f32 %v10682_v20, %v13046_v27  ;;  %v1949_v60 = vpop.f32.mrb[29].mxu0 }
 0x26d   : > { %v13109_v44 = vadd.f32 %v13046_v27, %v1949_v60  ;;  %v10685_v42 = vpop.f32.mrb[30].mxu0 }
 0x26e   : > { %10868 = vmatmul.mubr.msk.f32.vlgmr.msra.gmra.mrb[94].mxu1 %vm1254_vm0, %v12762_v23  ;;  %v13103_v23 = vadd.f32 %v13046_v27, %v1939_v28  ;;  %v13112_v43 = vadd.f32 %v10685_v42, %v13046_v27  ;;  %v1959_v9 = vpop.f32.mrb[31].mxu0 }
 0x26f   : > { %10876 = vmatpush3.msra.mxu1 %v1895_v2  ;;  %10877 = vmatprep.mubr.msk.f32.mxu1 %vm11912_vm1, %v15103_v41  ;;  %v13115_v37 = vadd.f32 %v13046_v27, %v1959_v9  ;;  %v10688_v22 = vpop.f32.mrb[32].mxu0 }
 0x270   : > { %10885 = vmatprep.subr.mxu1 %v15103_v41  ;;  %v13118_v3 = vadd.f32 %v10688_v22, %v13046_v27  ;;  %v1969_v0 = vpop.f32.mrb[33].mxu0 }
 0x271   : > { %v13121_v31 = vadd.f32 %v13046_v27, %v1969_v0  ;;  %v10691_v49 = vpop.f32.mrb[34].mxu0 }
 0x272   : > { %v13124_v52 = vadd.f32 %v10691_v49, %v13046_v27  ;;  %v1979_v21 = vpop.f32.mrb[35].mxu0 }
 0x273   : > { %v13127_v33 = vadd.f32 %v13046_v27, %v1979_v21  ;;  %v10694_v40 = vpop.f32.mrb[36].mxu0 }
 0x274   : > { %15105 = vst [vmem:[#allocation56_spill] sm:$0xff] %v13124_v52  ;;  %v13130_v11 = vadd.f32 %v10694_v40, %v13046_v27  ;;  %v1989_v4 = vpop.f32.mrb[37].mxu0  ;;  %v15118_v40 = vlaneseq }
 0x275   : > { %v13133_v36 = vadd.f32 %v13046_v27, %v1989_v4  ;;  %v10697_v35 = vpop.f32.mrb[38].mxu0 }
 0x276   : > { %15106 = vst [vmem:[#allocation57_spill] sm:$0xff] %v13130_v11  ;;  %v13136_v48 = vadd.f32 %v10697_v35, %v13046_v27  ;;  %v1999_v57 = vpop.f32.mrb[39].mxu0  ;;  %v4483_v4 = vand.u32 127, %v15118_v40 }
 0x277   : > { %15107 = vst [vmem:[#allocation58_spill] sm:$0xff] %v13133_v36  ;;  %v13139_v47 = vadd.f32 %v13046_v27, %v1999_v57  ;;  %v10700_v50 = vpop.f32.mrb[40].mxu0 }
 0x278   : > { %15108 = vst [vmem:[#allocation59_spill] sm:$0xff] %v13136_v48  ;;  %v13142_v2 = vadd.f32 %v10700_v50, %v13046_v27  ;;  %v2009_v24 = vpop.f32.mrb[41].mxu0  ;;  %vm13167_vm2 = vcmp.le.s32.totalorder %v4483_v4, %v12315_v7 }
 0x279   : > { %15109 = vst [vmem:[#allocation60_spill] sm:$0xff] %v13139_v47  ;;  %v13145_v26 = vadd.f32 %v13046_v27, %v2009_v24  ;;  %v10703_v14 = vpop.f32.mrb[42].mxu0 }
 0x27a   : > { %15110 = vst [vmem:[#allocation61_spill] sm:$0xff] %v13142_v2  ;;  %v13148_v54 = vadd.f32 %v10703_v14, %v13046_v27  ;;  %v2019_v55 = vpop.f32.mrb[43].mxu0 }
 0x27b   : > { %15111 = vst [vmem:[#allocation62_spill] sm:$0xff] %v13145_v26  ;;  %v13151_v28 = vadd.f32 %v13046_v27, %v2019_v55  ;;  %v10706_v20 = vpop.f32.mrb[44].mxu0 }
 0x27c   : > { %15112 = vst [vmem:[#allocation63_spill] sm:$0xff] %v13148_v54  ;;  %v13154_v60 = vadd.f32 %v10706_v20, %v13046_v27  ;;  %v2029_v42 = vpop.f32.mrb[45].mxu0 }
 0x27d   : > { %15113 = vst [vmem:[#allocation64_spill] sm:$0xff] %v13151_v28  ;;  %v13157_v9 = vadd.f32 %v13046_v27, %v2029_v42  ;;  %v10709_v22 = vpop.f32.mrb[46].mxu0 }
 0x27e   : > { %15114 = vst [vmem:[#allocation65_spill] sm:$0xff] %v13154_v60  ;;  %v13160_v0 = vadd.f32 %v10709_v22, %v13046_v27  ;;  %v2039_v49 = vpop.f32.mrb[47].mxu0 }
 0x27f   : > { %15115 = vst [vmem:[#allocation66_spill] sm:$0xff] %v13157_v9  ;;  %v13163_v21 = vadd.f32 %v13046_v27, %v2039_v49 }
 0x280   : > { %15116 = vst [vmem:[#allocation67_spill] sm:$0xff] %v13160_v0 }
 0x281   : > { %15117 = vst [vmem:[#allocation68_spill] sm:$0xff] %v13163_v21 }
 0x2e5   : > { %v2120_v57 = vpop.f32.mrb[48].mxu1 }
 0x2e6   : > { %v13173_v50 = vsel %vm13167_vm2, %v2120_v57, -32767.0  ;;  %v10714_v24 = vpop.f32.mrb[49].mxu1 }
 0x2e7   : > { %v4520_v14 = vsel %vm4519_vm3, %v13173_v50, -inf }
 0x2e8   : > { %4521 = vmax.xlane.f32.xlu0 %v4520_v14 }
 0x2e9   : > { %v2196_v27 = vpop.f32.mrb[50].mxu1 }
 0x2ea   : > { %v13179_v55 = vsel %vm13167_vm2, %v2196_v27, -32767.0  ;;  %v10719_v7 = vpop.f32.mrb[51].mxu1 }
 0x2eb   : > { %v4523_v20 = vsel %vm4519_vm3, %v13179_v55, -inf }
 0x2ec   : > { %4524 = vmax.xlane.f32.xlu0 %v4523_v20 }
 0x2ed   : > { %v2272_v42 = vpop.f32.mrb[52].mxu1 }
 0x2ee   : > { %v13185_v22 = vsel %vm13167_vm2, %v2272_v42, -32767.0  ;;  %v10724_v49 = vpop.f32.mrb[53].mxu1 }
 0x2ef   : > { %v4526_v40 = vsel %vm4519_vm3, %v13185_v22, -inf }
 0x2f0   : > { %4527 = vmax.xlane.f32.xlu1 %v4526_v40 }
 0x2f1   : > { %v2348_v4 = vpop.f32.mrb[54].mxu1 }
 0x2f2   : > { %v13191_v57 = vsel %vm13167_vm2, %v2348_v4, -32767.0  ;;  %v10729_v24 = vpop.f32.mrb[55].mxu1 }
 0x2f3   : > { %v4529_v14 = vsel %vm4519_vm3, %v13191_v57, -inf }
 0x2f4   : > { %4530 = vmax.xlane.f32.xlu1 %v4529_v14 }
 0x2f5   : > { %v2424_v27 = vpop.f32.mrb[56].mxu1 }
 0x2f6   : > { %v13197_v7 = vsel %vm13167_vm2, %v2424_v27, -32767.0  ;;  %v10734_v20 = vpop.f32.mrb[57].mxu1 }
 0x2f7   : > { %v4532_v42 = vsel %vm4519_vm3, %v13197_v7, -inf }
 0x2f8   : > { %4533 = vmax.xlane.f32.xlu0 %v4532_v42 }
 0x2f9   : > { %v2500_v49 = vpop.f32.mrb[58].mxu1 }
 0x2fa   : > { %v13203_v40 = vsel %vm13167_vm2, %v2500_v49, -32767.0  ;;  %v10739_v4 = vpop.f32.mrb[59].mxu1 }
 0x2fb   : > { %v4535_v24 = vsel %vm4519_vm3, %v13203_v40, -inf }
 0x2fc   : > { %4536 = vmax.xlane.f32.xlu1 %v4535_v24 }
 0x2fd   : > { %v2576_v14 = vpop.f32.mrb[60].mxu1 }
 0x2fe   : > { %v13209_v27 = vsel %vm13167_vm2, %v2576_v14, -32767.0  ;;  %v10744_v20 = vpop.f32.mrb[61].mxu1 }
 0x2ff   : > { %v4538_v32 = vsel %vm4519_vm3, %v13209_v27, -inf }
 0x300   : > { %4539 = vmax.xlane.f32.xlu0 %v4538_v32 }
 0x301   : > { %v2652_v42 = vpop.f32.mrb[62].mxu1 }
 0x302   : > { %v13215_v49 = vsel %vm13167_vm2, %v2652_v42, -32767.0  ;;  %v10749_v4 = vpop.f32.mrb[63].mxu1 }
 0x303   : > { %v4541_v29 = vsel %vm4519_vm3, %v13215_v49, -inf }
 0x304   : > { %4542 = vmax.xlane.f32.xlu1 %v4541_v29 }
 0x305   : > { %v2728_v24 = vpop.f32.mrb[64].mxu1  ;;  %v3336_v30 = vpop.f32.mrb[48].mxu0 }
 0x306   : > { %v13221_v14 = vsel %vm13167_vm2, %v2728_v24, -32767.0  ;;  %v10794_v20 = vpop.f32.mrb[49].mxu0  ;;  %v10754_v18 = vpop.f32.mrb[65].mxu1 }
 0x307   : > { %v4544_v32 = vsel %vm4519_vm3, %v13221_v14, -inf }
 0x308   : > { %4545 = vmax.xlane.f32.xlu0 %v4544_v32 }
 0x309   : > { %v2804_v19 = vpop.f32.mrb[66].mxu1  ;;  %v3488_v42 = vpop.f32.mrb[50].mxu0 }
 0x30a   : > { %v13227_v4 = vsel %vm13167_vm2, %v2804_v19, -32767.0  ;;  %v10804_v12 = vpop.f32.mrb[51].mxu0  ;;  %v10759_v29 = vpop.f32.mrb[67].mxu1 }
 0x30b   : > { %v4547_v17 = vsel %vm4519_vm3, %v13227_v4, -inf }
 0x30c   : > { %4548 = vmax.xlane.f32.xlu1 %v4547_v17 }
 0x30d   : > { %v2880_v24 = vpop.f32.mrb[68].mxu1  ;;  %v3640_v8 = vpop.f32.mrb[52].mxu0 }
 0x30e   : > { %v13233_v18 = vsel %vm13167_vm2, %v2880_v24, -32767.0  ;;  %v10814_v20 = vpop.f32.mrb[53].mxu0  ;;  %v10764_v32 = vpop.f32.mrb[69].mxu1  ;;  %v13287_v0 = vsel %vm13167_vm2, %v3640_v8, -32767.0 }
 0x30f   : > { %v4550_v46 = vsel %vm4519_vm3, %v13233_v18, -inf }
 0x310   : > { %4551 = vmax.xlane.f32.xlu0 %v4550_v46 }
 0x311   : > { %v2956_v19 = vpop.f32.mrb[70].mxu1  ;;  %v3792_v58 = vpop.f32.mrb[54].mxu0 }
 0x312   : > { %v13239_v12 = vsel %vm13167_vm2, %v2956_v19, -32767.0  ;;  %v10824_v29 = vpop.f32.mrb[55].mxu0  ;;  %v10769_v17 = vpop.f32.mrb[71].mxu1  ;;  %v13299_v60 = vsel %vm13167_vm2, %v3792_v58, -32767.0 }
 0x313   : > { %v4553_v1 = vsel %vm4519_vm3, %v13239_v12, -inf }
 0x314   : > { %4554 = vmax.xlane.f32.xlu1 %v4553_v1 }
 0x315   : > { %v3032_v24 = vpop.f32.mrb[72].mxu1  ;;  %v3944_v34 = vpop.f32.mrb[56].mxu0 }
 0x316   : > { %v13245_v20 = vsel %vm13167_vm2, %v3032_v24, -32767.0  ;;  %v10834_v32 = vpop.f32.mrb[57].mxu0  ;;  %v10774_v46 = vpop.f32.mrb[73].mxu1  ;;  %v13311_v21 = vsel %vm13167_vm2, %v3944_v34, -32767.0 }
 0x317   : > { %v4556_v56 = vsel %vm4519_vm3, %v13245_v20, -inf }
 0x318   : > { %4557 = vmax.xlane.f32.xlu0 %v4556_v56 }
 0x319   : > { %v3108_v19 = vpop.f32.mrb[74].mxu1  ;;  %v4096_v16 = vpop.f32.mrb[58].mxu0 }
 0x31a   : > { %v13251_v29 = vsel %vm13167_vm2, %v3108_v19, -32767.0  ;;  %v10844_v17 = vpop.f32.mrb[59].mxu0  ;;  %v10779_v1 = vpop.f32.mrb[75].mxu1  ;;  %v13263_v19 = vsel %vm13167_vm2, %v3336_v30, -32767.0 }
 0x31b   : > { %v4559_v38 = vsel %vm4519_vm3, %v13251_v29, -inf  ;;  %v13323_v54 = vsel %vm13167_vm2, %v4096_v16, -32767.0 }
 0x31c   : > { %4560 = vmax.xlane.f32.xlu1 %v4559_v38 }
 0x31d   : > { %v3184_v24 = vpop.f32.mrb[76].mxu1  ;;  %v4248_v6 = vpop.f32.mrb[60].mxu0 }
 0x31e   : > { %v13257_v32 = vsel %vm13167_vm2, %v3184_v24, -32767.0  ;;  %v10854_v46 = vpop.f32.mrb[61].mxu0  ;;  %v10784_v56 = vpop.f32.mrb[77].mxu1  ;;  %v4568_v24 = vsel %vm4519_vm3, %v13263_v19, -inf }
 0x31f   : > { %v4562_v45 = vsel %vm4519_vm3, %v13257_v32, -inf  ;;  %v13275_v56 = vsel %vm13167_vm2, %v3488_v42, -32767.0  ;;  %v13335_v9 = vsel %vm13167_vm2, %v4248_v6, -32767.0 }
 0x320   : > { %4563 = vmax.xlane.f32.xlu0 %v4562_v45 }
 0x321   : > { %v3260_v17 = vpop.f32.mrb[78].mxu1  ;;  %v4400_v1 = vpop.f32.mrb[62].mxu0 }
 0x322   : > { %v13267_v38 = vsel %vm13167_vm2, %v3260_v17, -32767.0  ;;  %v10864_v62 = vpop.f32.mrb[63].mxu0  ;;  %v10789_v5 = vpop.f32.mrb[79].mxu1  ;;  %v13347_v2 = vsel %vm13167_vm2, %v4400_v1, -32767.0 }
 0x323   : > { %v4565_v46 = vsel %vm4519_vm3, %v13267_v38, -inf  ;;  %v4574_v62 = vsel %vm4519_vm3, %v13275_v56, -inf }
 0x324   : > { %4569 = vmax.xlane.f32.xlu0 %v4568_v24  ;;  %4566 = vmax.xlane.f32.xlu1 %v4565_v46 }
 0x325   : > { %v3412_v30 = vpop.f32.mrb[80].mxu1 }
 0x326   : > { %v13279_v45 = vsel %vm13167_vm2, %v3412_v30, -32767.0  ;;  %v10799_v17 = vpop.f32.mrb[81].mxu1  ;;  %v4580_v30 = vsel %vm4519_vm3, %v13287_v0, -inf }
 0x327   : > { %v4571_v5 = vsel %vm4519_vm3, %v13279_v45, -inf }
 0x328   : > { %4575 = vmax.xlane.f32.xlu0 %v4574_v62  ;;  %4572 = vmax.xlane.f32.xlu1 %v4571_v5 }
 0x329   : > { %v3564_v42 = vpop.f32.mrb[82].mxu1 }
 0x32a   : > { %v13291_v24 = vsel %vm13167_vm2, %v3564_v42, -32767.0  ;;  %v10809_v46 = vpop.f32.mrb[83].mxu1  ;;  %v4586_v42 = vsel %vm4519_vm3, %v13299_v60, -inf }
 0x32b   : > { %v4577_v17 = vsel %vm4519_vm3, %v13291_v24, -inf }
 0x32c   : > { %4581 = vmax.xlane.f32.xlu0 %v4580_v30  ;;  %4578 = vmax.xlane.f32.xlu1 %v4577_v17 }
 0x32d   : > { %v3716_v8 = vpop.f32.mrb[84].mxu1 }
 0x32e   : > { %v13303_v62 = vsel %vm13167_vm2, %v3716_v8, -32767.0  ;;  %v10819_v5 = vpop.f32.mrb[85].mxu1  ;;  %v4592_v8 = vsel %vm4519_vm3, %v13311_v21, -inf }
 0x32f   : > { %v4583_v46 = vsel %vm4519_vm3, %v13303_v62, -inf }
 0x330   : > { %4587 = vmax.xlane.f32.xlu0 %v4586_v42  ;;  %4584 = vmax.xlane.f32.xlu1 %v4583_v46 }
 0x331   : > { %v3868_v58 = vpop.f32.mrb[86].mxu1 }
 0x332   : > { %v13315_v30 = vsel %vm13167_vm2, %v3868_v58, -32767.0  ;;  %v10829_v17 = vpop.f32.mrb[87].mxu1  ;;  %v4598_v58 = vsel %vm4519_vm3, %v13323_v54, -inf }
 0x333   : > { %v4589_v5 = vsel %vm4519_vm3, %v13315_v30, -inf }
 0x334   : > { %4593 = vmax.xlane.f32.xlu0 %v4592_v8  ;;  %4590 = vmax.xlane.f32.xlu1 %v4589_v5 }
 0x335   : > { %v4020_v34 = vpop.f32.mrb[88].mxu1 }
 0x336   : > { %v13327_v42 = vsel %vm13167_vm2, %v4020_v34, -32767.0  ;;  %v10839_v46 = vpop.f32.mrb[89].mxu1  ;;  %v4604_v34 = vsel %vm4519_vm3, %v13335_v9, -inf }
 0x337   : > { %v4595_v17 = vsel %vm4519_vm3, %v13327_v42, -inf }
 0x338   : > { %4599 = vmax.xlane.f32.xlu0 %v4598_v58  ;;  %4596 = vmax.xlane.f32.xlu1 %v4595_v17 }
 0x339   : > { %v4172_v16 = vpop.f32.mrb[90].mxu1 }
 0x33a   : > { %v13339_v8 = vsel %vm13167_vm2, %v4172_v16, -32767.0  ;;  %v10849_v5 = vpop.f32.mrb[91].mxu1  ;;  %v4610_v16 = vsel %vm4519_vm3, %v13347_v2, -inf }
 0x33b   : > { %v4601_v46 = vsel %vm4519_vm3, %v13339_v8, -inf }
 0x33c   : > { %4605 = vmax.xlane.f32.xlu0 %v4604_v34  ;;  %4602 = vmax.xlane.f32.xlu1 %v4601_v46 }
 0x33d   : > { %v4324_v6 = vpop.f32.mrb[92].mxu1 }
 0x33e   : > { %v13351_v58 = vsel %vm13167_vm2, %v4324_v6, -32767.0  ;;  %v10859_v17 = vpop.f32.mrb[93].mxu1 }
 0x33f   : > { %v4607_v5 = vsel %vm4519_vm3, %v13351_v58, -inf }
 0x340   : > { %4611 = vmax.xlane.f32.xlu0 %v4610_v16  ;;  %4608 = vmax.xlane.f32.xlu1 %v4607_v5 }
 0x341   : > { %v4476_v28 = vpop.f32.mrb[94].mxu1 }
 0x342   : > { %v13359_v1 = vsel %vm13167_vm2, %v4476_v28, -32767.0  ;;  %v10869_v34 = vpop.f32.mrb[95].mxu1 }
 0x343   : > { %v4613_v46 = vsel %vm4519_vm3, %v13359_v1, -inf }
 0x344   : > { %4614 = vmax.xlane.f32.xlu1 %v4613_v46 }
 0x375   : > { %v4522_v6 = vpop.xlane.xlu0 %4521 }
 0x376   : > { %v4616_v17 = vsub.f32 %v13173_v50, %v4522_v6 }
 0x378   : > { %v4648_v48 = vmul.f32 1.442695, %v4616_v17 }
 0x379   : > { %v4525_v26 = vpop.xlane.xlu0 %4524 }
 0x37a   : > { %11360 = vpow2.f32 %v4648_v48  ;;  %v4617_v11 = vsub.f32 %v13179_v55, %v4525_v26 }
 0x37c   : > { %v4650_v16 = vmul.f32 1.442695, %v4617_v11 }
 0x37d   : > { %v4528_v5 = vpop.xlane.xlu1 %4527 }
 0x37e   : > { %11362 = vpow2.f32 %v4650_v16  ;;  %v4618_v35 = vsub.f32 %v13185_v22, %v4528_v5 }
 0x380   : > { %v4652_v28 = vmul.f32 1.442695, %v4618_v35 }
 0x381   : > { %v4531_v47 = vpop.xlane.xlu1 %4530 }
 0x382   : > { %11364 = vpow2.f32 %v4652_v28  ;;  %v4619_v34 = vsub.f32 %v13191_v57, %v4531_v47 }
 0x384   : > { %v13367_v52 = vpop.eup %11360  ;;  %v4654_v46 = vmul.f32 1.442695, %v4619_v34 }
 0x385   : > { %v4534_v36 = vpop.xlane.xlu0 %4533  ;;  %v4712_v50 = vsel %vm4519_vm3, %v13367_v52, 0.0 }
 0x386   : > { %11366 = vpow2.f32 %v4654_v46  ;;  %v4620_v48 = vsub.f32 %v13197_v7, %v4534_v36  ;;  %4713 = vadd.xlane.f32.xlu0 %v4712_v50 }
 0x388   : > { %v13372_v11 = vpop.eup %11362  ;;  %v4656_v26 = vmul.f32 1.442695, %v4620_v48 }
 0x389   : > { %v4537_v55 = vpop.xlane.xlu1 %4536  ;;  %v4715_v22 = vsel %vm4519_vm3, %v13372_v11, 0.0 }
 0x38a   : > { %11368 = vpow2.f32 %v4656_v26  ;;  %v4621_v47 = vsub.f32 %v13203_v40, %v4537_v55  ;;  %4716 = vadd.xlane.f32.xlu1 %v4715_v22 }
 0x38c   : > { %v13377_v57 = vpop.eup %11364  ;;  %v4658_v6 = vmul.f32 1.442695, %v4621_v47 }
 0x38d   : > { %v4540_v17 = vpop.xlane.xlu0 %4539  ;;  %v4718_v16 = vsel %vm4519_vm3, %v13377_v57, 0.0 }
 0x38e   : > { %11370 = vpow2.f32 %v4658_v6  ;;  %v4622_v36 = vsub.f32 %v13209_v27, %v4540_v17  ;;  %4719 = vadd.xlane.f32.xlu0 %v4718_v16 }
 0x390   : > { %v13382_v7 = vpop.eup %11366  ;;  %v4660_v5 = vmul.f32 1.442695, %v4622_v36 }
 0x391   : > { %v4543_v35 = vpop.xlane.xlu1 %4542  ;;  %v4721_v28 = vsel %vm4519_vm3, %v13382_v7, 0.0 }
 0x392   : > { %11372 = vpow2.f32 %v4660_v5  ;;  %v4623_v40 = vsub.f32 %v13215_v49, %v4543_v35  ;;  %4722 = vadd.xlane.f32.xlu1 %v4721_v28 }
 0x394   : > { %v13387_v34 = vpop.eup %11368  ;;  %v4662_v46 = vmul.f32 1.442695, %v4623_v40 }
 0x395   : > { %v4546_v50 = vpop.xlane.xlu0 %4545  ;;  %v4724_v48 = vsel %vm4519_vm3, %v13387_v34, 0.0 }
 0x396   : > { %11374 = vpow2.f32 %v4662_v46  ;;  %v4624_v27 = vsub.f32 %v13221_v14, %v4546_v50  ;;  %4725 = vadd.xlane.f32.xlu0 %v4724_v48 }
 0x398   : > { %v13392_v26 = vpop.eup %11370  ;;  %v4664_v55 = vmul.f32 1.442695, %v4624_v27 }
 0x399   : > { %v4549_v22 = vpop.xlane.xlu1 %4548  ;;  %v4727_v47 = vsel %vm4519_vm3, %v13392_v26, 0.0 }
 0x39a   : > { %11376 = vpow2.f32 %v4664_v55  ;;  %v4625_v49 = vsub.f32 %v13227_v4, %v4549_v22  ;;  %4728 = vadd.xlane.f32.xlu1 %v4727_v47 }
 0x39c   : > { %v13397_v6 = vpop.eup %11372  ;;  %v4666_v17 = vmul.f32 1.442695, %v4625_v49 }
 0x39d   : > { %v4552_v16 = vpop.xlane.xlu0 %4551  ;;  %v4730_v36 = vsel %vm4519_vm3, %v13397_v6, 0.0 }
 0x39e   : > { %11378 = vpow2.f32 %v4666_v17  ;;  %v4626_v14 = vsub.f32 %v13233_v18, %v4552_v16  ;;  %4731 = vadd.xlane.f32.xlu0 %v4730_v36 }
 0x3a0   : > { %v13402_v5 = vpop.eup %11374  ;;  %v4668_v35 = vmul.f32 1.442695, %v4626_v14 }
 0x3a1   : > { %v4555_v28 = vpop.xlane.xlu1 %4554  ;;  %v4733_v40 = vsel %vm4519_vm3, %v13402_v5, 0.0 }
 0x3a2   : > { %11380 = vpow2.f32 %v4668_v35  ;;  %v4627_v4 = vsub.f32 %v13239_v12, %v4555_v28  ;;  %4734 = vadd.xlane.f32.xlu1 %v4733_v40 }
 0x3a4   : > { %v13407_v46 = vpop.eup %11376  ;;  %v4670_v50 = vmul.f32 1.442695, %v4627_v4 }
 0x3a5   : > { %v4558_v48 = vpop.xlane.xlu0 %4557  ;;  %v4736_v27 = vsel %vm4519_vm3, %v13407_v46, 0.0 }
 0x3a6   : > { %11382 = vpow2.f32 %v4670_v50  ;;  %v4628_v18 = vsub.f32 %v13245_v20, %v4558_v48  ;;  %4737 = vadd.xlane.f32.xlu0 %v4736_v27 }
 0x3a8   : > { %v13412_v55 = vpop.eup %11378  ;;  %v4672_v22 = vmul.f32 1.442695, %v4628_v18 }
 0x3a9   : > { %v4561_v47 = vpop.xlane.xlu1 %4560  ;;  %v4739_v49 = vsel %vm4519_vm3, %v13412_v55, 0.0 }
 0x3aa   : > { %11384 = vpow2.f32 %v4672_v22  ;;  %v4629_v12 = vsub.f32 %v13251_v29, %v4561_v47  ;;  %4740 = vadd.xlane.f32.xlu1 %v4739_v49 }
 0x3ac   : > { %v13417_v17 = vpop.eup %11380  ;;  %v4674_v16 = vmul.f32 1.442695, %v4629_v12 }
 0x3ad   : > { %v4564_v36 = vpop.xlane.xlu0 %4563  ;;  %v4742_v14 = vsel %vm4519_vm3, %v13417_v17, 0.0 }
 0x3ae   : > { %11386 = vpow2.f32 %v4674_v16  ;;  %v4630_v20 = vsub.f32 %v13257_v32, %v4564_v36  ;;  %4743 = vadd.xlane.f32.xlu0 %v4742_v14 }
 0x3b0   : > { %v13422_v35 = vpop.eup %11382  ;;  %v4676_v28 = vmul.f32 1.442695, %v4630_v20 }
 0x3b1   : > { %v4570_v40 = vpop.xlane.xlu0 %4569  ;;  %v4567_v4 = vpop.xlane.xlu1 %4566  ;;  %v4745_v29 = vsel %vm4519_vm3, %v13422_v35, 0.0 }
 0x3b2   : > { %11388 = vpow2.f32 %v4676_v28  ;;  %v4632_v50 = vsub.f32 %v13263_v19, %v4570_v40  ;;  %v4631_v48 = vsub.f32 %v13267_v38, %v4567_v4  ;;  %4746 = vadd.xlane.f32.xlu1 %v4745_v29 }
 0x3b4   : > { %v13428_v27 = vpop.eup %11384  ;;  %v4680_v18 = vmul.f32 1.442695, %v4632_v50  ;;  %v4678_v22 = vmul.f32 1.442695, %v4631_v48 }
 0x3b5   : > { %v4576_v32 = vpop.xlane.xlu0 %4575  ;;  %v4573_v47 = vpop.xlane.xlu1 %4572  ;;  %v4748_v49 = vsel %vm4519_vm3, %v13428_v27, 0.0 }
 0x3b6   : > { %11390 = vpow2.f32 %v4680_v18  ;;  %v4634_v12 = vsub.f32 %v13275_v56, %v4576_v32  ;;  %v4633_v16 = vsub.f32 %v13279_v45, %v4573_v47  ;;  %4749 = vadd.xlane.f32.xlu0 %v4748_v49 }
 0x3b7   : > { %11392 = vpow2.f32 %v4678_v22 }
 0x3b8   : > { %v13434_v19 = vpop.eup %11386  ;;  %v4684_v38 = vmul.f32 1.442695, %v4634_v12  ;;  %v4682_v36 = vmul.f32 1.442695, %v4633_v16 }
 0x3b9   : > { %v4582_v14 = vpop.xlane.xlu0 %4581  ;;  %v4579_v20 = vpop.xlane.xlu1 %4578  ;;  %v4751_v28 = vsel %vm4519_vm3, %v13434_v19, 0.0 }
 0x3ba   : > { %11394 = vpow2.f32 %v4684_v38  ;;  %v4636_v40 = vsub.f32 %v13287_v0, %v4582_v14  ;;  %v4635_v4 = vsub.f32 %v13291_v24, %v4579_v20  ;;  %4752 = vadd.xlane.f32.xlu1 %v4751_v28 }
 0x3bb   : > { %11396 = vpow2.f32 %v4682_v36 }
 0x3bc   : > { %v13440_v56 = vpop.eup %11388  ;;  %v4688_v45 = vmul.f32 1.442695, %v4636_v40  ;;  %v4686_v29 = vmul.f32 1.442695, %v4635_v4 }
 0x3bd   : > { %v4588_v50 = vpop.xlane.xlu0 %4587  ;;  %v4585_v48 = vpop.xlane.xlu1 %4584  ;;  %v4754_v18 = vsel %vm4519_vm3, %v13440_v56, 0.0 }
 0x3be   : > { %11398 = vpow2.f32 %v4688_v45  ;;  %v4638_v22 = vsub.f32 %v13299_v60, %v4588_v50  ;;  %v4637_v32 = vsub.f32 %v13303_v62, %v4585_v48  ;;  %4755 = vadd.xlane.f32.xlu0 %v4754_v18 }
 0x3bf   : > { %11400 = vpow2.f32 %v4686_v29 }
 0x3c0   : > { %v13446_v0 = vpop.eup %11390  ;;  %v4692_v24 = vmul.f32 1.442695, %v4638_v22  ;;  %v4690_v47 = vmul.f32 1.442695, %v4637_v32 }
 0x3c1   : > { %v13448_v49 = vpop.eup %11392  ;;  %v4594_v12 = vpop.xlane.xlu0 %4593  ;;  %v4760_v38 = vsel %vm4519_vm3, %v13446_v0, 0.0 }
 0x3c2   : > { %v4591_v16 = vpop.xlane.xlu1 %4590  ;;  %11402 = vpow2.f32 %v4692_v24  ;;  %v4640_v36 = vsub.f32 %v13311_v21, %v4594_v12  ;;  %4761 = vadd.xlane.f32.xlu0 %v4760_v38  ;;  %v4757_v62 = vsel %vm4519_vm3, %v13448_v49, 0.0 }
 0x3c3   : > { %v4639_v60 = vsub.f32 %v13315_v30, %v4591_v16  ;;  %11404 = vpow2.f32 %v4690_v47  ;;  %4758 = vadd.xlane.f32.xlu1 %v4757_v62 }
 0x3c4   : > { %v13456_v14 = vpop.eup %11394  ;;  %v4696_v20 = vmul.f32 1.442695, %v4640_v36 }
 0x3c5   : > { %v4694_v28 = vmul.f32 1.442695, %v4639_v60  ;;  %v13458_v40 = vpop.eup %11396  ;;  %v4600_v4 = vpop.xlane.xlu0 %4599  ;;  %v4766_v29 = vsel %vm4519_vm3, %v13456_v14, 0.0 }
 0x3c6   : > { %v4597_v45 = vpop.xlane.xlu1 %4596  ;;  %11406 = vpow2.f32 %v4696_v20  ;;  %v4642_v21 = vsub.f32 %v13323_v54, %v4600_v4  ;;  %4767 = vadd.xlane.f32.xlu0 %v4766_v29  ;;  %v4763_v50 = vsel %vm4519_vm3, %v13458_v40, 0.0 }
 0x3c7   : > { %v4641_v30 = vsub.f32 %v13327_v42, %v4597_v45  ;;  %11408 = vpow2.f32 %v4694_v28  ;;  %4764 = vadd.xlane.f32.xlu1 %v4763_v50 }
 0x3c8   : > { %v13466_v48 = vpop.eup %11398  ;;  %v4700_v18 = vmul.f32 1.442695, %v4642_v21 }
 0x3c9   : > { %v4698_v22 = vmul.f32 1.442695, %v4641_v30  ;;  %v13468_v32 = vpop.eup %11400  ;;  %v4606_v24 = vpop.xlane.xlu0 %4605  ;;  %v4772_v12 = vsel %vm4519_vm3, %v13466_v48, 0.0 }
 0x3ca   : > { %v4603_v47 = vpop.xlane.xlu1 %4602  ;;  %11410 = vpow2.f32 %v4700_v18  ;;  %v4644_v54 = vsub.f32 %v13335_v9, %v4606_v24  ;;  %4773 = vadd.xlane.f32.xlu0 %v4772_v12  ;;  %v4769_v16 = vsel %vm4519_vm3, %v13468_v32, 0.0 }
 0x3cb   : > { %v4643_v42 = vsub.f32 %v13339_v8, %v4603_v47  ;;  %11412 = vpow2.f32 %v4698_v22  ;;  %4770 = vadd.xlane.f32.xlu1 %v4769_v16 }
 0x3cc   : > { %v13476_v38 = vpop.eup %11402  ;;  %v4704_v36 = vmul.f32 1.442695, %v4644_v54 }
 0x3cd   : > { %v4702_v60 = vmul.f32 1.442695, %v4643_v42  ;;  %v13478_v62 = vpop.eup %11404  ;;  %v4612_v20 = vpop.xlane.xlu0 %4611  ;;  %v4778_v4 = vsel %vm4519_vm3, %v13476_v38, 0.0 }
 0x3ce   : > { %v4609_v28 = vpop.xlane.xlu1 %4608  ;;  %11414 = vpow2.f32 %v4704_v36  ;;  %v4646_v9 = vsub.f32 %v13347_v2, %v4612_v20  ;;  %4779 = vadd.xlane.f32.xlu0 %v4778_v4  ;;  %v4775_v45 = vsel %vm4519_vm3, %v13478_v62, 0.0 }
 0x3cf   : > { %v4645_v8 = vsub.f32 %v13351_v58, %v4609_v28  ;;  %11416 = vpow2.f32 %v4702_v60  ;;  %4776 = vadd.xlane.f32.xlu1 %v4775_v45 }
 0x3d0   : > { %v13486_v29 = vpop.eup %11406  ;;  %v4708_v21 = vmul.f32 1.442695, %v4646_v9 }
 0x3d1   : > { %v4706_v30 = vmul.f32 1.442695, %v4645_v8  ;;  %v13488_v50 = vpop.eup %11408  ;;  %v4784_v22 = vsel %vm4519_vm3, %v13486_v29, 0.0 }
 0x3d2   : > { %v4615_v18 = vpop.xlane.xlu1 %4614  ;;  %11418 = vpow2.f32 %v4708_v21  ;;  %4785 = vadd.xlane.f32.xlu0 %v4784_v22  ;;  %v4781_v58 = vsel %vm4519_vm3, %v13488_v50, 0.0 }
 0x3d3   : > { %v4647_v2 = vsub.f32 %v13359_v1, %v4615_v18  ;;  %11420 = vpow2.f32 %v4706_v30  ;;  %4782 = vadd.xlane.f32.xlu1 %v4781_v58 }
 0x3d4   : > { %v13495_v24 = vpop.eup %11410 }
 0x3d5   : > { %v4710_v47 = vmul.f32 1.442695, %v4647_v2  ;;  %v13497_v12 = vpop.eup %11412  ;;  %v4790_v54 = vsel %vm4519_vm3, %v13495_v24, 0.0 }
 0x3d6   : > { %4791 = vadd.xlane.f32.xlu0 %v4790_v54  ;;  %v4787_v42 = vsel %vm4519_vm3, %v13497_v12, 0.0 }
 0x3d7   : > { %11422 = vpow2.f32 %v4710_v47  ;;  %4788 = vadd.xlane.f32.xlu1 %v4787_v42 }
 0x3d8   : > { %v13503_v1 = vpop.eup %11414 }
 0x3d9   : > { %v13505_v16 = vpop.eup %11416  ;;  %v4796_v36 = vsel %vm4519_vm3, %v13503_v1, 0.0 }
 0x3da   : > { %4797 = vadd.xlane.f32.xlu0 %v4796_v36  ;;  %v4793_v60 = vsel %vm4519_vm3, %v13505_v16, 0.0 }
 0x3db   : > { %4794 = vadd.xlane.f32.xlu1 %v4793_v60 }
 0x3dc   : > { %v13511_v20 = vpop.eup %11418 }
 0x3dd   : > { %v13513_v28 = vpop.eup %11420  ;;  %v4802_v4 = vsel %vm4519_vm3, %v13511_v20, 0.0 }
 0x3de   : > { %4803 = vadd.xlane.f32.xlu0 %v4802_v4  ;;  %v4799_v9 = vsel %vm4519_vm3, %v13513_v28, 0.0 }
 0x3df   : > { %4800 = vadd.xlane.f32.xlu1 %v4799_v9 }
 0x3e1   : > { %v13519_v8 = vpop.eup %11422 }
 0x3e2   : > { %v4805_v45 = vsel %vm4519_vm3, %v13519_v8, 0.0 }
 0x3e3   : > { %4806 = vadd.xlane.f32.xlu1 %v4805_v45 }
 0x413   : > { %v4714_v21 = vpop.xlane.xlu0 %4713 }
 0x414   : > { %11424 = vrcp.f32 %v4714_v21 }
 0x417   : > { %v4717_v30 = vpop.xlane.xlu1 %4716 }
 0x418   : > { %11426 = vrcp.f32 %v4717_v30 }
 0x41b   : > { %v4720_v18 = vpop.xlane.xlu0 %4719 }
 0x41c   : > { %11428 = vrcp.f32 %v4720_v18 }
 0x41e   : > { %v11425_v22 = vpop.eup %11424 }
 0x41f   : > { %v4723_v2 = vpop.xlane.xlu1 %4722  ;;  %v4809_v58 = vmul.f32 %v11425_v22, %v13367_v52 }
 0x420   : > { %11430 = vrcp.f32 %v4723_v2 }
 0x421   : > { %10873 = vmatmul.mubr.msk.f32.vlgmr.msra.gmra.mrb[64].mxu0 %vm4519_vm3, %v4809_v58 }
 0x422   : > { %v11427_v47 = vpop.eup %11426  ;;  %10881 = vmatpush3.msra.mxu0 %v13065_v25  ;;  %10882 = vmatprep.mubr.msk.f32.mxu0 %vm11912_vm1, %v15103_v41 }
 0x423   : > { %v4726_v54 = vpop.xlane.xlu0 %4725  ;;  %v4811_v42 = vmul.f32 %v11427_v47, %v13372_v11  ;;  %10890 = vmatprep.subr.mxu0 %v15103_v41 }
 0x424   : > { %11432 = vrcp.f32 %v4726_v54 }
 0x425   : > { %10878 = vmatmul.mubr.msk.f32.vlgmr.msra.gmra.mrb[96].mxu1 %vm4519_vm3, %v4811_v42 }
 0x426   : > { %v11429_v36 = vpop.eup %11428  ;;  %10886 = vmatpush3.msra.mxu1 %v13061_v53  ;;  %10887 = vmatprep.mubr.msk.f32.mxu1 %vm11912_vm1, %v15103_v41 }
 0x427   : > { %v4729_v52 = vpop.xlane.xlu1 %4728  ;;  %v4813_v25 = vmul.f32 %v11429_v36, %v13377_v57  ;;  %10895 = vmatprep.subr.mxu1 %v15103_v41 }
 0x428   : > { %11434 = vrcp.f32 %v4729_v52 }
 0x429   : > { %10883 = vmatmul.mubr.msk.f32.vlgmr.msra.gmra.mrb[66].mxu0 %vm4519_vm3, %v4813_v25 }
 0x42a   : > { %v11431_v11 = vpop.eup %11430  ;;  %10891 = vmatpush3.msra.mxu0 %v13079_v61  ;;  %10892 = vmatprep.mubr.msk.f32.mxu0 %vm11912_vm1, %v15103_v41 }
 0x42b   : > { %v4732_v60 = vpop.xlane.xlu0 %4731  ;;  %v4815_v53 = vmul.f32 %v11431_v11, %v13382_v7  ;;  %10900 = vmatprep.subr.mxu0 %v15103_v41 }
 0x42c   : > { %11436 = vrcp.f32 %v4732_v60 }
 0x42d   : > { %10888 = vmatmul.mubr.msk.f32.vlgmr.msra.gmra.mrb[98].mxu1 %vm4519_vm3, %v4815_v53 }
 0x42e   : > { %v11433_v57 = vpop.eup %11432  ;;  %10896 = vmatpush3.msra.mxu1 %v13068_v63  ;;  %10897 = vmatprep.mubr.msk.f32.mxu1 %vm11912_vm1, %v15103_v41 }
 0x42f   : > { %v4735_v4 = vpop.xlane.xlu1 %4734  ;;  %v4817_v61 = vmul.f32 %v11433_v57, %v13387_v34  ;;  %10905 = vmatprep.subr.mxu1 %v15103_v41 }
 0x430   : > { %11438 = vrcp.f32 %v4735_v4 }
 0x431   : > { %10893 = vmatmul.mubr.msk.f32.vlgmr.msra.gmra.mrb[68].mxu0 %vm4519_vm3, %v4817_v61  ;;  %v15122_v61 = vld [vmem:[#allocation56_spill] sm:$0xff] }
 0x432   : > { %v11435_v7 = vpop.eup %11434  ;;  %10901 = vmatpush3.msra.mxu0 %v13086_v10  ;;  %10902 = vmatprep.mubr.msk.f32.mxu0 %vm11912_vm1, %v15103_v41 }
 0x433   : > { %v4738_v9 = vpop.xlane.xlu0 %4737  ;;  %v4819_v63 = vmul.f32 %v11435_v7, %v13392_v26  ;;  %10910 = vmatprep.subr.mxu0 %v15103_v41 }
 0x434   : > { %11440 = vrcp.f32 %v4738_v9 }
 0x435   : > { %10898 = vmatmul.mubr.msk.f32.vlgmr.msra.gmra.mrb[100].mxu1 %vm4519_vm3, %v4819_v63 }
 0x436   : > { %v11437_v34 = vpop.eup %11436  ;;  %10906 = vmatpush3.msra.mxu1 %v13082_v39  ;;  %10907 = vmatprep.mubr.msk.f32.mxu1 %vm11912_vm1, %v15103_v41 }
 0x437   : > { %v4741_v45 = vpop.xlane.xlu1 %4740  ;;  %v4821_v10 = vmul.f32 %v11437_v34, %v13397_v6  ;;  %10915 = vmatprep.subr.mxu1 %v15103_v41 }
 0x438   : > { %11442 = vrcp.f32 %v4741_v45  ;;  %v15123_v45 = vld [vmem:[#allocation60_spill] sm:$0xff] }
 0x439   : > { %10903 = vmatmul.mubr.msk.f32.vlgmr.msra.gmra.mrb[70].mxu0 %vm4519_vm3, %v4821_v10  ;;  %v15124_v10 = vld [vmem:[#allocation57_spill] sm:$0xff] }
 0x43a   : > { %v11439_v26 = vpop.eup %11438  ;;  %10911 = vmatpush3.msra.mxu0 %v13094_v13  ;;  %10912 = vmatprep.mubr.msk.f32.mxu0 %vm11912_vm1, %v15103_v41 }
 0x43b   : > { %v4744_v21 = vpop.xlane.xlu0 %4743  ;;  %v4823_v39 = vmul.f32 %v11439_v26, %v13402_v5  ;;  %10920 = vmatprep.subr.mxu0 %v15103_v41 }
 0x43c   : > { %11444 = vrcp.f32 %v4744_v21 }
 0x43d   : > { %10908 = vmatmul.mubr.msk.f32.vlgmr.msra.gmra.mrb[102].mxu1 %vm4519_vm3, %v4823_v39 }
 0x43e   : > { %v11441_v6 = vpop.eup %11440  ;;  %10916 = vmatpush3.msra.mxu1 %v13091_v59  ;;  %10917 = vmatprep.mubr.msk.f32.mxu1 %vm11912_vm1, %v15103_v41 }
 0x43f   : > { %v4747_v30 = vpop.xlane.xlu1 %4746  ;;  %v4825_v13 = vmul.f32 %v11441_v6, %v13407_v46  ;;  %10925 = vmatprep.subr.mxu1 %v15103_v41 }
 0x440   : > { %11446 = vrcp.f32 %v4747_v30  ;;  %v15125_v30 = vld [vmem:[#allocation62_spill] sm:$0xff] }
 0x441   : > { %10913 = vmatmul.mubr.msk.f32.vlgmr.msra.gmra.mrb[72].mxu0 %vm4519_vm3, %v4825_v13  ;;  %v15126_v13 = vld [vmem:[#allocation59_spill] sm:$0xff] }
 0x442   : > { %v11443_v5 = vpop.eup %11442  ;;  %10921 = vmatpush3.msra.mxu0 %v13103_v23  ;;  %10922 = vmatprep.mubr.msk.f32.mxu0 %vm11912_vm1, %v15103_v41 }
 0x443   : > { %v4750_v18 = vpop.xlane.xlu0 %4749  ;;  %v4827_v59 = vmul.f32 %v11443_v5, %v13412_v55  ;;  %10930 = vmatprep.subr.mxu0 %v15103_v41 }
 0x444   : > { %11448 = vrcp.f32 %v4750_v18 }
 0x445   : > { %10918 = vmatmul.mubr.msk.f32.vlgmr.msra.gmra.mrb[104].mxu1 %vm4519_vm3, %v4827_v59 }
 0x446   : > { %v11445_v46 = vpop.eup %11444  ;;  %10926 = vmatpush3.msra.mxu1 %v13099_v15  ;;  %10927 = vmatprep.mubr.msk.f32.mxu1 %vm11912_vm1, %v15103_v41 }
 0x447   : > { %v4753_v22 = vpop.xlane.xlu1 %4752  ;;  %v4829_v23 = vmul.f32 %v11445_v46, %v13417_v17  ;;  %10935 = vmatprep.subr.mxu1 %v15103_v41 }
 0x448   : > { %11450 = vrcp.f32 %v4753_v22  ;;  %v15127_v22 = vld [vmem:[#allocation64_spill] sm:$0xff] }
 0x449   : > { %10923 = vmatmul.mubr.msk.f32.vlgmr.msra.gmra.mrb[74].mxu0 %vm4519_vm3, %v4829_v23  ;;  %v15128_v23 = vld [vmem:[#allocation61_spill] sm:$0xff] }
 0x44a   : > { %v11447_v55 = vpop.eup %11446  ;;  %10931 = vmatpush3.msra.mxu0 %v13109_v44  ;;  %10932 = vmatprep.mubr.msk.f32.mxu0 %vm11912_vm1, %v15103_v41 }
 0x44b   : > { %v4756_v2 = vpop.xlane.xlu0 %4755  ;;  %v4831_v15 = vmul.f32 %v11447_v55, %v13422_v35  ;;  %10940 = vmatprep.subr.mxu0 %v15103_v41 }
 0x44c   : > { %11452 = vrcp.f32 %v4756_v2 }
 0x44d   : > { %10928 = vmatmul.mubr.msk.f32.vlgmr.msra.gmra.mrb[106].mxu1 %vm4519_vm3, %v4831_v15 }
 0x44e   : > { %v11449_v17 = vpop.eup %11448  ;;  %10936 = vmatpush3.msra.mxu1 %v13106_v51  ;;  %10937 = vmatprep.mubr.msk.f32.mxu1 %vm11912_vm1, %v15103_v41 }
 0x44f   : > { %v4762_v58 = vpop.xlane.xlu0 %4761  ;;  %v4833_v44 = vmul.f32 %v11449_v17, %v13428_v27  ;;  %10945 = vmatprep.subr.mxu1 %v15103_v41  ;;  %v15129_v17 = vld [vmem:[#allocation66_spill] sm:$0xff] }
 0x450   : > { %11454 = vrcp.f32 %v4762_v58  ;;  %v4759_v47 = vpop.xlane.xlu1 %4758  ;;  %v7208_v58 = vld [vmem:[#allocation11] sm:$0xff] }
 0x451   : > { %11456 = vrcp.f32 %v4759_v47  ;;  %10933 = vmatmul.mubr.msk.f32.vlgmr.msra.gmra.mrb[76].mxu0 %vm4519_vm3, %v4833_v44  ;;  %v15130_v47 = vld [vmem:[#allocation63_spill] sm:$0xff] }
 0x452   : > { %v11451_v35 = vpop.eup %11450  ;;  %10941 = vmatpush3.msra.mxu0 %v13115_v37  ;;  %10942 = vmatprep.mubr.msk.f32.mxu0 %vm11912_vm1, %v15103_v41 }
 0x453   : > { %v4768_v51 = vpop.xlane.xlu0 %4767  ;;  %v4835_v54 = vmul.f32 %v11451_v35, %v13434_v19  ;;  %10950 = vmatprep.subr.mxu0 %v15103_v41 }
 0x454   : > { %11458 = vrcp.f32 %v4768_v51  ;;  %v4765_v27 = vpop.xlane.xlu1 %4764 }
 0x455   : > { %11460 = vrcp.f32 %v4765_v27  ;;  %10938 = vmatmul.mubr.msk.f32.vlgmr.msra.gmra.mrb[108].mxu1 %vm4519_vm3, %v4835_v54  ;;  %v7210_v54 = vld [vmem:[#allocation11 + $0x10] sm:$0xff]  ;;  %v7211_v27 = vld [vmem:[#allocation11 + $0x18] sm:$0xff] }
 0x456   : > { %v11453_v42 = vpop.eup %11452  ;;  %10946 = vmatpush3.msra.mxu1 %v13112_v43  ;;  %10947 = vmatprep.mubr.msk.f32.mxu1 %vm11912_vm1, %v15103_v41 }
 0x457   : > { %v4774_v37 = vpop.xlane.xlu0 %4773  ;;  %v4837_v36 = vmul.f32 %v11453_v42, %v13440_v56  ;;  %10955 = vmatprep.subr.mxu1 %v15103_v41 }
 0x458   : > { %11462 = vrcp.f32 %v4774_v37  ;;  %v4771_v19 = vpop.xlane.xlu1 %4770  ;;  %v15131_v37 = vld [vmem:[#allocation68_spill] sm:$0xff] }
 0x459   : > { %11464 = vrcp.f32 %v4771_v19  ;;  %10943 = vmatmul.mubr.msk.f32.vlgmr.msra.gmra.mrb[78].mxu0 %vm4519_vm3, %v4837_v36  ;;  %v15132_v36 = vld [vmem:[#allocation65_spill] sm:$0xff] }
 0x45a   : > { %v11455_v52 = vpop.eup %11454  ;;  %10951 = vmatpush3.msra.mxu0 %v13121_v31  ;;  %10952 = vmatprep.mubr.msk.f32.mxu0 %vm11912_vm1, %v15103_v41 }
 0x45b   : > { %v11457_v43 = vpop.eup %11456  ;;  %v4780_v25 = vpop.xlane.xlu0 %4779  ;;  %10960 = vmatprep.subr.mxu0 %v15103_v41  ;;  %v4841_v11 = vmul.f32 %v11455_v52, %v13446_v0  ;;  %v11226_v52 = vpack.c.bf16 %v7211_v27, %v7210_v54 }
 0x45c   : > { %11466 = vrcp.f32 %v4780_v25  ;;  %v4777_v56 = vpop.xlane.xlu1 %4776  ;;  %v4839_v60 = vmul.f32 %v11457_v43, %v13448_v49  ;;  %v15133_v25 = vld [vmem:[#allocation67_spill] sm:$0xff] }
 0x45d   : > { %11468 = vrcp.f32 %v4777_v56  ;;  %10953 = vmatmul.mubr.msk.f32.vlgmr.msra.gmra.mrb[80].mxu0 %vm4519_vm3, %v4841_v11 }
 0x45e   : > { %v11459_v53 = vpop.eup %11458  ;;  %10948 = vmatmul.mubr.msk.f32.vlgmr.msra.gmra.mrb[110].mxu1 %vm4519_vm3, %v4839_v60  ;;  %10961 = vmatpush3.msra.mxu0 %v13127_v33  ;;  %v15121_v33 = vld [vmem:[#allocation58_spill] sm:$0xff] }
 0x45f   : > { %v11461_v31 = vpop.eup %11460  ;;  %10956 = vmatpush3.msra.mxu1 %v13118_v3  ;;  %v4786_v57 = vpop.xlane.xlu0 %4785  ;;  %10957 = vmatprep.mubr.msk.f32.mxu1 %vm11912_vm1, %v15103_v41  ;;  %v4845_v0 = vmul.f32 %v11459_v53, %v13456_v14 }
 0x460   : > { %11470 = vrcp.f32 %v4786_v57  ;;  %v4783_v4 = vpop.xlane.xlu1 %4782  ;;  %10962 = vmatprep.mubr.msk.f32.mxu0 %vm11912_vm1, %v15103_v41  ;;  %10965 = vmatprep.subr.mxu1 %v15103_v41  ;;  %v4843_v49 = vmul.f32 %v11461_v31, %v13458_v40 }
 0x461   : > { %11472 = vrcp.f32 %v4783_v4  ;;  %10970 = vmatprep.subr.mxu0 %v15103_v41  ;;  %10963 = vmatmul.mubr.msk.f32.vlgmr.msra.gmra.mrb[82].mxu0 %vm4519_vm3, %v4845_v0 }
 0x462   : > { %v11463_v3 = vpop.eup %11462  ;;  %10958 = vmatmul.mubr.msk.f32.vlgmr.msra.gmra.mrb[112].mxu1 %vm4519_vm3, %v4843_v49  ;;  %10971 = vmatpush3.msra.mxu0 %v15121_v33 }
 0x463   : > { %v11465_v14 = vpop.eup %11464  ;;  %10966 = vmatpush3.msra.mxu1 %v15122_v61  ;;  %v4792_v7 = vpop.xlane.xlu0 %4791  ;;  %10967 = vmatprep.mubr.msk.f32.mxu1 %vm11912_vm1, %v15103_v41  ;;  %v4849_v9 = vmul.f32 %v11463_v3, %v13466_v48 }
 0x464   : > { %11474 = vrcp.f32 %v4792_v7  ;;  %v4789_v40 = vpop.xlane.xlu1 %4788  ;;  %10972 = vmatprep.mubr.msk.f32.mxu0 %vm11912_vm1, %v15103_v41  ;;  %10975 = vmatprep.subr.mxu1 %v15103_v41  ;;  %v4847_v63 = vmul.f32 %v11465_v14, %v13468_v32 }
 0x465   : > { %11476 = vrcp.f32 %v4789_v40  ;;  %10980 = vmatprep.subr.mxu0 %v15103_v41  ;;  %10973 = vmatmul.mubr.msk.f32.vlgmr.msra.gmra.mrb[84].mxu0 %vm4519_vm3, %v4849_v9 }
 0x466   : > { %v11467_v34 = vpop.eup %11466  ;;  %10968 = vmatmul.mubr.msk.f32.vlgmr.msra.gmra.mrb[114].mxu1 %vm4519_vm3, %v4847_v63  ;;  %10981 = vmatpush3.msra.mxu0 %v15123_v45 }
 0x467   : > { %v11469_v48 = vpop.eup %11468  ;;  %10976 = vmatpush3.msra.mxu1 %v15124_v10  ;;  %v4798_v26 = vpop.xlane.xlu0 %4797  ;;  %10977 = vmatprep.mubr.msk.f32.mxu1 %vm11912_vm1, %v15103_v41  ;;  %v4853_v21 = vmul.f32 %v11467_v34, %v13476_v38 }
 0x468   : > { %11478 = vrcp.f32 %v4798_v26  ;;  %v4795_v32 = vpop.xlane.xlu1 %4794  ;;  %10982 = vmatprep.mubr.msk.f32.mxu0 %vm11912_vm1, %v15103_v41  ;;  %10985 = vmatprep.subr.mxu1 %v15103_v41  ;;  %v4851_v39 = vmul.f32 %v11469_v48, %v13478_v62 }
 0x469   : > { %11480 = vrcp.f32 %v4795_v32  ;;  %10990 = vmatprep.subr.mxu0 %v15103_v41  ;;  %10983 = vmatmul.mubr.msk.f32.vlgmr.msra.gmra.mrb[86].mxu0 %vm4519_vm3, %v4853_v21 }
 0x46a   : > { %v11471_v6 = vpop.eup %11470  ;;  %10978 = vmatmul.mubr.msk.f32.vlgmr.msra.gmra.mrb[116].mxu1 %vm4519_vm3, %v4851_v39  ;;  %10991 = vmatpush3.msra.mxu0 %v15125_v30 }
 0x46b   : > { %v11473_v38 = vpop.eup %11472  ;;  %10986 = vmatpush3.msra.mxu1 %v15126_v13  ;;  %v4804_v5 = vpop.xlane.xlu0 %4803  ;;  %10987 = vmatprep.mubr.msk.f32.mxu1 %vm11912_vm1, %v15103_v41  ;;  %v4857_v18 = vmul.f32 %v11471_v6, %v13486_v29 }
 0x46c   : > { %11482 = vrcp.f32 %v4804_v5  ;;  %v4801_v62 = vpop.xlane.xlu1 %4800  ;;  %10992 = vmatprep.mubr.msk.f32.mxu0 %vm11912_vm1, %v15103_v41  ;;  %10995 = vmatprep.subr.mxu1 %v15103_v41  ;;  %v4855_v59 = vmul.f32 %v11473_v38, %v13488_v50 }
 0x46d   : > { %11484 = vrcp.f32 %v4801_v62  ;;  %11000 = vmatprep.subr.mxu0 %v15103_v41  ;;  %10993 = vmatmul.mubr.msk.f32.vlgmr.msra.gmra.mrb[88].mxu0 %vm4519_vm3, %v4857_v18 }
 0x46e   : > { %v11475_v46 = vpop.eup %11474  ;;  %10988 = vmatmul.mubr.msk.f32.vlgmr.msra.gmra.mrb[118].mxu1 %vm4519_vm3, %v4855_v59  ;;  %11001 = vmatpush3.msra.mxu0 %v15127_v22 }
 0x46f   : > { %v11477_v29 = vpop.eup %11476  ;;  %10996 = vmatpush3.msra.mxu1 %v15128_v23  ;;  %10997 = vmatprep.mubr.msk.f32.mxu1 %vm11912_vm1, %v15103_v41  ;;  %v4861_v55 = vmul.f32 %v11475_v46, %v13495_v24  ;;  %v7209_v24 = vld [vmem:[#allocation11 + $0x8] sm:$0xff] }
 0x470   : > { %v4807_v2 = vpop.xlane.xlu1 %4806  ;;  %11002 = vmatprep.mubr.msk.f32.mxu0 %vm11912_vm1, %v15103_v41  ;;  %11005 = vmatprep.subr.mxu1 %v15103_v41  ;;  %v4859_v50 = vmul.f32 %v11477_v29, %v13497_v12  ;;  %v11222_v51 = vpack.c.bf16 %v7209_v24, %v7208_v58 }
 0x471   : > { %11486 = vrcp.f32 %v4807_v2  ;;  %11010 = vmatprep.subr.mxu0 %v15103_v41  ;;  %11003 = vmatmul.mubr.msk.f32.vlgmr.msra.gmra.mrb[90].mxu0 %vm4519_vm3, %v4861_v55 }
 0x472   : > { %v11479_v15 = vpop.eup %11478  ;;  %10998 = vmatmul.mubr.msk.f32.vlgmr.msra.gmra.mrb[120].mxu1 %vm4519_vm3, %v4859_v50  ;;  %11011 = vmatpush3.msra.mxu0 %v15129_v17 }
 0x473   : > { %v11481_v44 = vpop.eup %11480  ;;  %11006 = vmatpush3.msra.mxu1 %v15130_v47  ;;  %11007 = vmatprep.mubr.msk.f32.mxu1 %vm11912_vm1, %v15103_v41  ;;  %v4865_v12 = vmul.f32 %v11479_v15, %v13503_v1 }
 0x474   : > { %11012 = vmatprep.mubr.msk.f32.mxu0 %vm11912_vm1, %v15103_v41  ;;  %11015 = vmatprep.subr.mxu1 %v15103_v41  ;;  %v4863_v35 = vmul.f32 %v11481_v44, %v13505_v16 }
 0x475   : > { %11020 = vmatprep.subr.mxu0 %v15103_v41  ;;  %11013 = vmatmul.mubr.msk.f32.vlgmr.msra.gmra.mrb[92].mxu0 %vm4519_vm3, %v4865_v12 }
 0x476   : > { %v11483_v42 = vpop.eup %11482  ;;  %11008 = vmatmul.mubr.msk.f32.vlgmr.msra.gmra.mrb[122].mxu1 %vm4519_vm3, %v4863_v35  ;;  %11021 = vmatpush3.msra.mxu0 %v15131_v37 }
 0x477   : > { %v11485_v1 = vpop.eup %11484  ;;  %11016 = vmatpush3.msra.mxu1 %v15132_v36  ;;  %11017 = vmatprep.mubr.msk.f32.mxu1 %vm11912_vm1, %v15103_v41  ;;  %v4869_v16 = vmul.f32 %v11483_v42, %v13511_v20 }
 0x478   : > { %11022 = vmatprep.mubr.msk.f32.mxu0 %vm11912_vm1, %v15103_v41  ;;  %11025 = vmatprep.subr.mxu1 %v15103_v41  ;;  %v4867_v19 = vmul.f32 %v11485_v1, %v13513_v28 }
 0x479   : > { %11023 = vmatmul.mubr.msk.f32.vlgmr.msra.gmra.mrb[94].mxu0 %vm4519_vm3, %v4869_v16  ;;  %11223 = vmatprep.subr.bf16.mxu0 %v11222_v51 }
 0x47a   : > { %11018 = vmatmul.mubr.msk.f32.vlgmr.msra.gmra.mrb[124].mxu1 %vm4519_vm3, %v4867_v19  ;;  %11225 = vmatpush3.bf16.msra.mxu0 %v11222_v51 }
 0x47b   : > { %v11487_v43 = vpop.eup %11486  ;;  %11026 = vmatpush3.msra.mxu1 %v15133_v25  ;;  %11027 = vmatprep.mubr.msk.f32.mxu1 %vm11912_vm1, %v15103_v41 }
 0x47c   : > { %v4871_v20 = vmul.f32 %v11487_v43, %v13519_v8  ;;  %11227 = vmatprep.subr.bf16.mxu0 %v11226_v52 }
 0x47e   : > { %11028 = vmatmul.mubr.msk.f32.vlgmr.msra.gmra.mrb[126].mxu1 %vm4519_vm3, %v4871_v20  ;;  %11229 = vmatpush3.bf16.msra.mxu0 %v11226_v52 }
 0x4f4   : > { %v4941_v28 = vpop.f32.mrb[64].mxu0 }
 0x4f5   : > { %v10874_v11 = vpop.f32.mrb[65].mxu0  ;;  %11038 = vmatprep.mubr.msk.f32.mxu0 %vm1254_vm0, %v4941_v28  ;;  %v13740_v28 = vld [vmem:[%s15134_s24] ss:$0 sm:$0xff] }
 0x4f8   : > { %v5014_v56 = vpop.f32.mrb[96].mxu1 }
 0x4f9   : > { %v10879_v60 = vpop.f32.mrb[97].mxu1  ;;  %11039 = vmatmul.mubr.msk.f32.vlgmr.msra.gmra.mrb[96].mxu0 %vm1254_vm0, %v5014_v56 }
 0x4fc   : > { %v5087_v53 = vpop.f32.mrb[66].mxu0 }
 0x4fd   : > { %v10884_v31 = vpop.f32.mrb[67].mxu0  ;;  %11041 = vmatprep.mubr.msk.f32.mxu0 %vm1254_vm0, %v5087_v53 }
 0x4fe   : > { %v15135_v31 = vld [vmem:[#allocation41_spill] sm:$0xff] }
 0x500   : > { %v5160_v57 = vpop.f32.mrb[98].mxu1 }
 0x501   : > { %v10889_v41 = vpop.f32.mrb[99].mxu1  ;;  %11042 = vmatmul.mubr.msk.f32.gmra.mrb[98].mxu0 %vm1254_vm0, %v5160_v57 }
 0x502   : > { %v15136_v41 = vld [vmem:[#allocation39_spill] sm:$0xff] }
 0x504   : > { %v5233_v8 = vpop.f32.mrb[68].mxu0 }
 0x505   : > { %v10894_v0 = vpop.f32.mrb[69].mxu0  ;;  %11044 = vmatprep.mubr.msk.f32.mxu0 %vm1254_vm0, %v5233_v8 }
 0x508   : > { %v5306_v4 = vpop.f32.mrb[100].mxu1 }
 0x509   : > { %v10899_v49 = vpop.f32.mrb[101].mxu1  ;;  %11045 = vmatmul.mubr.msk.f32.gmra.mrb[100].mxu0 %vm1254_vm0, %v5306_v4 }
 0x50c   : > { %v5379_v3 = vpop.f32.mrb[70].mxu0 }
 0x50d   : > { %v10904_v33 = vpop.f32.mrb[71].mxu0  ;;  %11047 = vmatprep.mubr.msk.f32.mxu0 %vm1254_vm0, %v5379_v3 }
 0x510   : > { %v5452_v14 = vpop.f32.mrb[102].mxu1 }
 0x511   : > { %v10909_v61 = vpop.f32.mrb[103].mxu1  ;;  %11048 = vmatmul.mubr.msk.f32.gmra.mrb[102].mxu0 %vm1254_vm0, %v5452_v14 }
 0x512   : > { %v15137_v61 = vld [vmem:[#allocation43_spill] sm:$0xff] }
 0x514   : > { %v5525_v7 = vpop.f32.mrb[72].mxu0 }
 0x515   : > { %v10914_v9 = vpop.f32.mrb[73].mxu0  ;;  %11050 = vmatprep.mubr.msk.f32.mxu0 %vm1254_vm0, %v5525_v7 }
 0x516   : > { %v15138_v9 = vld [vmem:[#allocation42_spill] sm:$0xff] }
 0x518   : > { %v5598_v40 = vpop.f32.mrb[104].mxu1 }
 0x519   : > { %v10919_v63 = vpop.f32.mrb[105].mxu1  ;;  %11051 = vmatmul.mubr.msk.f32.gmra.mrb[104].mxu0 %vm1254_vm0, %v5598_v40 }
 0x51c   : > { %v5671_v34 = vpop.f32.mrb[74].mxu0 }
 0x51d   : > { %v10924_v45 = vpop.f32.mrb[75].mxu0  ;;  %11053 = vmatprep.mubr.msk.f32.mxu0 %vm1254_vm0, %v5671_v34 }
 0x520   : > { %v5744_v48 = vpop.f32.mrb[106].mxu1 }
 0x521   : > { %v10929_v10 = vpop.f32.mrb[107].mxu1  ;;  %11054 = vmatmul.mubr.msk.f32.gmra.mrb[106].mxu0 %vm1254_vm0, %v5744_v48 }
 0x524   : > { %v5817_v26 = vpop.f32.mrb[76].mxu0 }
 0x525   : > { %v10934_v21 = vpop.f32.mrb[77].mxu0  ;;  %11056 = vmatprep.mubr.msk.f32.mxu0 %vm1254_vm0, %v5817_v26 }
 0x526   : > { %v15139_v21 = vld [vmem:[#allocation45_spill] sm:$0xff] }
 0x528   : > { %v5890_v32 = vpop.f32.mrb[108].mxu1 }
 0x529   : > { %v10939_v39 = vpop.f32.mrb[109].mxu1  ;;  %11057 = vmatmul.mubr.msk.f32.gmra.mrb[108].mxu0 %vm1254_vm0, %v5890_v32 }
 0x52a   : > { %v15140_v39 = vld [vmem:[#allocation44_spill] sm:$0xff] }
 0x52c   : > { %v5963_v6 = vpop.f32.mrb[78].mxu0 }
 0x52d   : > { %v10944_v30 = vpop.f32.mrb[79].mxu0  ;;  %11059 = vmatprep.mubr.msk.f32.mxu0 %vm1254_vm0, %v5963_v6 }
 0x530   : > { %v6109_v38 = vpop.f32.mrb[80].mxu0 }
 0x531   : > { %v6036_v13 = vpop.f32.mrb[110].mxu1  ;;  %v10954_v5 = vpop.f32.mrb[81].mxu0 }
 0x532   : > { %v10949_v18 = vpop.f32.mrb[111].mxu1  ;;  %11060 = vmatmul.mubr.msk.f32.gmra.mrb[110].mxu0 %vm1254_vm0, %v6036_v13 }
 0x533   : > { %11062 = vmatprep.mubr.msk.f32.mxu0 %vm1254_vm0, %v6109_v38 }
 0x534   : > { %v6255_v62 = vpop.f32.mrb[82].mxu0 }
 0x535   : > { %v6182_v59 = vpop.f32.mrb[112].mxu1  ;;  %v10964_v46 = vpop.f32.mrb[83].mxu0 }
 0x536   : > { %v10959_v22 = vpop.f32.mrb[113].mxu1  ;;  %11063 = vmatmul.mubr.msk.f32.gmra.mrb[112].mxu0 %vm1254_vm0, %v6182_v59  ;;  %v15141_v59 = vld [vmem:[#allocation47_spill] sm:$0xff] }
 0x537   : > { %11065 = vmatprep.mubr.msk.f32.mxu0 %vm1254_vm0, %v6255_v62  ;;  %v15142_v22 = vld [vmem:[#allocation46_spill] sm:$0xff] }
 0x538   : > { %v6401_v29 = vpop.f32.mrb[84].mxu0 }
 0x539   : > { %v6328_v23 = vpop.f32.mrb[114].mxu1  ;;  %v10974_v55 = vpop.f32.mrb[85].mxu0 }
 0x53a   : > { %v10969_v2 = vpop.f32.mrb[115].mxu1  ;;  %11066 = vmatmul.mubr.msk.f32.gmra.mrb[114].mxu0 %vm1254_vm0, %v6328_v23 }
 0x53b   : > { %11068 = vmatprep.mubr.msk.f32.mxu0 %vm1254_vm0, %v6401_v29 }
 0x53c   : > { %v6547_v50 = vpop.f32.mrb[86].mxu0 }
 0x53d   : > { %v6474_v15 = vpop.f32.mrb[116].mxu1  ;;  %v10984_v17 = vpop.f32.mrb[87].mxu0 }
 0x53e   : > { %v10979_v58 = vpop.f32.mrb[117].mxu1  ;;  %11069 = vmatmul.mubr.msk.f32.gmra.mrb[116].mxu0 %vm1254_vm0, %v6474_v15 }
 0x53f   : > { %11071 = vmatprep.mubr.msk.f32.mxu0 %vm1254_vm0, %v6547_v50  ;;  %v15143_v58 = vld [vmem:[#allocation49_spill] sm:$0xff] }
 0x540   : > { %v6693_v24 = vpop.f32.mrb[88].mxu0 }
 0x541   : > { %v6620_v44 = vpop.f32.mrb[118].mxu1  ;;  %v10994_v47 = vpop.f32.mrb[89].mxu0 }
 0x542   : > { %v10989_v12 = vpop.f32.mrb[119].mxu1  ;;  %11072 = vmatmul.mubr.msk.f32.gmra.mrb[118].mxu0 %vm1254_vm0, %v6620_v44  ;;  %v15144_v44 = vld [vmem:[#allocation48_spill] sm:$0xff] }
 0x543   : > { %11074 = vmatprep.mubr.msk.f32.mxu0 %vm1254_vm0, %v6693_v24 }
 0x544   : > { %v6839_v35 = vpop.f32.mrb[90].mxu0 }
 0x545   : > { %v6766_v51 = vpop.f32.mrb[120].mxu1  ;;  %v11004_v54 = vpop.f32.mrb[91].mxu0 }
 0x546   : > { %v10999_v27 = vpop.f32.mrb[121].mxu1  ;;  %11075 = vmatmul.mubr.msk.f32.gmra.mrb[120].mxu0 %vm1254_vm0, %v6766_v51 }
 0x547   : > { %11077 = vmatprep.mubr.msk.f32.mxu0 %vm1254_vm0, %v6839_v35 }
 0x548   : > { %v6985_v42 = vpop.f32.mrb[92].mxu0 }
 0x549   : > { %v6912_v37 = vpop.f32.mrb[122].mxu1  ;;  %v11014_v1 = vpop.f32.mrb[93].mxu0 }
 0x54a   : > { %v11009_v36 = vpop.f32.mrb[123].mxu1  ;;  %11078 = vmatmul.mubr.msk.f32.gmra.mrb[122].mxu0 %vm1254_vm0, %v6912_v37  ;;  %v15145_v37 = vld [vmem:[#allocation51_spill] sm:$0xff] }
 0x54b   : > { %11080 = vmatprep.mubr.msk.f32.mxu0 %vm1254_vm0, %v6985_v42  ;;  %v15146_v36 = vld [vmem:[#allocation50_spill] sm:$0xff] }
 0x54c   : > { %v7131_v16 = vpop.f32.mrb[94].mxu0 }
 0x54d   : > { %v7058_v19 = vpop.f32.mrb[124].mxu1  ;;  %v11024_v52 = vpop.f32.mrb[95].mxu0 }
 0x54e   : > { %v11019_v43 = vpop.f32.mrb[125].mxu1  ;;  %11081 = vmatmul.mubr.msk.f32.gmra.mrb[124].mxu0 %vm1254_vm0, %v7058_v19 }
 0x54f   : > { %11083 = vmatprep.mubr.msk.f32.mxu0 %vm1254_vm0, %v7131_v16 }
 0x551   : > { %v7204_v25 = vpop.f32.mrb[126].mxu1 }
 0x552   : > { %v11029_v20 = vpop.f32.mrb[127].mxu1  ;;  %11084 = vmatmul.mubr.msk.f32.gmra.mrb[126].mxu0 %vm1254_vm0, %v7204_v25 }
 0x5cc   : > { %v11040_v11 = vpop.f32.mrb[96].mxu0 }
 0x5cd   : > { %v7387_v56 = vadd.f32 %v11040_v11, %v13740_v28  ;;  %v7381_v60 = vpop.f32.mrb[97].mxu0 }
 0x5ce   : > { %v7382_v53 = vadd.f32 %v13740_v28, %v7381_v60 }
 0x5cf   : > { %v13745_v57 = vadd.f32 %v7387_v56, %v15135_v31  ;;  %v15147_v56 = vld [vmem:[#allocation53_spill] sm:$0xff] }
 0x5d0   : > { %v13748_v8 = vadd.f32 %v7382_v53, %v15136_v41  ;;  %v15148_v53 = vld [vmem:[#allocation52_spill] sm:$0xff] }
 0x5d1   : > { %v7575_v0 = vsel %vm1254_vm0, %v13745_v57, 0.0 }
 0x5d2   : > { %7576 = vadd.xlane.f32.xlu1 %v7575_v0  ;;  %v7572_v4 = vsel %vm1254_vm0, %v13748_v8, 0.0 }
 0x5d3   : > { %7573 = vadd.xlane.f32.xlu0 %v7572_v4 }
 0x5d4   : > { %v11043_v49 = vpop.f32.mrb[98].mxu0 }
 0x5d5   : > { %v7397_v3 = vadd.f32 %v11043_v49, %v13740_v28  ;;  %v7391_v33 = vpop.f32.mrb[99].mxu0 }
 0x5d6   : > { %v7392_v14 = vadd.f32 %v13740_v28, %v7391_v33 }
 0x5d7   : > { %v13757_v7 = vadd.f32 %v7397_v3, %v15137_v61 }
 0x5d8   : > { %v13760_v40 = vadd.f32 %v7392_v14, %v15138_v9  ;;  %v15149_v14 = vld [vmem:[#allocation55_spill] sm:$0xff] }
 0x5d9   : > { %v7581_v63 = vsel %vm1254_vm0, %v13757_v7, 0.0 }
 0x5da   : > { %7582 = vadd.xlane.f32.xlu1 %v7581_v63  ;;  %v7578_v34 = vsel %vm1254_vm0, %v13760_v40, 0.0  ;;  %v15150_v63 = vld [vmem:[#allocation54_spill] sm:$0xff] }
 0x5db   : > { %7579 = vadd.xlane.f32.xlu0 %v7578_v34 }
 0x5dc   : > { %v11046_v45 = vpop.f32.mrb[100].mxu0 }
 0x5dd   : > { %v7407_v48 = vadd.f32 %v11046_v45, %v13740_v28  ;;  %v7401_v10 = vpop.f32.mrb[101].mxu0 }
 0x5de   : > { %v7402_v26 = vadd.f32 %v13740_v28, %v7401_v10 }
 0x5df   : > { %v13769_v32 = vadd.f32 %v7407_v48, %v15139_v21 }
 0x5e0   : > { %v13772_v6 = vadd.f32 %v7402_v26, %v15140_v39  ;;  %v15151_v39 = vld [vmem:[#allocation25_spill] sm:$0xff] }
 0x5e1   : > { %v7587_v30 = vsel %vm1254_vm0, %v13769_v32, 0.0 }
 0x5e2   : > { %7588 = vadd.xlane.f32.xlu1 %v7587_v30  ;;  %v7584_v38 = vsel %vm1254_vm0, %v13772_v6, 0.0 }
 0x5e3   : > { %7585 = vadd.xlane.f32.xlu0 %v7584_v38 }
 0x5e4   : > { %v11049_v13 = vpop.f32.mrb[102].mxu0 }
 0x5e5   : > { %v7417_v5 = vadd.f32 %v11049_v13, %v13740_v28  ;;  %v7411_v18 = vpop.f32.mrb[103].mxu0  ;;  %v15152_v13 = vld [vmem:[#allocation24_spill] sm:$0xff] }
 0x5e6   : > { %v7412_v62 = vadd.f32 %v13740_v28, %v7411_v18 }
 0x5e7   : > { %v13781_v46 = vadd.f32 %v7417_v5, %v15141_v59 }
 0x5e8   : > { %v13784_v29 = vadd.f32 %v7412_v62, %v15142_v22 }
 0x5e9   : > { %v7593_v23 = vsel %vm1254_vm0, %v13781_v46, 0.0 }
 0x5ea   : > { %7594 = vadd.xlane.f32.xlu1 %v7593_v23  ;;  %v7590_v55 = vsel %vm1254_vm0, %v13784_v29, 0.0 }
 0x5eb   : > { %7591 = vadd.xlane.f32.xlu0 %v7590_v55  ;;  %v15153_v55 = vld [vmem:[#allocation27_spill] sm:$0xff] }
 0x5ec   : > { %v11052_v2 = vpop.f32.mrb[104].mxu0 }
 0x5ed   : > { %v7427_v50 = vadd.f32 %v11052_v2, %v13740_v28  ;;  %v7421_v15 = vpop.f32.mrb[105].mxu0 }
 0x5ee   : > { %v7422_v17 = vadd.f32 %v13740_v28, %v7421_v15  ;;  %v15154_v15 = vld [vmem:[#allocation26_spill] sm:$0xff] }
 0x5ef   : > { %v13793_v24 = vadd.f32 %v7427_v50, %v15143_v58 }
 0x5f0   : > { %v13796_v47 = vadd.f32 %v7422_v17, %v15144_v44 }
 0x5f1   : > { %v7599_v12 = vsel %vm1254_vm0, %v13793_v24, 0.0 }
 0x5f2   : > { %7600 = vadd.xlane.f32.xlu1 %v7599_v12  ;;  %v7596_v35 = vsel %vm1254_vm0, %v13796_v47, 0.0 }
 0x5f3   : > { %7597 = vadd.xlane.f32.xlu0 %v7596_v35 }
 0x5f4   : > { %v11055_v51 = vpop.f32.mrb[106].mxu0 }
 0x5f5   : > { %v7437_v54 = vadd.f32 %v11055_v51, %v13740_v28  ;;  %v7431_v27 = vpop.f32.mrb[107].mxu0 }
 0x5f6   : > { %v7432_v42 = vadd.f32 %v13740_v28, %v7431_v27 }
 0x5f7   : > { %v13805_v1 = vadd.f32 %v7437_v54, %v15145_v37  ;;  %v15155_v54 = vld [vmem:[#allocation29_spill] sm:$0xff]  ;;  %v15156_v37 = vld [vmem:[#allocation28_spill] sm:$0xff] }
 0x5f8   : > { %v13808_v16 = vadd.f32 %v7432_v42, %v15146_v36 }
 0x5f9   : > { %v7605_v19 = vsel %vm1254_vm0, %v13805_v1, 0.0 }
 0x5fa   : > { %7606 = vadd.xlane.f32.xlu1 %v7605_v19  ;;  %v7602_v52 = vsel %vm1254_vm0, %v13808_v16, 0.0 }
 0x5fb   : > { %7603 = vadd.xlane.f32.xlu0 %v7602_v52 }
 0x5fc   : > { %v11058_v43 = vpop.f32.mrb[108].mxu0 }
 0x5fd   : > { %v7447_v25 = vadd.f32 %v11058_v43, %v13740_v28  ;;  %v7441_v20 = vpop.f32.mrb[109].mxu0 }
 0x5fe   : > { %v7442_v11 = vadd.f32 %v13740_v28, %v7441_v20 }
 0x5ff   : > { %v13817_v60 = vadd.f32 %v7447_v25, %v15147_v56 }
 0x600   : > { %v13820_v31 = vadd.f32 %v7442_v11, %v15148_v53  ;;  %v15157_v11 = vld [vmem:[#allocation31_spill] sm:$0xff] }
 0x601   : > { %v7611_v41 = vsel %vm1254_vm0, %v13817_v60, 0.0 }
 0x602   : > { %7612 = vadd.xlane.f32.xlu1 %v7611_v41  ;;  %v7608_v0 = vsel %vm1254_vm0, %v13820_v31, 0.0  ;;  %v15158_v41 = vld [vmem:[#allocation30_spill] sm:$0xff] }
 0x603   : > { %7609 = vadd.xlane.f32.xlu0 %v7608_v0 }
 0x605   : > { %v11061_v4 = vpop.f32.mrb[110].mxu0 }
 0x606   : > { %v7457_v49 = vadd.f32 %v11061_v4, %v13740_v28  ;;  %v7451_v3 = vpop.f32.mrb[111].mxu0 }
 0x607   : > { %v7452_v33 = vadd.f32 %v13740_v28, %v7451_v3 }
 0x608   : > { %v13829_v61 = vadd.f32 %v7457_v49, %v15149_v14 }
 0x609   : > { %v11064_v9 = vpop.f32.mrb[112].mxu0  ;;  %v13832_v34 = vadd.f32 %v7452_v33, %v15150_v63 }
 0x60a   : > { %v7467_v45 = vadd.f32 %v11064_v9, %v13740_v28  ;;  %v7461_v48 = vpop.f32.mrb[113].mxu0  ;;  %v7617_v10 = vsel %vm1254_vm0, %v13829_v61, 0.0  ;;  %v15159_v9 = vld [vmem:[#allocation33_spill] sm:$0xff] }
 0x60b   : > { %v7462_v26 = vadd.f32 %v13740_v28, %v7461_v48  ;;  %7618 = vadd.xlane.f32.xlu1 %v7617_v10  ;;  %v7614_v21 = vsel %vm1254_vm0, %v13832_v34, 0.0  ;;  %v15160_v48 = vld [vmem:[#allocation32_spill] sm:$0xff] }
 0x60c   : > { %7615 = vadd.xlane.f32.xlu0 %v7614_v21  ;;  %v13841_v30 = vadd.f32 %v7467_v45, %v15151_v39 }
 0x60d   : > { %v11067_v38 = vpop.f32.mrb[114].mxu0  ;;  %v13844_v5 = vadd.f32 %v7462_v26, %v15152_v13 }
 0x60e   : > { %v7477_v18 = vadd.f32 %v11067_v38, %v13740_v28  ;;  %v7471_v62 = vpop.f32.mrb[115].mxu0  ;;  %v7623_v59 = vsel %vm1254_vm0, %v13841_v30, 0.0 }
 0x60f   : > { %v7472_v22 = vadd.f32 %v13740_v28, %v7471_v62  ;;  %7624 = vadd.xlane.f32.xlu1 %v7623_v59  ;;  %v7620_v23 = vsel %vm1254_vm0, %v13844_v5, 0.0 }
 0x610   : > { %7621 = vadd.xlane.f32.xlu0 %v7620_v23  ;;  %v13853_v2 = vadd.f32 %v7477_v18, %v15153_v55  ;;  %v15161_v18 = vld [vmem:[#allocation35_spill] sm:$0xff] }
 0x611   : > { %v11070_v50 = vpop.f32.mrb[116].mxu0  ;;  %v13856_v17 = vadd.f32 %v7472_v22, %v15154_v15  ;;  %v15162_v22 = vld [vmem:[#allocation34_spill] sm:$0xff] }
 0x612   : > { %v7487_v58 = vadd.f32 %v11070_v50, %v13740_v28  ;;  %v7481_v44 = vpop.f32.mrb[117].mxu0  ;;  %v7629_v12 = vsel %vm1254_vm0, %v13853_v2, 0.0 }
 0x613   : > { %v7482_v35 = vadd.f32 %v13740_v28, %v7481_v44  ;;  %7630 = vadd.xlane.f32.xlu1 %v7629_v12  ;;  %v7626_v51 = vsel %vm1254_vm0, %v13856_v17, 0.0  ;;  %v15163_v12 = vld [vmem:[#allocation37_spill] sm:$0xff] }
 0x614   : > { %7627 = vadd.xlane.f32.xlu0 %v7626_v51  ;;  %v13865_v27 = vadd.f32 %v7487_v58, %v15155_v54  ;;  %v15164_v54 = vld [vmem:[#allocation36_spill] sm:$0xff] }
 0x615   : > { %v11073_v42 = vpop.f32.mrb[118].mxu0  ;;  %v13868_v36 = vadd.f32 %v7482_v35, %v15156_v37 }
 0x616   : > { %v7497_v19 = vadd.f32 %v11073_v42, %v13740_v28  ;;  %v7491_v52 = vpop.f32.mrb[119].mxu0  ;;  %v7635_v43 = vsel %vm1254_vm0, %v13865_v27, 0.0 }
 0x617   : > { %v7492_v25 = vadd.f32 %v13740_v28, %v7491_v52  ;;  %7636 = vadd.xlane.f32.xlu1 %v7635_v43  ;;  %v7632_v20 = vsel %vm1254_vm0, %v13868_v36, 0.0 }
 0x618   : > { %7633 = vadd.xlane.f32.xlu0 %v7632_v20  ;;  %v13877_v56 = vadd.f32 %v7497_v19, %v15157_v11  ;;  %v15165_v20 = vld [vmem:[#allocation40_spill] sm:$0xff] }
 0x619   : > { %v11076_v53 = vpop.f32.mrb[120].mxu0  ;;  %v13880_v0 = vadd.f32 %v7492_v25, %v15158_v41 }
 0x61a   : > { %v7507_v4 = vadd.f32 %v11076_v53, %v13740_v28  ;;  %v7501_v49 = vpop.f32.mrb[121].mxu0  ;;  %v7641_v3 = vsel %vm1254_vm0, %v13877_v56, 0.0  ;;  %v15166_v53 = vld [vmem:[#allocation38_spill] sm:$0xff] }
 0x61b   : > { %v7502_v33 = vadd.f32 %v13740_v28, %v7501_v49  ;;  %7642 = vadd.xlane.f32.xlu1 %v7641_v3  ;;  %v7638_v14 = vsel %vm1254_vm0, %v13880_v0, 0.0 }
 0x61c   : > { %7639 = vadd.xlane.f32.xlu0 %v7638_v14  ;;  %v13889_v63 = vadd.f32 %v7507_v4, %v15159_v9 }
 0x61d   : > { %v11079_v45 = vpop.f32.mrb[122].mxu0  ;;  %v13892_v10 = vadd.f32 %v7502_v33, %v15160_v48 }
 0x61e   : > { %v7517_v26 = vadd.f32 %v11079_v45, %v13740_v28  ;;  %v7511_v21 = vpop.f32.mrb[123].mxu0  ;;  %v7647_v39 = vsel %vm1254_vm0, %v13889_v63, 0.0 }
 0x61f   : > { %v7512_v38 = vadd.f32 %v13740_v28, %v7511_v21  ;;  %7648 = vadd.xlane.f32.xlu1 %v7647_v39  ;;  %v7644_v13 = vsel %vm1254_vm0, %v13892_v10, 0.0 }
 0x620   : > { %7645 = vadd.xlane.f32.xlu0 %v7644_v13  ;;  %v13901_v62 = vadd.f32 %v7517_v26, %v15161_v18 }
 0x621   : > { %v11082_v59 = vpop.f32.mrb[124].mxu0  ;;  %v13904_v23 = vadd.f32 %v7512_v38, %v15162_v22 }
 0x622   : > { %v7527_v55 = vadd.f32 %v11082_v59, %v13740_v28  ;;  %v7521_v50 = vpop.f32.mrb[125].mxu0  ;;  %v7653_v15 = vsel %vm1254_vm0, %v13901_v62, 0.0 }
 0x623   : > { %v7522_v58 = vadd.f32 %v13740_v28, %v7521_v50  ;;  %7654 = vadd.xlane.f32.xlu1 %v7653_v15  ;;  %v7650_v44 = vsel %vm1254_vm0, %v13904_v23, 0.0 }
 0x624   : > { %7651 = vadd.xlane.f32.xlu0 %v7650_v44  ;;  %v13913_v35 = vadd.f32 %v7527_v55, %v15163_v12 }
 0x625   : > { %v11085_v51 = vpop.f32.mrb[126].mxu0  ;;  %v13916_v42 = vadd.f32 %v7522_v58, %v15164_v54 }
 0x626   : > { %v7537_v37 = vadd.f32 %v11085_v51, %v13740_v28  ;;  %v7531_v19 = vpop.f32.mrb[127].mxu0  ;;  %v7659_v52 = vsel %vm1254_vm0, %v13913_v35, 0.0 }
 0x627   : > { %v7532_v43 = vadd.f32 %v13740_v28, %v7531_v19  ;;  %7660 = vadd.xlane.f32.xlu1 %v7659_v52  ;;  %v7656_v25 = vsel %vm1254_vm0, %v13916_v42, 0.0 }
 0x628   : > { %7657 = vadd.xlane.f32.xlu0 %v7656_v25  ;;  %v13925_v11 = vadd.f32 %v7537_v37, %v15165_v20 }
 0x629   : > { %v13928_v41 = vadd.f32 %v7532_v43, %v15166_v53 }
 0x62a   : > { %v7665_v4 = vsel %vm1254_vm0, %v13925_v11, 0.0 }
 0x62b   : > { %7666 = vadd.xlane.f32.xlu1 %v7665_v4  ;;  %v7662_v49 = vsel %vm1254_vm0, %v13928_v41, 0.0 }
 0x62c   : > { %7663 = vadd.xlane.f32.xlu0 %v7662_v49 }
 0x65f   : > { %v7577_v28 = vpop.xlane.xlu1 %7576 }
 0x660   : > { %v7670_v3 = vmul.f32 0.03125, %v7577_v28  ;;  %v7574_v33 = vpop.xlane.xlu0 %7573 }
 0x661   : > { %v7669_v14 = vmul.f32 0.03125, %v7574_v33 }
 0x662   : > { %v13935_v9 = vsub.f32 %v13745_v57, %v7670_v3 }
 0x663   : > { %v13938_v45 = vsub.f32 %v13748_v8, %v7669_v14 }
 0x664   : > { %v7734_v48 = vmul.f32 %v13935_v9, %v13935_v9 }
 0x665   : > { %v7733_v26 = vmul.f32 %v13938_v45, %v13938_v45 }
 0x666   : > { %v7768_v21 = vsel %vm1254_vm0, %v7734_v48, 0.0 }
 0x667   : > { %v7583_v39 = vpop.xlane.xlu1 %7582  ;;  %7769 = vadd.xlane.f32.xlu1 %v7768_v21  ;;  %v7765_v38 = vsel %vm1254_vm0, %v7733_v26, 0.0 }
 0x668   : > { %v7672_v13 = vmul.f32 0.03125, %v7583_v39  ;;  %v7580_v18 = vpop.xlane.xlu0 %7579  ;;  %7766 = vadd.xlane.f32.xlu0 %v7765_v38  ;;  %v7991_v38 = vld [vmem:[%s15167_s0 + $0x10] sm:$0xff] }
 0x669   : > { %v7671_v57 = vmul.f32 0.03125, %v7580_v18 }
 0x66a   : > { %v13947_v59 = vsub.f32 %v13757_v7, %v7672_v13  ;;  %v7992_v13 = vld [vmem:[%s15167_s0 + $0x18] sm:$0xff] }
 0x66b   : > { %v13950_v8 = vsub.f32 %v13760_v40, %v7671_v57  ;;  %v11234_v57 = vpack.c.bf16 %v7992_v13, %v7991_v38 }
 0x66c   : > { %v7736_v22 = vmul.f32 %v13947_v59, %v13947_v59 }
 0x66d   : > { %v7735_v55 = vmul.f32 %v13950_v8, %v13950_v8 }
 0x66e   : > { %v7774_v50 = vsel %vm1254_vm0, %v7736_v22, 0.0 }
 0x66f   : > { %v7589_v15 = vpop.xlane.xlu1 %7588  ;;  %7775 = vadd.xlane.f32.xlu1 %v7774_v50  ;;  %v7771_v58 = vsel %vm1254_vm0, %v7735_v55, 0.0 }
 0x670   : > { %v7674_v44 = vmul.f32 0.03125, %v7589_v15  ;;  %v7586_v12 = vpop.xlane.xlu0 %7585  ;;  %7772 = vadd.xlane.f32.xlu0 %v7771_v58 }
 0x671   : > { %v7673_v7 = vmul.f32 0.03125, %v7586_v12 }
 0x672   : > { %v13959_v51 = vsub.f32 %v13769_v32, %v7674_v44 }
 0x673   : > { %v13962_v40 = vsub.f32 %v13772_v6, %v7673_v7 }
 0x674   : > { %v7738_v54 = vmul.f32 %v13959_v51, %v13959_v51 }
 0x675   : > { %v7737_v37 = vmul.f32 %v13962_v40, %v13962_v40 }
 0x676   : > { %v7780_v19 = vsel %vm1254_vm0, %v7738_v54, 0.0 }
 0x677   : > { %v7595_v52 = vpop.xlane.xlu1 %7594  ;;  %7781 = vadd.xlane.f32.xlu1 %v7780_v19  ;;  %v7777_v43 = vsel %vm1254_vm0, %v7737_v37, 0.0 }
 0x678   : > { %v7676_v25 = vmul.f32 0.03125, %v7595_v52  ;;  %v7592_v20 = vpop.xlane.xlu0 %7591  ;;  %7778 = vadd.xlane.f32.xlu0 %v7777_v43 }
 0x679   : > { %v7675_v32 = vmul.f32 0.03125, %v7592_v20 }
 0x67a   : > { %v13971_v53 = vsub.f32 %v13781_v46, %v7676_v25  ;;  %v7989_v46 = vld [vmem:[%s15167_s0] sm:$0xff] }
 0x67b   : > { %v13974_v6 = vsub.f32 %v13784_v29, %v7675_v32  ;;  %v7990_v29 = vld [vmem:[%s15167_s0 + $0x8] sm:$0xff] }
 0x67c   : > { %v7740_v4 = vmul.f32 %v13971_v53, %v13971_v53  ;;  %v11230_v26 = vpack.c.bf16 %v7990_v29, %v7989_v46 }
 0x67d   : > { %v7739_v49 = vmul.f32 %v13974_v6, %v13974_v6 }
 0x67e   : > { %v7786_v28 = vsel %vm1254_vm0, %v7740_v4, 0.0  ;;  %11231 = vmatprep.subr.bf16.mxu1 %v11230_v26 }
 0x67f   : > { %v7601_v3 = vpop.xlane.xlu1 %7600  ;;  %7787 = vadd.xlane.f32.xlu1 %v7786_v28  ;;  %v7783_v33 = vsel %vm1254_vm0, %v7739_v49, 0.0  ;;  %11233 = vmatpush3.bf16.msra.mxu1 %v11230_v26 }
 0x680   : > { %v7678_v14 = vmul.f32 0.03125, %v7601_v3  ;;  %v7598_v48 = vpop.xlane.xlu0 %7597  ;;  %7784 = vadd.xlane.f32.xlu0 %v7783_v33  ;;  %11235 = vmatprep.subr.bf16.mxu1 %v11234_v57 }
 0x681   : > { %v7677_v21 = vmul.f32 0.03125, %v7598_v48 }
 0x682   : > { %v13989_v39 = vsub.f32 %v13793_v24, %v7678_v14 }
 0x683   : > { %v13998_v18 = vsub.f32 %v13796_v47, %v7677_v21  ;;  %11237 = vmatpush3.bf16.msra.mxu1 %v11234_v57 }
 0x684   : > { %v7742_v22 = vmul.f32 %v13989_v39, %v13989_v39 }
 0x685   : > { %v7741_v24 = vmul.f32 %v13998_v18, %v13998_v18 }
 0x686   : > { %v7792_v55 = vsel %vm1254_vm0, %v7742_v22, 0.0 }
 0x687   : > { %v7607_v50 = vpop.xlane.xlu1 %7606  ;;  %7793 = vadd.xlane.f32.xlu1 %v7792_v55  ;;  %v7789_v15 = vsel %vm1254_vm0, %v7741_v24, 0.0 }
 0x688   : > { %v7680_v58 = vmul.f32 0.03125, %v7607_v50  ;;  %v7604_v44 = vpop.xlane.xlu0 %7603  ;;  %7790 = vadd.xlane.f32.xlu0 %v7789_v15 }
 0x689   : > { %v7679_v47 = vmul.f32 0.03125, %v7604_v44 }
 0x68a   : > { %v14007_v12 = vsub.f32 %v13805_v1, %v7680_v58 }
 0x68b   : > { %v14010_v7 = vsub.f32 %v13808_v16, %v7679_v47 }
 0x68c   : > { %v7744_v54 = vmul.f32 %v14007_v12, %v14007_v12 }
 0x68d   : > { %v7743_v37 = vmul.f32 %v14010_v7, %v14010_v7 }
 0x68e   : > { %v7798_v19 = vsel %vm1254_vm0, %v7744_v54, 0.0 }
 0x68f   : > { %v7613_v52 = vpop.xlane.xlu1 %7612  ;;  %7799 = vadd.xlane.f32.xlu1 %v7798_v19  ;;  %v7795_v43 = vsel %vm1254_vm0, %v7743_v37, 0.0 }
 0x690   : > { %v7682_v25 = vmul.f32 0.03125, %v7613_v52  ;;  %v7610_v20 = vpop.xlane.xlu0 %7609  ;;  %7796 = vadd.xlane.f32.xlu0 %v7795_v43 }
 0x691   : > { %v7681_v1 = vmul.f32 0.03125, %v7610_v20 }
 0x692   : > { %v14019_v32 = vsub.f32 %v13817_v60, %v7682_v25 }
 0x693   : > { %v14022_v16 = vsub.f32 %v13820_v31, %v7681_v1 }
 0x694   : > { %v7746_v4 = vmul.f32 %v14019_v32, %v14019_v32 }
 0x695   : > { %v7745_v49 = vmul.f32 %v14022_v16, %v14022_v16 }
 0x696   : > { %v7804_v28 = vsel %vm1254_vm0, %v7746_v4, 0.0 }
 0x697   : > { %7805 = vadd.xlane.f32.xlu1 %v7804_v28  ;;  %v7801_v3 = vsel %vm1254_vm0, %v7745_v49, 0.0 }
 0x698   : > { %v7619_v33 = vpop.xlane.xlu1 %7618  ;;  %7802 = vadd.xlane.f32.xlu0 %v7801_v3 }
 0x699   : > { %v7684_v46 = vmul.f32 0.03125, %v7619_v33  ;;  %v7616_v29 = vpop.xlane.xlu0 %7615 }
 0x69a   : > { %v7683_v60 = vmul.f32 0.03125, %v7616_v29 }
 0x69b   : > { %v14031_v14 = vsub.f32 %v13829_v61, %v7684_v46 }
 0x69c   : > { %v14034_v31 = vsub.f32 %v13832_v34, %v7683_v60  ;;  %v7625_v48 = vpop.xlane.xlu1 %7624 }
 0x69d   : > { %v7686_v26 = vmul.f32 0.03125, %v7625_v48  ;;  %v7622_v21 = vpop.xlane.xlu0 %7621  ;;  %v7748_v38 = vmul.f32 %v14031_v14, %v14031_v14 }
 0x69e   : > { %v7685_v13 = vmul.f32 0.03125, %v7622_v21  ;;  %v7747_v57 = vmul.f32 %v14034_v31, %v14034_v31 }
 0x69f   : > { %v14041_v22 = vsub.f32 %v13841_v30, %v7686_v26  ;;  %v7810_v24 = vsel %vm1254_vm0, %v7748_v38, 0.0 }
 0x6a0   : > { %v14045_v61 = vsub.f32 %v13844_v5, %v7685_v13  ;;  %v7631_v34 = vpop.xlane.xlu1 %7630  ;;  %7811 = vadd.xlane.f32.xlu1 %v7810_v24  ;;  %v7807_v55 = vsel %vm1254_vm0, %v7747_v57, 0.0 }
 0x6a1   : > { %v7688_v50 = vmul.f32 0.03125, %v7631_v34  ;;  %v7628_v15 = vpop.xlane.xlu0 %7627  ;;  %7808 = vadd.xlane.f32.xlu0 %v7807_v55  ;;  %v7750_v58 = vmul.f32 %v14041_v22, %v14041_v22 }
 0x6a2   : > { %v7687_v44 = vmul.f32 0.03125, %v7628_v15  ;;  %v7749_v30 = vmul.f32 %v14045_v61, %v14045_v61 }
 0x6a3   : > { %v14053_v47 = vsub.f32 %v13853_v2, %v7688_v50  ;;  %v7816_v5 = vsel %vm1254_vm0, %v7750_v58, 0.0 }
 0x6a4   : > { %v14057_v54 = vsub.f32 %v13856_v17, %v7687_v44  ;;  %v7637_v37 = vpop.xlane.xlu1 %7636  ;;  %7817 = vadd.xlane.f32.xlu1 %v7816_v5  ;;  %v7813_v19 = vsel %vm1254_vm0, %v7749_v30, 0.0 }
 0x6a5   : > { %v7690_v52 = vmul.f32 0.03125, %v7637_v37  ;;  %v7634_v43 = vpop.xlane.xlu0 %7633  ;;  %7814 = vadd.xlane.f32.xlu0 %v7813_v19  ;;  %v7752_v25 = vmul.f32 %v14053_v47, %v14053_v47 }
 0x6a6   : > { %v7689_v20 = vmul.f32 0.03125, %v7634_v43  ;;  %v7751_v2 = vmul.f32 %v14057_v54, %v14057_v54 }
 0x6a7   : > { %v14065_v1 = vsub.f32 %v13865_v27, %v7690_v52  ;;  %v7822_v17 = vsel %vm1254_vm0, %v7752_v25, 0.0 }
 0x6a8   : > { %v14069_v4 = vsub.f32 %v13868_v36, %v7689_v20  ;;  %v7643_v49 = vpop.xlane.xlu1 %7642  ;;  %7823 = vadd.xlane.f32.xlu1 %v7822_v17  ;;  %v7819_v28 = vsel %vm1254_vm0, %v7751_v2, 0.0 }
 0x6a9   : > { %v7692_v3 = vmul.f32 0.03125, %v7643_v49  ;;  %v7640_v33 = vpop.xlane.xlu0 %7639  ;;  %7820 = vadd.xlane.f32.xlu0 %v7819_v28  ;;  %v7754_v46 = vmul.f32 %v14065_v1, %v14065_v1 }
 0x6aa   : > { %v7691_v29 = vmul.f32 0.03125, %v7640_v33  ;;  %v7753_v27 = vmul.f32 %v14069_v4, %v14069_v4 }
 0x6ab   : > { %v14077_v60 = vsub.f32 %v13877_v56, %v7692_v3  ;;  %v7828_v36 = vsel %vm1254_vm0, %v7754_v46, 0.0 }
 0x6ac   : > { %v14081_v48 = vsub.f32 %v13880_v0, %v7691_v29  ;;  %v7649_v26 = vpop.xlane.xlu1 %7648  ;;  %7829 = vadd.xlane.f32.xlu1 %v7828_v36  ;;  %v7825_v21 = vsel %vm1254_vm0, %v7753_v27, 0.0 }
 0x6ad   : > { %v7694_v38 = vmul.f32 0.03125, %v7649_v26  ;;  %v7646_v13 = vpop.xlane.xlu0 %7645  ;;  %7826 = vadd.xlane.f32.xlu0 %v7825_v21  ;;  %v7756_v57 = vmul.f32 %v14077_v60, %v14077_v60 }
 0x6ae   : > { %v7693_v24 = vmul.f32 0.03125, %v7646_v13  ;;  %v7755_v56 = vmul.f32 %v14081_v48, %v14081_v48 }
 0x6af   : > { %v14089_v34 = vsub.f32 %v13889_v63, %v7694_v38  ;;  %v7834_v0 = vsel %vm1254_vm0, %v7756_v57, 0.0 }
 0x6b0   : > { %v14093_v55 = vsub.f32 %v13892_v10, %v7693_v24  ;;  %v7655_v50 = vpop.xlane.xlu1 %7654  ;;  %7835 = vadd.xlane.f32.xlu1 %v7834_v0  ;;  %v7831_v15 = vsel %vm1254_vm0, %v7755_v56, 0.0  ;;  %v8353_v56 = vld [vmem:[#allocation13] sm:$0xff]  ;;  %v8354_v0 = vld [vmem:[#allocation13 + $0x8] sm:$0xff] }
 0x6b1   : > { %v7696_v58 = vmul.f32 0.03125, %v7655_v50  ;;  %v7652_v44 = vpop.xlane.xlu0 %7651  ;;  %7832 = vadd.xlane.f32.xlu0 %v7831_v15  ;;  %v7758_v30 = vmul.f32 %v14089_v34, %v14089_v34 }
 0x6b2   : > { %v7695_v5 = vmul.f32 0.03125, %v7652_v44  ;;  %v7757_v63 = vmul.f32 %v14093_v55, %v14093_v55 }
 0x6b3   : > { %v14101_v37 = vsub.f32 %v13901_v62, %v7696_v58  ;;  %v7840_v10 = vsel %vm1254_vm0, %v7758_v30, 0.0 }
 0x6b4   : > { %v14105_v19 = vsub.f32 %v13904_v23, %v7695_v5  ;;  %v7661_v52 = vpop.xlane.xlu1 %7660  ;;  %7841 = vadd.xlane.f32.xlu1 %v7840_v10  ;;  %v7837_v43 = vsel %vm1254_vm0, %v7757_v63, 0.0 }
 0x6b5   : > { %v7698_v25 = vmul.f32 0.03125, %v7661_v52  ;;  %v7658_v20 = vpop.xlane.xlu0 %7657  ;;  %7838 = vadd.xlane.f32.xlu0 %v7837_v43  ;;  %v7760_v2 = vmul.f32 %v14101_v37, %v14101_v37 }
 0x6b6   : > { %v7697_v17 = vmul.f32 0.03125, %v7658_v20  ;;  %v7759_v62 = vmul.f32 %v14105_v19, %v14105_v19 }
 0x6b7   : > { %v14113_v49 = vsub.f32 %v13913_v35, %v7698_v25  ;;  %v7846_v23 = vsel %vm1254_vm0, %v7760_v2, 0.0 }
 0x6b8   : > { %v14117_v28 = vsub.f32 %v13916_v42, %v7697_v17  ;;  %7847 = vadd.xlane.f32.xlu1 %v7846_v23  ;;  %v7667_v3 = vpop.xlane.xlu1 %7666  ;;  %v7843_v33 = vsel %vm1254_vm0, %v7759_v62, 0.0 }
 0x6b9   : > { %v7700_v46 = vmul.f32 0.03125, %v7667_v3  ;;  %7844 = vadd.xlane.f32.xlu0 %v7843_v33  ;;  %v7664_v29 = vpop.xlane.xlu0 %7663  ;;  %v7762_v27 = vmul.f32 %v14113_v49, %v14113_v49 }
 0x6ba   : > { %v7699_v36 = vmul.f32 0.03125, %v7664_v29  ;;  %v7761_v35 = vmul.f32 %v14117_v28, %v14117_v28 }
 0x6bb   : > { %v14125_v26 = vsub.f32 %v13925_v11, %v7700_v46  ;;  %v7852_v42 = vsel %vm1254_vm0, %v7762_v27, 0.0 }
 0x6bc   : > { %v14129_v21 = vsub.f32 %v13928_v41, %v7699_v36  ;;  %7853 = vadd.xlane.f32.xlu1 %v7852_v42  ;;  %v7849_v38 = vsel %vm1254_vm0, %v7761_v35, 0.0  ;;  %v11238_v41 = vpack.c.bf16 %v8354_v0, %v8353_v56 }
 0x6bd   : > { %7850 = vadd.xlane.f32.xlu0 %v7849_v38  ;;  %v7764_v13 = vmul.f32 %v14125_v26, %v14125_v26 }
 0x6be   : > { %v7763_v57 = vmul.f32 %v14129_v21, %v14129_v21  ;;  %11239 = vmatprep.subr.bf16.mxu0 %v11238_v41 }
 0x6bf   : > { %v7858_v24 = vsel %vm1254_vm0, %v7764_v13, 0.0  ;;  %11241 = vmatpush3.bf16.msra.mxu0 %v11238_v41 }
 0x6c0   : > { %7859 = vadd.xlane.f32.xlu1 %v7858_v24  ;;  %v7855_v11 = vsel %vm1254_vm0, %v7763_v57, 0.0 }
 0x6c1   : > { %7856 = vadd.xlane.f32.xlu0 %v7855_v11 }
 0x6f4   : > { %v7770_v50 = vpop.xlane.xlu1 %7769 }
 0x6f5   : > { %v7862_v15 = vmul.f32 0.03125, %v7770_v50  ;;  %v7767_v58 = vpop.xlane.xlu0 %7766 }
 0x6f6   : > { %v7861_v44 = vmul.f32 0.03125, %v7767_v58 }
 0x6f7   : > { %v7894_v30 = vadd.f32 1e-05, %v7862_v15 }
 0x6f8   : > { %v7893_v5 = vadd.f32 1e-05, %v7861_v44 }
 0x6f9   : > { %11488 = vrsqrt.f32 %v7894_v30 }
 0x6fa   : > { %11490 = vrsqrt.f32 %v7893_v5 }
 0x6fc   : > { %v7776_v63 = vpop.xlane.xlu1 %7775 }
 0x6fd   : > { %v7864_v10 = vmul.f32 0.03125, %v7776_v63  ;;  %v7773_v52 = vpop.xlane.xlu0 %7772 }
 0x6fe   : > { %v7863_v43 = vmul.f32 0.03125, %v7773_v52 }
 0x6ff   : > { %v7896_v25 = vadd.f32 1e-05, %v7864_v10 }
 0x700   : > { %v7895_v20 = vadd.f32 1e-05, %v7863_v43 }
 0x701   : > { %11492 = vrsqrt.f32 %v7896_v25 }
 0x702   : > { %11494 = vrsqrt.f32 %v7895_v20 }
 0x703   : > { %v11489_v2 = vpop.eup %11488 }
 0x704   : > { %v11491_v17 = vpop.eup %11490  ;;  %v7782_v62 = vpop.xlane.xlu1 %7781  ;;  %v14142_v29 = vmul.f32 %v11489_v2, %v13935_v9 }
 0x705   : > { %v7866_v23 = vmul.f32 0.03125, %v7782_v62  ;;  %v7779_v3 = vpop.xlane.xlu0 %7778  ;;  %v14139_v33 = vmul.f32 %v11491_v17, %v13938_v45 }
 0x706   : > { %v7865_v46 = vmul.f32 0.03125, %v7779_v3 }
 0x707   : > { %v7898_v27 = vadd.f32 1e-05, %v7866_v23  ;;  %11094 = vmatprep.mubr.msk.f32.mxu1 %vm1254_vm0, %v14139_v33 }
 0x708   : > { %v7897_v36 = vadd.f32 1e-05, %v7865_v46  ;;  %11095 = vmatmul.mubr.msk.f32.vlgmr.msra.gmra.mrb[128].mxu1 %vm1254_vm0, %v14142_v29 }
 0x709   : > { %11496 = vrsqrt.f32 %v7898_v27 }
 0x70a   : > { %11498 = vrsqrt.f32 %v7897_v36 }
 0x70b   : > { %v11493_v35 = vpop.eup %11492 }
 0x70c   : > { %v11495_v42 = vpop.eup %11494  ;;  %v7788_v38 = vpop.xlane.xlu1 %7787  ;;  %v14152_v24 = vmul.f32 %v11493_v35, %v13947_v59 }
 0x70d   : > { %v7868_v13 = vmul.f32 0.03125, %v7788_v38  ;;  %v7785_v45 = vpop.xlane.xlu0 %7784  ;;  %v14149_v57 = vmul.f32 %v11495_v42, %v13950_v8 }
 0x70e   : > { %v7867_v9 = vmul.f32 0.03125, %v7785_v45 }
 0x70f   : > { %v7900_v11 = vadd.f32 1e-05, %v7868_v13  ;;  %11097 = vmatprep.mubr.msk.f32.mxu1 %vm1254_vm0, %v14149_v57 }
 0x710   : > { %v7899_v56 = vadd.f32 1e-05, %v7867_v9  ;;  %11098 = vmatmul.mubr.msk.f32.gmra.mrb[130].mxu1 %vm1254_vm0, %v14152_v24 }
 0x711   : > { %11500 = vrsqrt.f32 %v7900_v11 }
 0x712   : > { %11502 = vrsqrt.f32 %v7899_v56 }
 0x713   : > { %v11497_v0 = vpop.eup %11496 }
 0x714   : > { %v11499_v41 = vpop.eup %11498  ;;  %v7794_v50 = vpop.xlane.xlu1 %7793  ;;  %v14162_v44 = vmul.f32 %v11497_v0, %v13959_v51 }
 0x715   : > { %v7870_v15 = vmul.f32 0.03125, %v7794_v50  ;;  %v7791_v8 = vpop.xlane.xlu0 %7790  ;;  %v14159_v58 = vmul.f32 %v11499_v41, %v13962_v40 }
 0x716   : > { %v7869_v59 = vmul.f32 0.03125, %v7791_v8 }
 0x717   : > { %v7902_v30 = vadd.f32 1e-05, %v7870_v15  ;;  %11100 = vmatprep.mubr.msk.f32.mxu1 %vm1254_vm0, %v14159_v58 }
 0x718   : > { %v7901_v5 = vadd.f32 1e-05, %v7869_v59  ;;  %11101 = vmatmul.mubr.msk.f32.gmra.mrb[132].mxu1 %vm1254_vm0, %v14162_v44 }
 0x719   : > { %11504 = vrsqrt.f32 %v7902_v30 }
 0x71a   : > { %11506 = vrsqrt.f32 %v7901_v5 }
 0x71b   : > { %v11501_v63 = vpop.eup %11500 }
 0x71c   : > { %v11503_v10 = vpop.eup %11502  ;;  %v7800_v52 = vpop.xlane.xlu1 %7799  ;;  %v14172_v20 = vmul.f32 %v11501_v63, %v13971_v53 }
 0x71d   : > { %v7872_v43 = vmul.f32 0.03125, %v7800_v52  ;;  %v7797_v40 = vpop.xlane.xlu0 %7796  ;;  %v14169_v25 = vmul.f32 %v11503_v10, %v13974_v6 }
 0x71e   : > { %v7871_v51 = vmul.f32 0.03125, %v7797_v40 }
 0x71f   : > { %v7904_v2 = vadd.f32 1e-05, %v7872_v43  ;;  %11103 = vmatprep.mubr.msk.f32.mxu1 %vm1254_vm0, %v14169_v25 }
 0x720   : > { %v7903_v17 = vadd.f32 1e-05, %v7871_v51  ;;  %11104 = vmatmul.mubr.msk.f32.gmra.mrb[134].mxu1 %vm1254_vm0, %v14172_v20 }
 0x721   : > { %11508 = vrsqrt.f32 %v7904_v2 }
 0x722   : > { %11510 = vrsqrt.f32 %v7903_v17 }
 0x723   : > { %v11505_v62 = vpop.eup %11504 }
 0x724   : > { %v11507_v23 = vpop.eup %11506  ;;  %v7806_v3 = vpop.xlane.xlu1 %7805  ;;  %v14182_v36 = vmul.f32 %v11505_v62, %v13989_v39 }
 0x725   : > { %v7874_v46 = vmul.f32 0.03125, %v7806_v3  ;;  %v7803_v6 = vpop.xlane.xlu0 %7802  ;;  %v14179_v27 = vmul.f32 %v11507_v23, %v13998_v18 }
 0x726   : > { %v7873_v53 = vmul.f32 0.03125, %v7803_v6 }
 0x727   : > { %v7906_v35 = vadd.f32 1e-05, %v7874_v46  ;;  %11106 = vmatprep.mubr.msk.f32.mxu1 %vm1254_vm0, %v14179_v27 }
 0x728   : > { %v7905_v42 = vadd.f32 1e-05, %v7873_v53  ;;  %11107 = vmatmul.mubr.msk.f32.gmra.mrb[136].mxu1 %vm1254_vm0, %v14182_v36 }
 0x729   : > { %11512 = vrsqrt.f32 %v7906_v35 }
 0x72a   : > { %11514 = vrsqrt.f32 %v7905_v42 }
 0x72b   : > { %v11509_v38 = vpop.eup %11508 }
 0x72c   : > { %v11511_v13 = vpop.eup %11510  ;;  %v14192_v39 = vmul.f32 %v11509_v38, %v14007_v12 }
 0x72d   : > { %v7812_v45 = vpop.xlane.xlu1 %7811  ;;  %v14189_v18 = vmul.f32 %v11511_v13, %v14010_v7 }
 0x72e   : > { %v7876_v9 = vmul.f32 0.03125, %v7812_v45  ;;  %v7809_v11 = vpop.xlane.xlu0 %7808 }
 0x72f   : > { %v7875_v56 = vmul.f32 0.03125, %v7809_v11  ;;  %11109 = vmatprep.mubr.msk.f32.mxu1 %vm1254_vm0, %v14189_v18 }
 0x730   : > { %v7908_v0 = vadd.f32 1e-05, %v7876_v9  ;;  %11110 = vmatmul.mubr.msk.f32.gmra.mrb[138].mxu1 %vm1254_vm0, %v14192_v39 }
 0x731   : > { %v7907_v41 = vadd.f32 1e-05, %v7875_v56  ;;  %v7818_v50 = vpop.xlane.xlu1 %7817 }
 0x732   : > { %11516 = vrsqrt.f32 %v7908_v0  ;;  %v7878_v15 = vmul.f32 0.03125, %v7818_v50  ;;  %v7815_v8 = vpop.xlane.xlu0 %7814 }
 0x733   : > { %v11513_v7 = vpop.eup %11512  ;;  %11518 = vrsqrt.f32 %v7907_v41  ;;  %v7877_v59 = vmul.f32 0.03125, %v7815_v8 }
 0x734   : > { %v11515_v30 = vpop.eup %11514  ;;  %v7910_v5 = vadd.f32 1e-05, %v7878_v15  ;;  %v14202_v40 = vmul.f32 %v11513_v7, %v14019_v32 }
 0x735   : > { %v7909_v12 = vadd.f32 1e-05, %v7877_v59  ;;  %v7824_v63 = vpop.xlane.xlu1 %7823  ;;  %v14199_v10 = vmul.f32 %v11515_v30, %v14022_v16 }
 0x736   : > { %11520 = vrsqrt.f32 %v7910_v5  ;;  %v7880_v52 = vmul.f32 0.03125, %v7824_v63  ;;  %v7821_v43 = vpop.xlane.xlu0 %7820 }
 0x737   : > { %11522 = vrsqrt.f32 %v7909_v12  ;;  %v7879_v51 = vmul.f32 0.03125, %v7821_v43  ;;  %11112 = vmatprep.mubr.msk.f32.mxu1 %vm1254_vm0, %v14199_v10 }
 0x738   : > { %v7912_v2 = vadd.f32 1e-05, %v7880_v52  ;;  %11113 = vmatmul.mubr.msk.f32.gmra.mrb[140].mxu1 %vm1254_vm0, %v14202_v40 }
 0x739   : > { %v7911_v17 = vadd.f32 1e-05, %v7879_v51  ;;  %v7830_v62 = vpop.xlane.xlu1 %7829 }
 0x73a   : > { %11524 = vrsqrt.f32 %v7912_v2  ;;  %v7882_v16 = vmul.f32 0.03125, %v7830_v62  ;;  %v7827_v23 = vpop.xlane.xlu0 %7826 }
 0x73b   : > { %11526 = vrsqrt.f32 %v7911_v17  ;;  %v7881_v3 = vmul.f32 0.03125, %v7827_v23 }
 0x73c   : > { %v11517_v46 = vpop.eup %11516  ;;  %v7914_v6 = vadd.f32 1e-05, %v7882_v16 }
 0x73d   : > { %v11519_v32 = vpop.eup %11518  ;;  %v7913_v53 = vadd.f32 1e-05, %v7881_v3  ;;  %v7836_v35 = vpop.xlane.xlu1 %7835  ;;  %v14212_v9 = vmul.f32 %v11517_v46, %v14031_v14 }
 0x73e   : > { %11528 = vrsqrt.f32 %v7914_v6  ;;  %v7884_v42 = vmul.f32 0.03125, %v7836_v35  ;;  %v7833_v38 = vpop.xlane.xlu0 %7832  ;;  %v14209_v13 = vmul.f32 %v11519_v32, %v14034_v31 }
 0x73f   : > { %11530 = vrsqrt.f32 %v7913_v53  ;;  %v7883_v45 = vmul.f32 0.03125, %v7833_v38 }
 0x740   : > { %v11521_v11 = vpop.eup %11520  ;;  %v7916_v56 = vadd.f32 1e-05, %v7884_v42  ;;  %11115 = vmatprep.mubr.msk.f32.mxu1 %vm1254_vm0, %v14209_v13 }
 0x741   : > { %v11523_v0 = vpop.eup %11522  ;;  %v7915_v41 = vadd.f32 1e-05, %v7883_v45  ;;  %v7842_v50 = vpop.xlane.xlu1 %7841  ;;  %11116 = vmatmul.mubr.msk.f32.gmra.mrb[142].mxu1 %vm1254_vm0, %v14212_v9  ;;  %v14222_v7 = vmul.f32 %v11521_v11, %v14041_v22 }
 0x742   : > { %11532 = vrsqrt.f32 %v7916_v56  ;;  %v7886_v15 = vmul.f32 0.03125, %v7842_v50  ;;  %v7839_v31 = vpop.xlane.xlu0 %7838  ;;  %v14219_v8 = vmul.f32 %v11523_v0, %v14045_v61 }
 0x743   : > { %11534 = vrsqrt.f32 %v7915_v41  ;;  %v7885_v14 = vmul.f32 0.03125, %v7839_v31 }
 0x744   : > { %v11525_v59 = vpop.eup %11524  ;;  %v7918_v30 = vadd.f32 1e-05, %v7886_v15  ;;  %11118 = vmatprep.mubr.msk.f32.mxu1 %vm1254_vm0, %v14219_v8 }
 0x745   : > { %v11527_v5 = vpop.eup %11526  ;;  %v7917_v12 = vadd.f32 1e-05, %v7885_v14  ;;  %v7848_v63 = vpop.xlane.xlu1 %7847  ;;  %11119 = vmatmul.mubr.msk.f32.gmra.mrb[144].mxu1 %vm1254_vm0, %v14222_v7  ;;  %v14232_v51 = vmul.f32 %v11525_v59, %v14053_v47 }
 0x746   : > { %11536 = vrsqrt.f32 %v7918_v30  ;;  %v7888_v52 = vmul.f32 0.03125, %v7848_v63  ;;  %v7845_v61 = vpop.xlane.xlu0 %7844  ;;  %v14229_v43 = vmul.f32 %v11527_v5, %v14057_v54 }
 0x747   : > { %11538 = vrsqrt.f32 %v7917_v12  ;;  %v7887_v22 = vmul.f32 0.03125, %v7845_v61 }
 0x748   : > { %v11529_v2 = vpop.eup %11528  ;;  %v7920_v17 = vadd.f32 1e-05, %v7888_v52  ;;  %11121 = vmatprep.mubr.msk.f32.mxu1 %vm1254_vm0, %v14229_v43  ;;  %v8356_v52 = vld [vmem:[#allocation13 + $0x18] sm:$0xff] }
 0x749   : > { %v11531_v62 = vpop.eup %11530  ;;  %v7919_v16 = vadd.f32 1e-05, %v7887_v22  ;;  %v7854_v23 = vpop.xlane.xlu1 %7853  ;;  %11122 = vmatmul.mubr.msk.f32.gmra.mrb[146].mxu1 %vm1254_vm0, %v14232_v51  ;;  %v14242_v6 = vmul.f32 %v11529_v2, %v14065_v1 }
 0x74a   : > { %11540 = vrsqrt.f32 %v7920_v17  ;;  %v7890_v3 = vmul.f32 0.03125, %v7854_v23  ;;  %v7851_v54 = vpop.xlane.xlu0 %7850  ;;  %v14239_v46 = vmul.f32 %v11531_v62, %v14069_v4 }
 0x74b   : > { %11542 = vrsqrt.f32 %v7919_v16  ;;  %v7889_v47 = vmul.f32 0.03125, %v7851_v54 }
 0x74c   : > { %v11533_v32 = vpop.eup %11532  ;;  %v7922_v53 = vadd.f32 1e-05, %v7890_v3  ;;  %11124 = vmatprep.mubr.msk.f32.mxu1 %vm1254_vm0, %v14239_v46 }
 0x74d   : > { %v11535_v35 = vpop.eup %11534  ;;  %v7921_v42 = vadd.f32 1e-05, %v7889_v47  ;;  %v7860_v38 = vpop.xlane.xlu1 %7859  ;;  %11125 = vmatmul.mubr.msk.f32.gmra.mrb[148].mxu1 %vm1254_vm0, %v14242_v6  ;;  %v14252_v56 = vmul.f32 %v11533_v32, %v14077_v60 }
 0x74e   : > { %11544 = vrsqrt.f32 %v7922_v53  ;;  %v7892_v45 = vmul.f32 0.03125, %v7860_v38  ;;  %v7857_v4 = vpop.xlane.xlu0 %7856  ;;  %v14249_v11 = vmul.f32 %v11535_v35, %v14081_v48 }
 0x74f   : > { %11546 = vrsqrt.f32 %v7921_v42  ;;  %v7891_v1 = vmul.f32 0.03125, %v7857_v4 }
 0x750   : > { %v11537_v0 = vpop.eup %11536  ;;  %v7924_v41 = vadd.f32 1e-05, %v7892_v45  ;;  %11127 = vmatprep.mubr.msk.f32.mxu1 %vm1254_vm0, %v14249_v11 }
 0x751   : > { %v11539_v50 = vpop.eup %11538  ;;  %v7923_v15 = vadd.f32 1e-05, %v7891_v1  ;;  %11128 = vmatmul.mubr.msk.f32.gmra.mrb[150].mxu1 %vm1254_vm0, %v14252_v56  ;;  %v14262_v48 = vmul.f32 %v11537_v0, %v14089_v34 }
 0x752   : > { %11548 = vrsqrt.f32 %v7924_v41  ;;  %v14259_v31 = vmul.f32 %v11539_v50, %v14093_v55 }
 0x753   : > { %11550 = vrsqrt.f32 %v7923_v15 }
 0x754   : > { %v11541_v60 = vpop.eup %11540  ;;  %11130 = vmatprep.mubr.msk.f32.mxu1 %vm1254_vm0, %v14259_v31 }
 0x755   : > { %v11543_v14 = vpop.eup %11542  ;;  %11131 = vmatmul.mubr.msk.f32.gmra.mrb[152].mxu1 %vm1254_vm0, %v14262_v48  ;;  %v14272_v30 = vmul.f32 %v11541_v60, %v14101_v37 }
 0x756   : > { %v14269_v59 = vmul.f32 %v11543_v14, %v14105_v19  ;;  %v8355_v19 = vld [vmem:[#allocation13 + $0x10] sm:$0xff] }
 0x757   : > { %v11242_v22 = vpack.c.bf16 %v8356_v52, %v8355_v19 }
 0x758   : > { %v11545_v55 = vpop.eup %11544  ;;  %11133 = vmatprep.mubr.msk.f32.mxu1 %vm1254_vm0, %v14269_v59 }
 0x759   : > { %v11547_v34 = vpop.eup %11546  ;;  %11134 = vmatmul.mubr.msk.f32.gmra.mrb[154].mxu1 %vm1254_vm0, %v14272_v30  ;;  %v14282_v12 = vmul.f32 %v11545_v55, %v14113_v49  ;;  %11243 = vmatprep.subr.bf16.mxu0 %v11242_v22  ;;  %v14301_v49 = vld [vmem:[%s15168_s7] ss:$0 sm:$0xff] }
 0x75a   : > { %v14279_v5 = vmul.f32 %v11547_v34, %v14117_v28  ;;  %11245 = vmatpush3.bf16.msra.mxu0 %v11242_v22 }
 0x75c   : > { %v11549_v63 = vpop.eup %11548  ;;  %11136 = vmatprep.mubr.msk.f32.mxu1 %vm1254_vm0, %v14279_v5 }
 0x75d   : > { %v11551_v37 = vpop.eup %11550  ;;  %11137 = vmatmul.mubr.msk.f32.gmra.mrb[156].mxu1 %vm1254_vm0, %v14282_v12  ;;  %v14292_v28 = vmul.f32 %v11549_v63, %v14125_v26 }
 0x75e   : > { %v14289_v61 = vmul.f32 %v11551_v37, %v14129_v21 }
 0x760   : > { %11139 = vmatprep.mubr.msk.f32.mxu1 %vm1254_vm0, %v14289_v61 }
 0x761   : > { %11140 = vmatmul.mubr.msk.f32.gmra.mrb[158].mxu1 %vm1254_vm0, %v14292_v28 }
 0x7db   : > { %v11096_v2 = vpop.f32.mrb[128].mxu1 }
 0x7dc   : > { %v8168_v21 = vadd.f32 %v11096_v2, %v14301_v49  ;;  %v8162_v17 = vpop.f32.mrb[129].mxu1 }
 0x7dd   : > { %v8163_v26 = vadd.f32 %v14301_v49, %v8162_v17 }
 0x7de   : > { %v8322_v16 = vmax.f32 %v8168_v21, 0.0 }
 0x7df   : > { %v8321_v62 = vmax.f32 %v8163_v26, 0.0 }
 0x7e1   : > { %11150 = vmatprep.mubr.msk.f32.mxu0 %vm1254_vm0, %v8321_v62 }
 0x7e2   : > { %11151 = vmatmul.mubr.msk.f32.vlgmr.msra.gmra.mrb[128].mxu0 %vm1254_vm0, %v8322_v16 }
 0x7e3   : > { %v11099_v23 = vpop.f32.mrb[130].mxu1 }
 0x7e4   : > { %v8178_v3 = vadd.f32 %v11099_v23, %v14301_v49  ;;  %v8172_v54 = vpop.f32.mrb[131].mxu1 }
 0x7e5   : > { %v8173_v47 = vadd.f32 %v14301_v49, %v8172_v54 }
 0x7e6   : > { %v8324_v53 = vmax.f32 %v8178_v3, 0.0 }
 0x7e7   : > { %v8323_v32 = vmax.f32 %v8173_v47, 0.0 }
 0x7e9   : > { %11153 = vmatprep.mubr.msk.f32.mxu0 %vm1254_vm0, %v8323_v32 }
 0x7ea   : > { %11154 = vmatmul.mubr.msk.f32.gmra.mrb[130].mxu0 %vm1254_vm0, %v8324_v53 }
 0x7eb   : > { %v11102_v35 = vpop.f32.mrb[132].mxu1 }
 0x7ec   : > { %v8188_v42 = vadd.f32 %v11102_v35, %v14301_v49  ;;  %v8182_v38 = vpop.f32.mrb[133].mxu1 }
 0x7ed   : > { %v8183_v45 = vadd.f32 %v14301_v49, %v8182_v38 }
 0x7ee   : > { %v8326_v1 = vmax.f32 %v8188_v42, 0.0 }
 0x7ef   : > { %v8325_v4 = vmax.f32 %v8183_v45, 0.0 }
 0x7f1   : > { %11156 = vmatprep.mubr.msk.f32.mxu0 %vm1254_vm0, %v8325_v4 }
 0x7f2   : > { %11157 = vmatmul.mubr.msk.f32.gmra.mrb[132].mxu0 %vm1254_vm0, %v8326_v1 }
 0x7f3   : > { %v11105_v0 = vpop.f32.mrb[134].mxu1 }
 0x7f4   : > { %v8198_v41 = vadd.f32 %v11105_v0, %v14301_v49  ;;  %v8192_v50 = vpop.f32.mrb[135].mxu1 }
 0x7f5   : > { %v8193_v15 = vadd.f32 %v14301_v49, %v8192_v50 }
 0x7f6   : > { %v8328_v14 = vmax.f32 %v8198_v41, 0.0 }
 0x7f7   : > { %v8327_v60 = vmax.f32 %v8193_v15, 0.0 }
 0x7f9   : > { %11159 = vmatprep.mubr.msk.f32.mxu0 %vm1254_vm0, %v8327_v60 }
 0x7fa   : > { %11160 = vmatmul.mubr.msk.f32.gmra.mrb[134].mxu0 %vm1254_vm0, %v8328_v14 }
 0x7fb   : > { %v11108_v55 = vpop.f32.mrb[136].mxu1 }
 0x7fc   : > { %v8208_v34 = vadd.f32 %v11108_v55, %v14301_v49  ;;  %v8202_v63 = vpop.f32.mrb[137].mxu1 }
 0x7fd   : > { %v8203_v37 = vadd.f32 %v14301_v49, %v8202_v63 }
 0x7fe   : > { %v8330_v52 = vmax.f32 %v8208_v34, 0.0 }
 0x7ff   : > { %v8329_v19 = vmax.f32 %v8203_v37, 0.0 }
 0x801   : > { %11162 = vmatprep.mubr.msk.f32.mxu0 %vm1254_vm0, %v8329_v19 }
 0x802   : > { %11163 = vmatmul.mubr.msk.f32.gmra.mrb[136].mxu0 %vm1254_vm0, %v8330_v52 }
 0x803   : > { %v11111_v22 = vpop.f32.mrb[138].mxu1 }
 0x804   : > { %v8218_v2 = vadd.f32 %v11111_v22, %v14301_v49  ;;  %v8212_v21 = vpop.f32.mrb[139].mxu1 }
 0x805   : > { %v8213_v17 = vadd.f32 %v14301_v49, %v8212_v21 }
 0x806   : > { %v8332_v62 = vmax.f32 %v8218_v2, 0.0 }
 0x807   : > { %v8331_v26 = vmax.f32 %v8213_v17, 0.0 }
 0x809   : > { %11165 = vmatprep.mubr.msk.f32.mxu0 %vm1254_vm0, %v8331_v26 }
 0x80a   : > { %11166 = vmatmul.mubr.msk.f32.gmra.mrb[138].mxu0 %vm1254_vm0, %v8332_v62 }
 0x80b   : > { %v11114_v16 = vpop.f32.mrb[140].mxu1 }
 0x80c   : > { %v8228_v23 = vadd.f32 %v11114_v16, %v14301_v49  ;;  %v8222_v3 = vpop.f32.mrb[141].mxu1 }
 0x80d   : > { %v8223_v54 = vadd.f32 %v14301_v49, %v8222_v3 }
 0x80e   : > { %v8334_v32 = vmax.f32 %v8228_v23, 0.0 }
 0x80f   : > { %v8333_v47 = vmax.f32 %v8223_v54, 0.0 }
 0x811   : > { %11168 = vmatprep.mubr.msk.f32.mxu0 %vm1254_vm0, %v8333_v47 }
 0x812   : > { %11169 = vmatmul.mubr.msk.f32.gmra.mrb[140].mxu0 %vm1254_vm0, %v8334_v32 }
 0x814   : > { %v11117_v53 = vpop.f32.mrb[142].mxu1 }
 0x815   : > { %v8238_v35 = vadd.f32 %v11117_v53, %v14301_v49  ;;  %v8232_v42 = vpop.f32.mrb[143].mxu1 }
 0x816   : > { %v8233_v38 = vadd.f32 %v14301_v49, %v8232_v42 }
 0x817   : > { %v8336_v1 = vmax.f32 %v8238_v35, 0.0 }
 0x818   : > { %v8335_v45 = vmax.f32 %v8233_v38, 0.0  ;;  %v11120_v4 = vpop.f32.mrb[144].mxu1 }
 0x819   : > { %v8248_v0 = vadd.f32 %v11120_v4, %v14301_v49  ;;  %v8242_v41 = vpop.f32.mrb[145].mxu1 }
 0x81a   : > { %v8243_v50 = vadd.f32 %v14301_v49, %v8242_v41  ;;  %11171 = vmatprep.mubr.msk.f32.mxu0 %vm1254_vm0, %v8335_v45 }
 0x81b   : > { %11172 = vmatmul.mubr.msk.f32.gmra.mrb[142].mxu0 %vm1254_vm0, %v8336_v1  ;;  %v8338_v14 = vmax.f32 %v8248_v0, 0.0 }
 0x81c   : > { %v8337_v15 = vmax.f32 %v8243_v50, 0.0  ;;  %v11123_v60 = vpop.f32.mrb[146].mxu1 }
 0x81d   : > { %v8258_v55 = vadd.f32 %v11123_v60, %v14301_v49  ;;  %v8252_v34 = vpop.f32.mrb[147].mxu1 }
 0x81e   : > { %v8253_v63 = vadd.f32 %v14301_v49, %v8252_v34  ;;  %11174 = vmatprep.mubr.msk.f32.mxu0 %vm1254_vm0, %v8337_v15 }
 0x81f   : > { %11175 = vmatmul.mubr.msk.f32.gmra.mrb[144].mxu0 %vm1254_vm0, %v8338_v14  ;;  %v8340_v52 = vmax.f32 %v8258_v55, 0.0 }
 0x820   : > { %v8339_v37 = vmax.f32 %v8253_v63, 0.0  ;;  %v11126_v19 = vpop.f32.mrb[148].mxu1 }
 0x821   : > { %v8268_v22 = vadd.f32 %v11126_v19, %v14301_v49  ;;  %v8262_v2 = vpop.f32.mrb[149].mxu1 }
 0x822   : > { %v8263_v21 = vadd.f32 %v14301_v49, %v8262_v2  ;;  %11177 = vmatprep.mubr.msk.f32.mxu0 %vm1254_vm0, %v8339_v37 }
 0x823   : > { %11178 = vmatmul.mubr.msk.f32.gmra.mrb[146].mxu0 %vm1254_vm0, %v8340_v52  ;;  %v8342_v62 = vmax.f32 %v8268_v22, 0.0 }
 0x824   : > { %v8341_v17 = vmax.f32 %v8263_v21, 0.0  ;;  %v11129_v26 = vpop.f32.mrb[150].mxu1 }
 0x825   : > { %v8278_v16 = vadd.f32 %v11129_v26, %v14301_v49  ;;  %v8272_v23 = vpop.f32.mrb[151].mxu1  ;;  %v14370_v26 = vld [vmem:[%s15169_s4] ss:$0 sm:$0xff] }
 0x826   : > { %v8273_v3 = vadd.f32 %v14301_v49, %v8272_v23  ;;  %11180 = vmatprep.mubr.msk.f32.mxu0 %vm1254_vm0, %v8341_v17 }
 0x827   : > { %11181 = vmatmul.mubr.msk.f32.gmra.mrb[148].mxu0 %vm1254_vm0, %v8342_v62  ;;  %v8344_v32 = vmax.f32 %v8278_v16, 0.0 }
 0x828   : > { %v8343_v54 = vmax.f32 %v8273_v3, 0.0  ;;  %v11132_v47 = vpop.f32.mrb[152].mxu1 }
 0x829   : > { %v8288_v53 = vadd.f32 %v11132_v47, %v14301_v49  ;;  %v8282_v35 = vpop.f32.mrb[153].mxu1 }
 0x82a   : > { %v8283_v42 = vadd.f32 %v14301_v49, %v8282_v35  ;;  %11183 = vmatprep.mubr.msk.f32.mxu0 %vm1254_vm0, %v8343_v54 }
 0x82b   : > { %11184 = vmatmul.mubr.msk.f32.gmra.mrb[150].mxu0 %vm1254_vm0, %v8344_v32  ;;  %v8346_v4 = vmax.f32 %v8288_v53, 0.0 }
 0x82c   : > { %v8345_v38 = vmax.f32 %v8283_v42, 0.0  ;;  %v11135_v45 = vpop.f32.mrb[154].mxu1 }
 0x82d   : > { %v8298_v1 = vadd.f32 %v11135_v45, %v14301_v49  ;;  %v8292_v0 = vpop.f32.mrb[155].mxu1 }
 0x82e   : > { %v8293_v41 = vadd.f32 %v14301_v49, %v8292_v0  ;;  %11186 = vmatprep.mubr.msk.f32.mxu0 %vm1254_vm0, %v8345_v38 }
 0x82f   : > { %11187 = vmatmul.mubr.msk.f32.gmra.mrb[152].mxu0 %vm1254_vm0, %v8346_v4  ;;  %v8348_v60 = vmax.f32 %v8298_v1, 0.0 }
 0x830   : > { %v8347_v50 = vmax.f32 %v8293_v41, 0.0  ;;  %v11138_v15 = vpop.f32.mrb[156].mxu1 }
 0x831   : > { %v8308_v14 = vadd.f32 %v11138_v15, %v14301_v49  ;;  %v8302_v55 = vpop.f32.mrb[157].mxu1 }
 0x832   : > { %v8303_v34 = vadd.f32 %v14301_v49, %v8302_v55  ;;  %11189 = vmatprep.mubr.msk.f32.mxu0 %vm1254_vm0, %v8347_v50 }
 0x833   : > { %11190 = vmatmul.mubr.msk.f32.gmra.mrb[154].mxu0 %vm1254_vm0, %v8348_v60  ;;  %v8350_v19 = vmax.f32 %v8308_v14, 0.0 }
 0x834   : > { %v8349_v63 = vmax.f32 %v8303_v34, 0.0  ;;  %v11141_v37 = vpop.f32.mrb[158].mxu1 }
 0x835   : > { %v8318_v52 = vadd.f32 %v11141_v37, %v14301_v49  ;;  %v8312_v22 = vpop.f32.mrb[159].mxu1 }
 0x836   : > { %v8313_v2 = vadd.f32 %v14301_v49, %v8312_v22  ;;  %11192 = vmatprep.mubr.msk.f32.mxu0 %vm1254_vm0, %v8349_v63 }
 0x837   : > { %11193 = vmatmul.mubr.msk.f32.gmra.mrb[156].mxu0 %vm1254_vm0, %v8350_v19  ;;  %v8352_v17 = vmax.f32 %v8318_v52, 0.0 }
 0x838   : > { %v8351_v21 = vmax.f32 %v8313_v2, 0.0 }
 0x83a   : > { %11195 = vmatprep.mubr.msk.f32.mxu0 %vm1254_vm0, %v8351_v21 }
 0x83b   : > { %11196 = vmatmul.mubr.msk.f32.gmra.mrb[158].mxu0 %vm1254_vm0, %v8352_v17 }
 0x8b5   : > { %v11152_v62 = vpop.f32.mrb[128].mxu0 }
 0x8b6   : > { %v8532_v16 = vadd.f32 %v11152_v62, %v14370_v26  ;;  %v8526_v23 = vpop.f32.mrb[129].mxu0 }
 0x8b7   : > { %v8527_v49 = vadd.f32 %v14370_v26, %v8526_v23 }
 0x8b8   : > { %v14375_v3 = vadd.f32 %v8532_v16, %v14142_v29 }
 0x8b9   : > { %v14378_v54 = vadd.f32 %v8527_v49, %v14139_v33 }
 0x8ba   : > { %v8720_v47 = vsel %vm1254_vm0, %v14375_v3, 0.0 }
 0x8bb   : > { %8721 = vadd.xlane.f32.xlu1 %v8720_v47  ;;  %v8717_v32 = vsel %vm1254_vm0, %v14378_v54, 0.0 }
 0x8bc   : > { %8718 = vadd.xlane.f32.xlu0 %v8717_v32 }
 0x8bd   : > { %v11155_v53 = vpop.f32.mrb[130].mxu0 }
 0x8be   : > { %v8542_v35 = vadd.f32 %v11155_v53, %v14370_v26  ;;  %v8536_v42 = vpop.f32.mrb[131].mxu0 }
 0x8bf   : > { %v8537_v38 = vadd.f32 %v14370_v26, %v8536_v42 }
 0x8c0   : > { %v14387_v29 = vadd.f32 %v8542_v35, %v14152_v24 }
 0x8c1   : > { %v14390_v33 = vadd.f32 %v8537_v38, %v14149_v57 }
 0x8c2   : > { %v8726_v45 = vsel %vm1254_vm0, %v14387_v29, 0.0 }
 0x8c3   : > { %8727 = vadd.xlane.f32.xlu1 %v8726_v45  ;;  %v8723_v4 = vsel %vm1254_vm0, %v14390_v33, 0.0 }
 0x8c4   : > { %8724 = vadd.xlane.f32.xlu0 %v8723_v4 }
 0x8c5   : > { %v11158_v1 = vpop.f32.mrb[132].mxu0 }
 0x8c6   : > { %v8552_v0 = vadd.f32 %v11158_v1, %v14370_v26  ;;  %v8546_v41 = vpop.f32.mrb[133].mxu0 }
 0x8c7   : > { %v8547_v50 = vadd.f32 %v14370_v26, %v8546_v41 }
 0x8c8   : > { %v14399_v24 = vadd.f32 %v8552_v0, %v14162_v44 }
 0x8c9   : > { %v14402_v57 = vadd.f32 %v8547_v50, %v14159_v58 }
 0x8ca   : > { %v8732_v15 = vsel %vm1254_vm0, %v14399_v24, 0.0 }
 0x8cb   : > { %8733 = vadd.xlane.f32.xlu1 %v8732_v15  ;;  %v8729_v60 = vsel %vm1254_vm0, %v14402_v57, 0.0 }
 0x8cc   : > { %8730 = vadd.xlane.f32.xlu0 %v8729_v60 }
 0x8cd   : > { %v11161_v14 = vpop.f32.mrb[134].mxu0 }
 0x8ce   : > { %v8562_v55 = vadd.f32 %v11161_v14, %v14370_v26  ;;  %v8556_v34 = vpop.f32.mrb[135].mxu0 }
 0x8cf   : > { %v8557_v63 = vadd.f32 %v14370_v26, %v8556_v34 }
 0x8d0   : > { %v14411_v44 = vadd.f32 %v8562_v55, %v14172_v20 }
 0x8d1   : > { %v14414_v58 = vadd.f32 %v8557_v63, %v14169_v25 }
 0x8d2   : > { %v8738_v37 = vsel %vm1254_vm0, %v14411_v44, 0.0 }
 0x8d3   : > { %8739 = vadd.xlane.f32.xlu1 %v8738_v37  ;;  %v8735_v19 = vsel %vm1254_vm0, %v14414_v58, 0.0 }
 0x8d4   : > { %8736 = vadd.xlane.f32.xlu0 %v8735_v19 }
 0x8d5   : > { %v11164_v52 = vpop.f32.mrb[136].mxu0 }
 0x8d6   : > { %v8572_v22 = vadd.f32 %v11164_v52, %v14370_v26  ;;  %v8566_v2 = vpop.f32.mrb[137].mxu0 }
 0x8d7   : > { %v8567_v21 = vadd.f32 %v14370_v26, %v8566_v2 }
 0x8d8   : > { %v14423_v20 = vadd.f32 %v8572_v22, %v14182_v36 }
 0x8d9   : > { %v14426_v25 = vadd.f32 %v8567_v21, %v14179_v27 }
 0x8da   : > { %v8744_v17 = vsel %vm1254_vm0, %v14423_v20, 0.0 }
 0x8db   : > { %8745 = vadd.xlane.f32.xlu1 %v8744_v17  ;;  %v8741_v62 = vsel %vm1254_vm0, %v14426_v25, 0.0 }
 0x8dc   : > { %8742 = vadd.xlane.f32.xlu0 %v8741_v62 }
 0x8dd   : > { %v11167_v16 = vpop.f32.mrb[138].mxu0 }
 0x8de   : > { %v8582_v23 = vadd.f32 %v11167_v16, %v14370_v26  ;;  %v8576_v49 = vpop.f32.mrb[139].mxu0 }
 0x8df   : > { %v8577_v47 = vadd.f32 %v14370_v26, %v8576_v49 }
 0x8e0   : > { %v14435_v36 = vadd.f32 %v8582_v23, %v14192_v39 }
 0x8e1   : > { %v14438_v27 = vadd.f32 %v8577_v47, %v14189_v18 }
 0x8e2   : > { %v8750_v32 = vsel %vm1254_vm0, %v14435_v36, 0.0 }
 0x8e3   : > { %8751 = vadd.xlane.f32.xlu1 %v8750_v32  ;;  %v8747_v53 = vsel %vm1254_vm0, %v14438_v27, 0.0 }
 0x8e4   : > { %8748 = vadd.xlane.f32.xlu0 %v8747_v53 }
 0x8e5   : > { %v11170_v35 = vpop.f32.mrb[140].mxu0 }
 0x8e6   : > { %v8592_v42 = vadd.f32 %v11170_v35, %v14370_v26  ;;  %v8586_v38 = vpop.f32.mrb[141].mxu0 }
 0x8e7   : > { %v8587_v45 = vadd.f32 %v14370_v26, %v8586_v38 }
 0x8e8   : > { %v14447_v39 = vadd.f32 %v8592_v42, %v14202_v40 }
 0x8e9   : > { %v14450_v18 = vadd.f32 %v8587_v45, %v14199_v10 }
 0x8ea   : > { %v8756_v4 = vsel %vm1254_vm0, %v14447_v39, 0.0 }
 0x8eb   : > { %8757 = vadd.xlane.f32.xlu1 %v8756_v4  ;;  %v8753_v1 = vsel %vm1254_vm0, %v14450_v18, 0.0 }
 0x8ec   : > { %8754 = vadd.xlane.f32.xlu0 %v8753_v1 }
 0x8ee   : > { %v11173_v0 = vpop.f32.mrb[142].mxu0 }
 0x8ef   : > { %v8602_v41 = vadd.f32 %v11173_v0, %v14370_v26  ;;  %v8596_v50 = vpop.f32.mrb[143].mxu0 }
 0x8f0   : > { %v8597_v15 = vadd.f32 %v14370_v26, %v8596_v50 }
 0x8f1   : > { %v14459_v40 = vadd.f32 %v8602_v41, %v14212_v9 }
 0x8f2   : > { %v14462_v10 = vadd.f32 %v8597_v15, %v14209_v13  ;;  %v11176_v60 = vpop.f32.mrb[144].mxu0 }
 0x8f3   : > { %v8612_v14 = vadd.f32 %v11176_v60, %v14370_v26  ;;  %v8606_v55 = vpop.f32.mrb[145].mxu0  ;;  %v8762_v34 = vsel %vm1254_vm0, %v14459_v40, 0.0 }
 0x8f4   : > { %v8607_v63 = vadd.f32 %v14370_v26, %v8606_v55  ;;  %8763 = vadd.xlane.f32.xlu1 %v8762_v34  ;;  %v8759_v37 = vsel %vm1254_vm0, %v14462_v10, 0.0 }
 0x8f5   : > { %v14471_v19 = vadd.f32 %v8612_v14, %v14222_v7  ;;  %8760 = vadd.xlane.f32.xlu0 %v8759_v37 }
 0x8f6   : > { %v14474_v13 = vadd.f32 %v8607_v63, %v14219_v8  ;;  %v11179_v9 = vpop.f32.mrb[146].mxu0 }
 0x8f7   : > { %v8622_v52 = vadd.f32 %v11179_v9, %v14370_v26  ;;  %v8616_v22 = vpop.f32.mrb[147].mxu0  ;;  %v8768_v2 = vsel %vm1254_vm0, %v14471_v19, 0.0 }
 0x8f8   : > { %v8617_v21 = vadd.f32 %v14370_v26, %v8616_v22  ;;  %8769 = vadd.xlane.f32.xlu1 %v8768_v2  ;;  %v8765_v17 = vsel %vm1254_vm0, %v14474_v13, 0.0 }
 0x8f9   : > { %v14483_v7 = vadd.f32 %v8622_v52, %v14232_v51  ;;  %8766 = vadd.xlane.f32.xlu0 %v8765_v17 }
 0x8fa   : > { %v14486_v8 = vadd.f32 %v8617_v21, %v14229_v43  ;;  %v11182_v62 = vpop.f32.mrb[148].mxu0 }
 0x8fb   : > { %v8632_v16 = vadd.f32 %v11182_v62, %v14370_v26  ;;  %v8626_v23 = vpop.f32.mrb[149].mxu0  ;;  %v8774_v49 = vsel %vm1254_vm0, %v14483_v7, 0.0 }
 0x8fc   : > { %v8627_v47 = vadd.f32 %v14370_v26, %v8626_v23  ;;  %8775 = vadd.xlane.f32.xlu1 %v8774_v49  ;;  %v8771_v32 = vsel %vm1254_vm0, %v14486_v8, 0.0 }
 0x8fd   : > { %v14495_v51 = vadd.f32 %v8632_v16, %v14242_v6  ;;  %8772 = vadd.xlane.f32.xlu0 %v8771_v32 }
 0x8fe   : > { %v14498_v43 = vadd.f32 %v8627_v47, %v14239_v46  ;;  %v11185_v53 = vpop.f32.mrb[150].mxu0 }
 0x8ff   : > { %v8642_v35 = vadd.f32 %v11185_v53, %v14370_v26  ;;  %v8636_v42 = vpop.f32.mrb[151].mxu0  ;;  %v8780_v38 = vsel %vm1254_vm0, %v14495_v51, 0.0 }
 0x900   : > { %v8637_v45 = vadd.f32 %v14370_v26, %v8636_v42  ;;  %8781 = vadd.xlane.f32.xlu1 %v8780_v38  ;;  %v8777_v4 = vsel %vm1254_vm0, %v14498_v43, 0.0 }
 0x901   : > { %v14507_v6 = vadd.f32 %v8642_v35, %v14252_v56  ;;  %8778 = vadd.xlane.f32.xlu0 %v8777_v4 }
 0x902   : > { %v14510_v46 = vadd.f32 %v8637_v45, %v14249_v11  ;;  %v11188_v1 = vpop.f32.mrb[152].mxu0 }
 0x903   : > { %v8652_v0 = vadd.f32 %v11188_v1, %v14370_v26  ;;  %v8646_v41 = vpop.f32.mrb[153].mxu0  ;;  %v8786_v50 = vsel %vm1254_vm0, %v14507_v6, 0.0 }
 0x904   : > { %v8647_v15 = vadd.f32 %v14370_v26, %v8646_v41  ;;  %8787 = vadd.xlane.f32.xlu1 %v8786_v50  ;;  %v8783_v60 = vsel %vm1254_vm0, %v14510_v46, 0.0 }
 0x905   : > { %v14519_v56 = vadd.f32 %v8652_v0, %v14262_v48  ;;  %8784 = vadd.xlane.f32.xlu0 %v8783_v60 }
 0x906   : > { %v14522_v11 = vadd.f32 %v8647_v15, %v14259_v31  ;;  %v11191_v14 = vpop.f32.mrb[154].mxu0 }
 0x907   : > { %v8662_v55 = vadd.f32 %v11191_v14, %v14370_v26  ;;  %v8656_v34 = vpop.f32.mrb[155].mxu0  ;;  %v8792_v63 = vsel %vm1254_vm0, %v14519_v56, 0.0 }
 0x908   : > { %v8657_v37 = vadd.f32 %v14370_v26, %v8656_v34  ;;  %8793 = vadd.xlane.f32.xlu1 %v8792_v63  ;;  %v8789_v9 = vsel %vm1254_vm0, %v14522_v11, 0.0 }
 0x909   : > { %v14531_v48 = vadd.f32 %v8662_v55, %v14272_v30  ;;  %8790 = vadd.xlane.f32.xlu0 %v8789_v9 }
 0x90a   : > { %v14534_v31 = vadd.f32 %v8657_v37, %v14269_v59  ;;  %v11194_v52 = vpop.f32.mrb[156].mxu0 }
 0x90b   : > { %v8672_v22 = vadd.f32 %v11194_v52, %v14370_v26  ;;  %v8666_v2 = vpop.f32.mrb[157].mxu0  ;;  %v8798_v21 = vsel %vm1254_vm0, %v14531_v48, 0.0 }
 0x90c   : > { %v8667_v17 = vadd.f32 %v14370_v26, %v8666_v2  ;;  %8799 = vadd.xlane.f32.xlu1 %v8798_v21  ;;  %v8795_v62 = vsel %vm1254_vm0, %v14534_v31, 0.0 }
 0x90d   : > { %v14543_v30 = vadd.f32 %v8672_v22, %v14282_v12  ;;  %8796 = vadd.xlane.f32.xlu0 %v8795_v62 }
 0x90e   : > { %v14546_v59 = vadd.f32 %v8667_v17, %v14279_v5  ;;  %v11197_v16 = vpop.f32.mrb[158].mxu0 }
 0x90f   : > { %v8682_v23 = vadd.f32 %v11197_v16, %v14370_v26  ;;  %v8676_v49 = vpop.f32.mrb[159].mxu0  ;;  %v8804_v47 = vsel %vm1254_vm0, %v14543_v30, 0.0 }
 0x910   : > { %v8677_v32 = vadd.f32 %v14370_v26, %v8676_v49  ;;  %8805 = vadd.xlane.f32.xlu1 %v8804_v47  ;;  %v8801_v53 = vsel %vm1254_vm0, %v14546_v59, 0.0 }
 0x911   : > { %v14555_v12 = vadd.f32 %v8682_v23, %v14292_v28  ;;  %8802 = vadd.xlane.f32.xlu0 %v8801_v53 }
 0x912   : > { %v14558_v5 = vadd.f32 %v8677_v32, %v14289_v61 }
 0x913   : > { %v8810_v35 = vsel %vm1254_vm0, %v14555_v12, 0.0 }
 0x914   : > { %8811 = vadd.xlane.f32.xlu1 %v8810_v35  ;;  %v8807_v42 = vsel %vm1254_vm0, %v14558_v5, 0.0 }
 0x915   : > { %8808 = vadd.xlane.f32.xlu0 %v8807_v42 }
 0x948   : > { %v8722_v26 = vpop.xlane.xlu1 %8721 }
 0x949   : > { %v8814_v38 = vmul.f32 0.03125, %v8722_v26  ;;  %v8719_v45 = vpop.xlane.xlu0 %8718 }
 0x94a   : > { %v8813_v4 = vmul.f32 0.03125, %v8719_v45 }
 0x94b   : > { %v14565_v1 = vsub.f32 %v14375_v3, %v8814_v38 }
 0x94c   : > { %v14568_v28 = vsub.f32 %v14378_v54, %v8813_v4 }
 0x94d   : > { %v8878_v61 = vmul.f32 %v14565_v1, %v14565_v1 }
 0x94e   : > { %v8877_v0 = vmul.f32 %v14568_v28, %v14568_v28 }
 0x94f   : > { %v8912_v41 = vsel %vm1254_vm0, %v8878_v61, 0.0 }
 0x950   : > { %v8728_v50 = vpop.xlane.xlu1 %8727  ;;  %8913 = vadd.xlane.f32.xlu1 %v8912_v41  ;;  %v8909_v15 = vsel %vm1254_vm0, %v8877_v0, 0.0 }
 0x951   : > { %v8816_v60 = vmul.f32 0.03125, %v8728_v50  ;;  %8910 = vadd.xlane.f32.xlu0 %v8909_v15  ;;  %v8725_v14 = vpop.xlane.xlu0 %8724 }
 0x952   : > { %v8815_v3 = vmul.f32 0.03125, %v8725_v14 }
 0x953   : > { %v14577_v55 = vsub.f32 %v14387_v29, %v8816_v60 }
 0x954   : > { %v14580_v54 = vsub.f32 %v14390_v33, %v8815_v3 }
 0x955   : > { %v8880_v34 = vmul.f32 %v14577_v55, %v14577_v55 }
 0x956   : > { %v8879_v63 = vmul.f32 %v14580_v54, %v14580_v54 }
 0x957   : > { %v8918_v37 = vsel %vm1254_vm0, %v8880_v34, 0.0 }
 0x958   : > { %v8734_v9 = vpop.xlane.xlu1 %8733  ;;  %8919 = vadd.xlane.f32.xlu1 %v8918_v37  ;;  %v8915_v52 = vsel %vm1254_vm0, %v8879_v63, 0.0 }
 0x959   : > { %v8818_v22 = vmul.f32 0.03125, %v8734_v9  ;;  %8916 = vadd.xlane.f32.xlu0 %v8915_v52  ;;  %v8731_v2 = vpop.xlane.xlu0 %8730 }
 0x95a   : > { %v8817_v29 = vmul.f32 0.03125, %v8731_v2 }
 0x95b   : > { %v14589_v21 = vsub.f32 %v14399_v24, %v8818_v22 }
 0x95c   : > { %v14592_v33 = vsub.f32 %v14402_v57, %v8817_v29 }
 0x95d   : > { %v8882_v17 = vmul.f32 %v14589_v21, %v14589_v21 }
 0x95e   : > { %v8881_v62 = vmul.f32 %v14592_v33, %v14592_v33 }
 0x95f   : > { %v8924_v16 = vsel %vm1254_vm0, %v8882_v17, 0.0 }
 0x960   : > { %v8740_v23 = vpop.xlane.xlu1 %8739  ;;  %8925 = vadd.xlane.f32.xlu1 %v8924_v16  ;;  %v8921_v49 = vsel %vm1254_vm0, %v8881_v62, 0.0 }
 0x961   : > { %v8820_v47 = vmul.f32 0.03125, %v8740_v23  ;;  %8922 = vadd.xlane.f32.xlu0 %v8921_v49  ;;  %v8737_v32 = vpop.xlane.xlu0 %8736 }
 0x962   : > { %v8819_v24 = vmul.f32 0.03125, %v8737_v32 }
 0x963   : > { %v14601_v53 = vsub.f32 %v14411_v44, %v8820_v47 }
 0x964   : > { %v14604_v57 = vsub.f32 %v14414_v58, %v8819_v24 }
 0x965   : > { %v8884_v35 = vmul.f32 %v14601_v53, %v14601_v53 }
 0x966   : > { %v8883_v42 = vmul.f32 %v14604_v57, %v14604_v57 }
 0x967   : > { %v8930_v26 = vsel %vm1254_vm0, %v8884_v35, 0.0 }
 0x968   : > { %v8746_v38 = vpop.xlane.xlu1 %8745  ;;  %8931 = vadd.xlane.f32.xlu1 %v8930_v26  ;;  %v8927_v45 = vsel %vm1254_vm0, %v8883_v42, 0.0 }
 0x969   : > { %v8822_v4 = vmul.f32 0.03125, %v8746_v38  ;;  %8928 = vadd.xlane.f32.xlu0 %v8927_v45  ;;  %v8743_v61 = vpop.xlane.xlu0 %8742 }
 0x96a   : > { %v8821_v44 = vmul.f32 0.03125, %v8743_v61 }
 0x96b   : > { %v14613_v0 = vsub.f32 %v14423_v20, %v8822_v4 }
 0x96c   : > { %v14616_v58 = vsub.f32 %v14426_v25, %v8821_v44 }
 0x96d   : > { %v8886_v41 = vmul.f32 %v14613_v0, %v14613_v0 }
 0x96e   : > { %v8885_v50 = vmul.f32 %v14616_v58, %v14616_v58 }
 0x96f   : > { %v8936_v15 = vsel %vm1254_vm0, %v8886_v41, 0.0 }
 0x970   : > { %v8752_v60 = vpop.xlane.xlu1 %8751  ;;  %8937 = vadd.xlane.f32.xlu1 %v8936_v15  ;;  %v8933_v14 = vsel %vm1254_vm0, %v8885_v50, 0.0 }
 0x971   : > { %v8824_v3 = vmul.f32 0.03125, %v8752_v60  ;;  %8934 = vadd.xlane.f32.xlu0 %v8933_v14  ;;  %v8749_v34 = vpop.xlane.xlu0 %8748 }
 0x972   : > { %v8823_v20 = vmul.f32 0.03125, %v8749_v34 }
 0x973   : > { %v14625_v63 = vsub.f32 %v14435_v36, %v8824_v3 }
 0x974   : > { %v14628_v25 = vsub.f32 %v14438_v27, %v8823_v20 }
 0x975   : > { %v8888_v37 = vmul.f32 %v14625_v63, %v14625_v63 }
 0x976   : > { %v8887_v9 = vmul.f32 %v14628_v25, %v14628_v25 }
 0x977   : > { %v8942_v52 = vsel %vm1254_vm0, %v8888_v37, 0.0 }
 0x978   : > { %v8758_v22 = vpop.xlane.xlu1 %8757  ;;  %8943 = vadd.xlane.f32.xlu1 %v8942_v52  ;;  %v8939_v2 = vsel %vm1254_vm0, %v8887_v9, 0.0 }
 0x979   : > { %v8826_v29 = vmul.f32 0.03125, %v8758_v22  ;;  %8940 = vadd.xlane.f32.xlu0 %v8939_v2  ;;  %v8755_v17 = vpop.xlane.xlu0 %8754 }
 0x97a   : > { %v8825_v36 = vmul.f32 0.03125, %v8755_v17 }
 0x97b   : > { %v14637_v62 = vsub.f32 %v14447_v39, %v8826_v29 }
 0x97c   : > { %v14640_v27 = vsub.f32 %v14450_v18, %v8825_v36 }
 0x97d   : > { %v8890_v16 = vmul.f32 %v14637_v62, %v14637_v62 }
 0x97e   : > { %v8889_v23 = vmul.f32 %v14640_v27, %v14640_v27 }
 0x97f   : > { %v8948_v49 = vsel %vm1254_vm0, %v8890_v16, 0.0 }
 0x980   : > { %8949 = vadd.xlane.f32.xlu1 %v8948_v49  ;;  %v8945_v47 = vsel %vm1254_vm0, %v8889_v23, 0.0 }
 0x981   : > { %v8764_v32 = vpop.xlane.xlu1 %8763  ;;  %8946 = vadd.xlane.f32.xlu0 %v8945_v47 }
 0x982   : > { %v8828_v24 = vmul.f32 0.03125, %v8764_v32  ;;  %v8761_v35 = vpop.xlane.xlu0 %8760 }
 0x983   : > { %v8827_v39 = vmul.f32 0.03125, %v8761_v35 }
 0x984   : > { %v14649_v42 = vsub.f32 %v14459_v40, %v8828_v24 }
 0x985   : > { %v14652_v18 = vsub.f32 %v14462_v10, %v8827_v39  ;;  %v8770_v26 = vpop.xlane.xlu1 %8769 }
 0x986   : > { %v8830_v38 = vmul.f32 0.03125, %v8770_v26  ;;  %v8767_v45 = vpop.xlane.xlu0 %8766  ;;  %v8892_v4 = vmul.f32 %v14649_v42, %v14649_v42 }
 0x987   : > { %v8829_v61 = vmul.f32 0.03125, %v8767_v45  ;;  %v8891_v44 = vmul.f32 %v14652_v18, %v14652_v18 }
 0x988   : > { %v14659_v41 = vsub.f32 %v14471_v19, %v8830_v38  ;;  %v8954_v50 = vsel %vm1254_vm0, %v8892_v4, 0.0 }
 0x989   : > { %v14663_v40 = vsub.f32 %v14474_v13, %v8829_v61  ;;  %v8776_v10 = vpop.xlane.xlu1 %8775  ;;  %8955 = vadd.xlane.f32.xlu1 %v8954_v50  ;;  %v8951_v15 = vsel %vm1254_vm0, %v8891_v44, 0.0 }
 0x98a   : > { %v8832_v60 = vmul.f32 0.03125, %v8776_v10  ;;  %8952 = vadd.xlane.f32.xlu0 %v8951_v15  ;;  %v8773_v14 = vpop.xlane.xlu0 %8772  ;;  %v8894_v3 = vmul.f32 %v14659_v41, %v14659_v41 }
 0x98b   : > { %v8831_v34 = vmul.f32 0.03125, %v8773_v14  ;;  %v8893_v19 = vmul.f32 %v14663_v40, %v14663_v40 }
 0x98c   : > { %v14671_v20 = vsub.f32 %v14483_v7, %v8832_v60  ;;  %v8960_v13 = vsel %vm1254_vm0, %v8894_v3, 0.0 }
 0x98d   : > { %v14675_v37 = vsub.f32 %v14486_v8, %v8831_v34  ;;  %v8782_v9 = vpop.xlane.xlu1 %8781  ;;  %8961 = vadd.xlane.f32.xlu1 %v8960_v13  ;;  %v8957_v52 = vsel %vm1254_vm0, %v8893_v19, 0.0 }
 0x98e   : > { %v8834_v22 = vmul.f32 0.03125, %v8782_v9  ;;  %8958 = vadd.xlane.f32.xlu0 %v8957_v52  ;;  %v8779_v2 = vpop.xlane.xlu0 %8778  ;;  %v8896_v29 = vmul.f32 %v14671_v20, %v14671_v20 }
 0x98f   : > { %v8833_v17 = vmul.f32 0.03125, %v8779_v2  ;;  %v8895_v7 = vmul.f32 %v14675_v37, %v14675_v37 }
 0x990   : > { %v14683_v36 = vsub.f32 %v14495_v51, %v8834_v22  ;;  %v8966_v8 = vsel %vm1254_vm0, %v8896_v29, 0.0 }
 0x991   : > { %v14687_v16 = vsub.f32 %v14498_v43, %v8833_v17  ;;  %v8788_v23 = vpop.xlane.xlu1 %8787  ;;  %8967 = vadd.xlane.f32.xlu1 %v8966_v8  ;;  %v8963_v49 = vsel %vm1254_vm0, %v8895_v7, 0.0 }
 0x992   : > { %v8836_v47 = vmul.f32 0.03125, %v8788_v23  ;;  %8964 = vadd.xlane.f32.xlu0 %v8963_v49  ;;  %v8785_v32 = vpop.xlane.xlu0 %8784  ;;  %v8898_v24 = vmul.f32 %v14683_v36, %v14683_v36 }
 0x993   : > { %v8835_v35 = vmul.f32 0.03125, %v8785_v32  ;;  %v8897_v51 = vmul.f32 %v14687_v16, %v14687_v16 }
 0x994   : > { %v14695_v39 = vsub.f32 %v14507_v6, %v8836_v47  ;;  %v8972_v43 = vsel %vm1254_vm0, %v8898_v24, 0.0 }
 0x995   : > { %v14699_v26 = vsub.f32 %v14510_v46, %v8835_v35  ;;  %v8794_v38 = vpop.xlane.xlu1 %8793  ;;  %8973 = vadd.xlane.f32.xlu1 %v8972_v43  ;;  %v8969_v45 = vsel %vm1254_vm0, %v8897_v51, 0.0 }
 0x996   : > { %v8838_v4 = vmul.f32 0.03125, %v8794_v38  ;;  %8970 = vadd.xlane.f32.xlu0 %v8969_v45  ;;  %v8791_v61 = vpop.xlane.xlu0 %8790  ;;  %v8900_v44 = vmul.f32 %v14695_v39, %v14695_v39 }
 0x997   : > { %v8837_v50 = vmul.f32 0.03125, %v8791_v61  ;;  %v8899_v6 = vmul.f32 %v14699_v26, %v14699_v26 }
 0x998   : > { %v14707_v10 = vsub.f32 %v14519_v56, %v8838_v4  ;;  %v8978_v46 = vsel %vm1254_vm0, %v8900_v44, 0.0 }
 0x999   : > { %v14711_v15 = vsub.f32 %v14522_v11, %v8837_v50  ;;  %v8800_v60 = vpop.xlane.xlu1 %8799  ;;  %8979 = vadd.xlane.f32.xlu1 %v8978_v46  ;;  %v8975_v14 = vsel %vm1254_vm0, %v8899_v6, 0.0 }
 0x99a   : > { %v8840_v3 = vmul.f32 0.03125, %v8800_v60  ;;  %8976 = vadd.xlane.f32.xlu0 %v8975_v14  ;;  %v8797_v34 = vpop.xlane.xlu0 %8796  ;;  %v8902_v19 = vmul.f32 %v14707_v10, %v14707_v10 }
 0x99b   : > { %v8839_v13 = vmul.f32 0.03125, %v8797_v34  ;;  %v8901_v56 = vmul.f32 %v14711_v15, %v14711_v15 }
 0x99c   : > { %v14719_v9 = vsub.f32 %v14531_v48, %v8840_v3  ;;  %v8984_v11 = vsel %vm1254_vm0, %v8902_v19, 0.0 }
 0x99d   : > { %v14723_v52 = vsub.f32 %v14534_v31, %v8839_v13  ;;  %v8806_v22 = vpop.xlane.xlu1 %8805  ;;  %8985 = vadd.xlane.f32.xlu1 %v8984_v11  ;;  %v8981_v2 = vsel %vm1254_vm0, %v8901_v56, 0.0 }
 0x99e   : > { %v8842_v29 = vmul.f32 0.03125, %v8806_v22  ;;  %8982 = vadd.xlane.f32.xlu0 %v8981_v2  ;;  %v8803_v17 = vpop.xlane.xlu0 %8802  ;;  %v8904_v7 = vmul.f32 %v14719_v9, %v14719_v9 }
 0x99f   : > { %v8841_v8 = vmul.f32 0.03125, %v8803_v17  ;;  %v8903_v48 = vmul.f32 %v14723_v52, %v14723_v52 }
 0x9a0   : > { %v14731_v23 = vsub.f32 %v14543_v30, %v8842_v29  ;;  %v8990_v31 = vsel %vm1254_vm0, %v8904_v7, 0.0 }
 0x9a1   : > { %v14735_v49 = vsub.f32 %v14546_v59, %v8841_v8  ;;  %8991 = vadd.xlane.f32.xlu1 %v8990_v31  ;;  %v8812_v47 = vpop.xlane.xlu1 %8811  ;;  %v8987_v32 = vsel %vm1254_vm0, %v8903_v48, 0.0 }
 0x9a2   : > { %v8844_v24 = vmul.f32 0.03125, %v8812_v47  ;;  %8988 = vadd.xlane.f32.xlu0 %v8987_v32  ;;  %v8809_v35 = vpop.xlane.xlu0 %8808  ;;  %v8906_v51 = vmul.f32 %v14731_v23, %v14731_v23 }
 0x9a3   : > { %v8843_v43 = vmul.f32 0.03125, %v8809_v35  ;;  %v8905_v30 = vmul.f32 %v14735_v49, %v14735_v49 }
 0x9a4   : > { %v14743_v38 = vsub.f32 %v14555_v12, %v8844_v24  ;;  %v8996_v59 = vsel %vm1254_vm0, %v8906_v51, 0.0 }
 0x9a5   : > { %v14747_v45 = vsub.f32 %v14558_v5, %v8843_v43  ;;  %8997 = vadd.xlane.f32.xlu1 %v8996_v59  ;;  %v8993_v4 = vsel %vm1254_vm0, %v8905_v30, 0.0 }
 0x9a6   : > { %8994 = vadd.xlane.f32.xlu0 %v8993_v4  ;;  %v8908_v61 = vmul.f32 %v14743_v38, %v14743_v38 }
 0x9a7   : > { %v8907_v44 = vmul.f32 %v14747_v45, %v14747_v45 }
 0x9a8   : > { %v9002_v50 = vsel %vm1254_vm0, %v8908_v61, 0.0 }
 0x9a9   : > { %9003 = vadd.xlane.f32.xlu1 %v9002_v50  ;;  %v8999_v12 = vsel %vm1254_vm0, %v8907_v44, 0.0 }
 0x9aa   : > { %9000 = vadd.xlane.f32.xlu0 %v8999_v12 }
 0x9dd   : > { %v8914_v6 = vpop.xlane.xlu1 %8913 }
 0x9de   : > { %v8911_v46 = vpop.xlane.xlu0 %8910  ;;  %v9006_v34 = vmul.f32 0.03125, %v8914_v6 }
 0x9df   : > { %v9005_v19 = vmul.f32 0.03125, %v8911_v46 }
 0x9e0   : > { %v9038_v11 = vadd.f32 1e-05, %v9006_v34 }
 0x9e1   : > { %v9037_v22 = vadd.f32 1e-05, %v9005_v19 }
 0x9e5   : > { %v8920_v5 = vpop.xlane.xlu1 %8919 }
 0x9e6   : > { %v9008_v60 = vmul.f32 0.03125, %v8920_v5  ;;  %v8917_v14 = vpop.xlane.xlu0 %8916 }
 0x9e7   : > { %v9007_v3 = vmul.f32 0.03125, %v8917_v14 }
 0x9e8   : > { %v9040_v13 = vadd.f32 1e-05, %v9008_v60 }
 0x9e9   : > { %v9039_v56 = vadd.f32 1e-05, %v9007_v3 }
 0x9ea   : > { %11552 = vrsqrt.f32 %v9040_v13 }
 0x9eb   : > { %11554 = vrsqrt.f32 %v9039_v56 }
 0x9ec   : > { %11556 = vrsqrt.f32 %v9038_v11  ;;  %v15170_v11 = vld [vmem:[#allocation22_spill] sm:$0xff] }
 0x9ed   : > { %v8926_v2 = vpop.xlane.xlu1 %8925  ;;  %11558 = vrsqrt.f32 %v9037_v22 }
 0x9ee   : > { %v8923_v29 = vpop.xlane.xlu0 %8922  ;;  %v9010_v17 = vmul.f32 0.03125, %v8926_v2 }
 0x9ef   : > { %v9009_v7 = vmul.f32 0.03125, %v8923_v29 }
 0x9f0   : > { %v9042_v8 = vadd.f32 1e-05, %v9010_v17 }
 0x9f1   : > { %v9041_v48 = vadd.f32 1e-05, %v9009_v7 }
 0x9f2   : > { %11560 = vrsqrt.f32 %v9042_v8 }
 0x9f3   : > { %11562 = vrsqrt.f32 %v9041_v48 }
 0x9f4   : > { %v11553_v35 = vpop.eup %11552 }
 0x9f5   : > { %v8932_v31 = vpop.xlane.xlu1 %8931  ;;  %v11555_v43 = vpop.eup %11554  ;;  %v9104_v61 = vmul.f32 %v11553_v35, %v14577_v55 }
 0x9f6   : > { %v9012_v47 = vmul.f32 0.03125, %v8932_v31  ;;  %v8929_v32 = vpop.xlane.xlu0 %8928  ;;  %v11557_v59 = vpop.eup %11556  ;;  %v9103_v44 = vmul.f32 %v11555_v43, %v14580_v54 }
 0x9f7   : > { %v9011_v24 = vmul.f32 0.03125, %v8929_v32  ;;  %v11559_v4 = vpop.eup %11558  ;;  %v9102_v50 = vmul.f32 %v11557_v59, %v14565_v1 }
 0x9f8   : > { %v9044_v51 = vadd.f32 1e-05, %v9012_v47  ;;  %v9101_v12 = vmul.f32 %v11559_v4, %v14568_v28 }
 0x9f9   : > { %v9043_v30 = vadd.f32 1e-05, %v9011_v24  ;;  %v9149_v46 = vcombine.low %v9102_v50, %v9104_v61  ;;  %v9150_v60 = vcombine.high %v9102_v50, %v9104_v61 }
 0x9fa   : > { %11564 = vrsqrt.f32 %v9044_v51  ;;  %v9133_v5 = vcombine.low %v9101_v12, %v9103_v44  ;;  %v9134_v14 = vcombine.high %v9101_v12, %v9103_v44 }
 0x9fb   : > { %11566 = vrsqrt.f32 %v9043_v30  ;;  %v9157_v22 = vrot.slane %v9149_v46, %v15170_v11  ;;  %v9164_v54 = vrot.slane %v9150_v60, %v15170_v11 }
 0x9fc   : > { %v11561_v3 = vpop.eup %11560  ;;  %v9141_v55 = vrot.slane %v9133_v5, %v15170_v11  ;;  %v9148_v1 = vrot.slane %v9134_v14, %v15170_v11 }
 0x9fd   : > { %v8938_v6 = vpop.xlane.xlu1 %8937  ;;  %v11563_v13 = vpop.eup %11562  ;;  %v9106_v28 = vmul.f32 %v11561_v3, %v14589_v21  ;;  %v15171_v3 = vld [vmem:[#allocation23_spill] sm:$0xff] }
 0x9fe   : > { %v9014_v34 = vmul.f32 0.03125, %v8938_v6  ;;  %v8935_v19 = vpop.xlane.xlu0 %8934  ;;  %v9105_v7 = vmul.f32 %v11563_v13, %v14592_v33  ;;  %v9197_v43 = vcombine.low %v9141_v55, %v9157_v22  ;;  %v9198_v61 = vcombine.high %v9141_v55, %v9157_v22 }
 0x9ff   : > { %v9013_v35 = vmul.f32 0.03125, %v8935_v19  ;;  %v9213_v50 = vcombine.low %v9148_v1, %v9164_v54  ;;  %v9214_v12 = vcombine.high %v9148_v1, %v9164_v54 }
 0xa00   : > { %v9046_v48 = vadd.f32 1e-05, %v9014_v34  ;;  %v9205_v34 = vrot.slane %v9197_v43, %v15171_v3  ;;  %v9212_v19 = vrot.slane %v9198_v61, %v15171_v3 }
 0xa01   : > { %v9045_v6 = vadd.f32 1e-05, %v9013_v35  ;;  %v9221_v54 = vrot.slane %v9213_v50, %v15171_v3  ;;  %v9228_v1 = vrot.slane %v9214_v12, %v15171_v3 }
 0xa02   : > { %11568 = vrsqrt.f32 %v9046_v48 }
 0xa04   : > { %v11565_v56 = vpop.eup %11564 }
 0xa05   : > { %v11567_v2 = vpop.eup %11566  ;;  %v9108_v29 = vmul.f32 %v11565_v56, %v14601_v53  ;;  %v8944_v17 = vpop.xlane.xlu1 %8943 }
 0xa06   : > { %v9107_v8 = vmul.f32 %v11567_v2, %v14604_v57  ;;  %v9016_v31 = vmul.f32 0.03125, %v8944_v17  ;;  %v8941_v47 = vpop.xlane.xlu0 %8940 }
 0xa07   : > { %v9181_v32 = vcombine.low %v9106_v28, %v9108_v29  ;;  %v9182_v24 = vcombine.high %v9106_v28, %v9108_v29  ;;  %v9015_v51 = vmul.f32 0.03125, %v8941_v47 }
 0xa08   : > { %v9165_v30 = vcombine.low %v9105_v7, %v9107_v8  ;;  %v9166_v59 = vcombine.high %v9105_v7, %v9107_v8  ;;  %v9048_v4 = vadd.f32 1e-05, %v9016_v31 }
 0xa09   : > { %v9189_v21 = vrot.slane %v9181_v32, %v15170_v11  ;;  %v9196_v53 = vrot.slane %v9182_v24, %v15170_v11  ;;  %v9047_v44 = vadd.f32 1e-05, %v9015_v51 }
 0xa0a   : > { %v9173_v33 = vrot.slane %v9165_v30, %v15170_v11  ;;  %v9180_v57 = vrot.slane %v9166_v59, %v15170_v11  ;;  %11570 = vrsqrt.f32 %v9048_v4 }
 0xa0b   : > { %11572 = vrsqrt.f32 %v9047_v44 }
 0xa0c   : > { %v9229_v46 = vcombine.low %v9173_v33, %v9189_v21  ;;  %v9230_v5 = vcombine.high %v9173_v33, %v9189_v21  ;;  %v9245_v60 = vcombine.low %v9180_v57, %v9196_v53  ;;  %v9246_v14 = vcombine.high %v9180_v57, %v9196_v53  ;;  %v11569_v51 = vpop.eup %11568 }
 0xa0d   : > { %v8950_v13 = vpop.xlane.xlu1 %8949  ;;  %11574 = vrsqrt.f32 %v9045_v6 }
 0xa0e   : > { %v9237_v56 = vrot.slane %v9229_v46, %v15171_v3  ;;  %v9244_v22 = vrot.slane %v9230_v5, %v15171_v3  ;;  %v9253_v55 = vrot.slane %v9245_v60, %v15171_v3  ;;  %v9260_v2 = vrot.slane %v9246_v14, %v15171_v3  ;;  %v8947_v29 = vpop.xlane.xlu0 %8946 }
 0xa0f   : > { %v9018_v28 = vmul.f32 0.03125, %v8950_v13  ;;  %v9017_v35 = vmul.f32 0.03125, %v8947_v29  ;;  %v9110_v14 = vmul.f32 %v11569_v51, %v14613_v0 }
 0xa10   : > { %v9261_v17 = vcombine.low %v9205_v34, %v9237_v56  ;;  %v9262_v7 = vcombine.high %v9205_v34, %v9237_v56  ;;  %v9263_v8 = vcombine.low %v9212_v19, %v9244_v22  ;;  %v9264_v48 = vcombine.high %v9212_v19, %v9244_v22 }
 0xa11   : > { %v9265_v31 = vcombine.low %v9221_v54, %v9253_v55  ;;  %v9266_v47 = vcombine.high %v9221_v54, %v9253_v55  ;;  %v9267_v32 = vcombine.low %v9228_v1, %v9260_v2  ;;  %v9268_v24 = vcombine.high %v9228_v1, %v9260_v2 }
 0xa12   : > { %9677 = vst.msk [vmem:[%s14781_s28] sm:$0xff] %vm1254_vm0, %v9261_v17  ;;  %9679 = vst.msk [vmem:[%s14781_s28 + $0x10] sm:$0xff] %vm1254_vm0, %v9262_v7  ;;  %v9050_v30 = vadd.f32 1e-05, %v9018_v28  ;;  %v9049_v59 = vadd.f32 1e-05, %v9017_v35 }
 0xa13   : > { %9681 = vst.msk [vmem:[%s14781_s28 + $0x20] sm:$0xff] %vm1254_vm0, %v9263_v8  ;;  %9683 = vst.msk [vmem:[%s14781_s28 + $0x30] sm:$0xff] %vm1254_vm0, %v9264_v48 }
 0xa14   : > { %9685 = vst.msk [vmem:[%s14781_s28 + $0x40] sm:$0xff] %vm1254_vm0, %v9265_v31  ;;  %9687 = vst.msk [vmem:[%s14781_s28 + $0x50] sm:$0xff] %vm1254_vm0, %v9266_v47  ;;  %v11571_v43 = vpop.eup %11570  ;;  %11576 = vrsqrt.f32 %v9050_v30 }
 0xa15   : > { %9689 = vst.msk [vmem:[%s14781_s28 + $0x60] sm:$0xff] %vm1254_vm0, %v9267_v32  ;;  %9691 = vst.msk [vmem:[%s14781_s28 + $0x70] sm:$0xff] %vm1254_vm0, %v9268_v24  ;;  %v11573_v61 = vpop.eup %11572  ;;  %v9112_v50 = vmul.f32 %v11571_v43, %v14625_v63  ;;  %11578 = vrsqrt.f32 %v9049_v59 }
 0xa16   : > { %v8956_v4 = vpop.xlane.xlu1 %8955  ;;  %v9111_v12 = vmul.f32 %v11573_v61, %v14628_v25 }
 0xa17   : > { %v9020_v21 = vmul.f32 0.03125, %v8956_v4  ;;  %v8953_v53 = vpop.xlane.xlu0 %8952  ;;  %v11575_v33 = vpop.eup %11574  ;;  %v9285_v56 = vcombine.low %v9110_v14, %v9112_v50  ;;  %v9286_v2 = vcombine.high %v9110_v14, %v9112_v50 }
 0xa18   : > { %v9019_v44 = vmul.f32 0.03125, %v8953_v53  ;;  %v9109_v34 = vmul.f32 %v11575_v33, %v14616_v58 }
 0xa19   : > { %v9052_v57 = vadd.f32 1e-05, %v9020_v21  ;;  %v9293_v17 = vrot.slane %v9285_v56, %v15170_v11  ;;  %v9300_v48 = vrot.slane %v9286_v2, %v15170_v11 }
 0xa1a   : > { %v9051_v6 = vadd.f32 1e-05, %v9019_v44  ;;  %v8962_v46 = vpop.xlane.xlu1 %8961  ;;  %v9269_v22 = vcombine.low %v9109_v34, %v9111_v12  ;;  %v9270_v63 = vcombine.high %v9109_v34, %v9111_v12 }
 0xa1b   : > { %11580 = vrsqrt.f32 %v9052_v57  ;;  %v9022_v5 = vmul.f32 0.03125, %v8962_v46  ;;  %v8959_v60 = vpop.xlane.xlu0 %8958 }
 0xa1c   : > { %11582 = vrsqrt.f32 %v9051_v6  ;;  %v9021_v13 = vmul.f32 0.03125, %v8959_v60  ;;  %v9277_v0 = vrot.slane %v9269_v22, %v15170_v11  ;;  %v9284_v31 = vrot.slane %v9270_v63, %v15170_v11 }
 0xa1d   : > { %v9054_v19 = vadd.f32 1e-05, %v9022_v5 }
 0xa1e   : > { %v8968_v55 = vpop.xlane.xlu1 %8967  ;;  %v9053_v54 = vadd.f32 1e-05, %v9021_v13  ;;  %v11577_v8 = vpop.eup %11576  ;;  %v9333_v30 = vcombine.low %v9277_v0, %v9293_v17  ;;  %v9334_v44 = vcombine.high %v9277_v0, %v9293_v17  ;;  %v9349_v33 = vcombine.low %v9284_v31, %v9300_v48 }
 0xa1f   : > { %v9024_v25 = vmul.f32 0.03125, %v8968_v55  ;;  %v8965_v1 = vpop.xlane.xlu0 %8964  ;;  %11584 = vrsqrt.f32 %v9054_v19  ;;  %v11579_v24 = vpop.eup %11578  ;;  %v9114_v59 = vmul.f32 %v11577_v8, %v14637_v62  ;;  %v9350_v60 = vcombine.high %v9284_v31, %v9300_v48 }
 0xa20   : > { %v9023_v28 = vmul.f32 0.03125, %v8965_v1  ;;  %11586 = vrsqrt.f32 %v9053_v54  ;;  %v9113_v57 = vmul.f32 %v11579_v24, %v14640_v27  ;;  %v9341_v27 = vrot.slane %v9333_v30, %v15171_v3 }
 0xa21   : > { %v9056_v29 = vadd.f32 1e-05, %v9024_v25  ;;  %v9357_v54 = vrot.slane %v9349_v33, %v15171_v3 }
 0xa22   : > { %v9055_v58 = vadd.f32 1e-05, %v9023_v28  ;;  %v8974_v7 = vpop.xlane.xlu1 %8973 }
 0xa23   : > { %11588 = vrsqrt.f32 %v9056_v29  ;;  %v9026_v47 = vmul.f32 0.03125, %v8974_v7  ;;  %v8971_v32 = vpop.xlane.xlu0 %8970  ;;  %v9364_v29 = vrot.slane %v9350_v60, %v15171_v3 }
 0xa24   : > { %11590 = vrsqrt.f32 %v9055_v58  ;;  %v9025_v35 = vmul.f32 0.03125, %v8971_v32 }
 0xa25   : > { %v11581_v51 = vpop.eup %11580  ;;  %v9058_v43 = vadd.f32 1e-05, %v9026_v47 }
 0xa26   : > { %v9116_v4 = vmul.f32 %v11581_v51, %v14649_v42  ;;  %v9057_v61 = vadd.f32 1e-05, %v9025_v35  ;;  %v8980_v21 = vpop.xlane.xlu1 %8979  ;;  %v11583_v53 = vpop.eup %11582 }
 0xa27   : > { %v9028_v50 = vmul.f32 0.03125, %v8980_v21  ;;  %v8977_v12 = vpop.xlane.xlu0 %8976  ;;  %v9115_v5 = vmul.f32 %v11583_v53, %v14652_v18  ;;  %11592 = vrsqrt.f32 %v9058_v43  ;;  %v9348_v18 = vrot.slane %v9334_v44, %v15171_v3 }
 0xa28   : > { %v9317_v6 = vcombine.low %v9114_v59, %v9116_v4  ;;  %v9318_v46 = vcombine.high %v9114_v59, %v9116_v4  ;;  %11594 = vrsqrt.f32 %v9057_v61  ;;  %v9027_v62 = vmul.f32 0.03125, %v8977_v12 }
 0xa29   : > { %v9060_v14 = vadd.f32 1e-05, %v9028_v50  ;;  %v11585_v34 = vpop.eup %11584  ;;  %v9301_v13 = vcombine.low %v9113_v57, %v9115_v5  ;;  %v9302_v56 = vcombine.high %v9113_v57, %v9115_v5 }
 0xa2a   : > { %v9325_v42 = vrot.slane %v9317_v6, %v15170_v11  ;;  %v9332_v19 = vrot.slane %v9318_v46, %v15170_v11  ;;  %v8986_v22 = vpop.xlane.xlu1 %8985  ;;  %v9059_v55 = vadd.f32 1e-05, %v9027_v62  ;;  %v11587_v63 = vpop.eup %11586  ;;  %v9118_v17 = vmul.f32 %v11585_v34, %v14659_v41 }
 0xa2b   : > { %11596 = vrsqrt.f32 %v9060_v14  ;;  %v8983_v2 = vpop.xlane.xlu0 %8982  ;;  %v9309_v25 = vrot.slane %v9301_v13, %v15170_v11  ;;  %v9316_v1 = vrot.slane %v9302_v56, %v15170_v11  ;;  %v9030_v0 = vmul.f32 0.03125, %v8986_v22 }
 0xa2c   : > { %11598 = vrsqrt.f32 %v9059_v55  ;;  %v9117_v32 = vmul.f32 %v11587_v63, %v14663_v40  ;;  %v9029_v51 = vmul.f32 0.03125, %v8983_v2 }
 0xa2d   : > { %v11589_v28 = vpop.eup %11588  ;;  %v9365_v7 = vcombine.low %v9309_v25, %v9325_v42  ;;  %v9366_v8 = vcombine.high %v9309_v25, %v9325_v42  ;;  %v9381_v48 = vcombine.low %v9316_v1, %v9332_v19  ;;  %v9382_v31 = vcombine.high %v9316_v1, %v9332_v19 }
 0xa2e   : > { %v11591_v58 = vpop.eup %11590  ;;  %v8992_v47 = vpop.xlane.xlu1 %8991  ;;  %v9120_v24 = vmul.f32 %v11589_v28, %v14671_v20  ;;  %v9062_v40 = vadd.f32 1e-05, %v9030_v0  ;;  %v9061_v19 = vadd.f32 1e-05, %v9029_v51 }
 0xa2f   : > { %v9119_v35 = vmul.f32 %v11591_v58, %v14675_v37  ;;  %v8989_v43 = vpop.xlane.xlu0 %8988  ;;  %v9373_v30 = vrot.slane %v9365_v7, %v15171_v3  ;;  %v9380_v41 = vrot.slane %v9366_v8, %v15171_v3  ;;  %v9389_v59 = vrot.slane %v9381_v48, %v15171_v3 }
 0xa30   : > { %v9396_v4 = vrot.slane %v9382_v31, %v15171_v3  ;;  %v9421_v61 = vcombine.low %v9118_v17, %v9120_v24  ;;  %v9422_v21 = vcombine.high %v9118_v17, %v9120_v24  ;;  %v9032_v56 = vmul.f32 0.03125, %v8992_v47 }
 0xa31   : > { %v9405_v53 = vcombine.low %v9117_v32, %v9119_v35  ;;  %v11593_v20 = vpop.eup %11592  ;;  %v9397_v37 = vcombine.low %v9341_v27, %v9373_v30  ;;  %v9398_v44 = vcombine.high %v9341_v27, %v9373_v30  ;;  %v9399_v33 = vcombine.low %v9348_v18, %v9380_v41 }
 0xa32   : > { %v9400_v57 = vcombine.high %v9348_v18, %v9380_v41  ;;  %v11595_v50 = vpop.eup %11594  ;;  %v9401_v12 = vcombine.low %v9357_v54, %v9389_v59  ;;  %v9402_v6 = vcombine.high %v9357_v54, %v9389_v59  ;;  %v9403_v46 = vcombine.low %v9364_v29, %v9396_v4  ;;  %v8998_v60 = vpop.xlane.xlu1 %8997 }
 0xa33   : > { %v9404_v5 = vcombine.high %v9364_v29, %v9396_v4  ;;  %v8995_v14 = vpop.xlane.xlu0 %8994  ;;  %9678 = vst.msk [vmem:[%s14781_s28 + $0x8] sm:$0xff] %vm1254_vm0, %v9397_v37  ;;  %9680 = vst.msk [vmem:[%s14781_s28 + $0x18] sm:$0xff] %vm1254_vm0, %v9398_v44  ;;  %v9429_v62 = vrot.slane %v9421_v61, %v15170_v11  ;;  %v9406_v34 = vcombine.high %v9117_v32, %v9119_v35  ;;  %11600 = vrsqrt.f32 %v9062_v40 }
 0xa34   : > { %9682 = vst.msk [vmem:[%s14781_s28 + $0x28] sm:$0xff] %vm1254_vm0, %v9399_v33  ;;  %9684 = vst.msk [vmem:[%s14781_s28 + $0x38] sm:$0xff] %vm1254_vm0, %v9400_v57  ;;  %v9413_v42 = vrot.slane %v9405_v53, %v15170_v11  ;;  %v9436_v22 = vrot.slane %v9422_v21, %v15170_v11  ;;  %v9122_v27 = vmul.f32 %v11593_v20, %v14683_v36  ;;  %v9064_v63 = vadd.f32 1e-05, %v9032_v56 }
 0xa35   : > { %v11597_v13 = vpop.eup %11596  ;;  %9686 = vst.msk [vmem:[%s14781_s28 + $0x48] sm:$0xff] %vm1254_vm0, %v9401_v12  ;;  %9688 = vst.msk [vmem:[%s14781_s28 + $0x58] sm:$0xff] %vm1254_vm0, %v9402_v6  ;;  %v9031_v18 = vmul.f32 0.03125, %v8989_v43  ;;  %v9034_v54 = vmul.f32 0.03125, %v8998_v60  ;;  %v9420_v25 = vrot.slane %v9406_v34, %v15170_v11  ;;  %v9121_v28 = vmul.f32 %v11595_v50, %v14687_v16 }
 0xa36   : > { %9690 = vst.msk [vmem:[%s14781_s28 + $0x68] sm:$0xff] %vm1254_vm0, %v9403_v46  ;;  %9692 = vst.msk [vmem:[%s14781_s28 + $0x78] sm:$0xff] %vm1254_vm0, %v9404_v5  ;;  %v11599_v55 = vpop.eup %11598  ;;  %v9124_v2 = vmul.f32 %v11597_v13, %v14695_v39  ;;  %v9469_v1 = vcombine.low %v9413_v42, %v9429_v62  ;;  %11602 = vrsqrt.f32 %v9061_v19  ;;  %v9004_v58 = vpop.xlane.xlu1 %9003  ;;  %v9470_v7 = vcombine.high %v9413_v42, %v9429_v62 }
 0xa37   : > { %v9123_v0 = vmul.f32 %v11599_v55, %v14699_v26  ;;  %11604 = vrsqrt.f32 %v9064_v63  ;;  %v9001_v36 = vpop.xlane.xlu0 %9000  ;;  %v9063_v8 = vadd.f32 1e-05, %v9031_v18  ;;  %v9066_v48 = vadd.f32 1e-05, %v9034_v54 }
 0xa38   : > { %v9453_v29 = vcombine.low %v9122_v27, %v9124_v2  ;;  %v9454_v17 = vcombine.high %v9122_v27, %v9124_v2  ;;  %v9033_v39 = vmul.f32 0.03125, %v8995_v14  ;;  %v9036_v35 = vmul.f32 0.03125, %v9004_v58 }
 0xa39   : > { %v9437_v32 = vcombine.low %v9121_v28, %v9123_v0  ;;  %v9438_v24 = vcombine.high %v9121_v28, %v9123_v0  ;;  %11606 = vrsqrt.f32 %v9063_v8  ;;  %v9035_v51 = vmul.f32 0.03125, %v9001_v36 }
 0xa3a   : > { %v9461_v31 = vrot.slane %v9453_v29, %v15170_v11  ;;  %v9468_v47 = vrot.slane %v9454_v17, %v15170_v11  ;;  %v9065_v16 = vadd.f32 1e-05, %v9033_v39  ;;  %v9485_v43 = vcombine.low %v9420_v25, %v9436_v22 }
 0xa3b   : > { %v9445_v26 = vrot.slane %v9437_v32, %v15170_v11  ;;  %v9452_v30 = vrot.slane %v9438_v24, %v15170_v11  ;;  %11608 = vrsqrt.f32 %v9066_v48  ;;  %v9486_v41 = vcombine.high %v9420_v25, %v9436_v22 }
 0xa3c   : > { %11610 = vrsqrt.f32 %v9065_v16  ;;  %v9068_v59 = vadd.f32 1e-05, %v9036_v35  ;;  %v9067_v4 = vadd.f32 1e-05, %v9035_v51  ;;  %v9477_v37 = vrot.slane %v9469_v1, %v15171_v3 }
 0xa3d   : > { %v9501_v61 = vcombine.low %v9445_v26, %v9461_v31  ;;  %v9502_v21 = vcombine.high %v9445_v26, %v9461_v31  ;;  %v9517_v53 = vcombine.low %v9452_v30, %v9468_v47  ;;  %v9518_v40 = vcombine.high %v9452_v30, %v9468_v47  ;;  %v11601_v20 = vpop.eup %11600 }
 0xa3e   : > { %v9484_v44 = vrot.slane %v9470_v7, %v15171_v3  ;;  %11612 = vrsqrt.f32 %v9068_v59  ;;  %v9493_v46 = vrot.slane %v9485_v43, %v15171_v3  ;;  %v9500_v5 = vrot.slane %v9486_v41, %v15171_v3 }
 0xa3f   : > { %v9509_v33 = vrot.slane %v9501_v61, %v15171_v3  ;;  %v9516_v57 = vrot.slane %v9502_v21, %v15171_v3  ;;  %v9525_v50 = vrot.slane %v9517_v53, %v15171_v3  ;;  %v9532_v12 = vrot.slane %v9518_v40, %v15171_v3 }
 0xa40   : > { %v11603_v6 = vpop.eup %11602  ;;  %11614 = vrsqrt.f32 %v9067_v4  ;;  %v9126_v63 = vmul.f32 %v11601_v20, %v14707_v10 }
 0xa41   : > { %v11605_v60 = vpop.eup %11604  ;;  %v9533_v14 = vcombine.low %v9477_v37, %v9509_v33  ;;  %v9534_v62 = vcombine.high %v9477_v37, %v9509_v33  ;;  %v9535_v34 = vcombine.low %v9484_v44, %v9516_v57  ;;  %v9536_v42 = vcombine.high %v9484_v44, %v9516_v57 }
 0xa42   : > { %v9537_v19 = vcombine.low %v9493_v46, %v9525_v50  ;;  %v9538_v13 = vcombine.high %v9493_v46, %v9525_v50  ;;  %v9539_v56 = vcombine.low %v9500_v5, %v9532_v12  ;;  %v9540_v22 = vcombine.high %v9500_v5, %v9532_v12 }
 0xa43   : > { %9693 = vst.msk [vmem:[%s14781_s28 + $0x80] sm:$0xff] %vm1254_vm0, %v9533_v14  ;;  %9695 = vst.msk [vmem:[%s14781_s28 + $0x90] sm:$0xff] %vm1254_vm0, %v9534_v62  ;;  %v9128_v27 = vmul.f32 %v11605_v60, %v14719_v9  ;;  %v11607_v55 = vpop.eup %11606  ;;  %v9125_v18 = vmul.f32 %v11603_v6, %v14711_v15 }
 0xa44   : > { %9697 = vst.msk [vmem:[%s14781_s28 + $0xa0] sm:$0xff] %vm1254_vm0, %v9535_v34  ;;  %9699 = vst.msk [vmem:[%s14781_s28 + $0xb0] sm:$0xff] %vm1254_vm0, %v9536_v42  ;;  %v9127_v54 = vmul.f32 %v11607_v55, %v14723_v52 }
 0xa45   : > { %9701 = vst.msk [vmem:[%s14781_s28 + $0xc0] sm:$0xff] %vm1254_vm0, %v9537_v19  ;;  %9703 = vst.msk [vmem:[%s14781_s28 + $0xd0] sm:$0xff] %vm1254_vm0, %v9538_v13  ;;  %v11609_v2 = vpop.eup %11608  ;;  %v9557_v1 = vcombine.low %v9126_v63, %v9128_v27  ;;  %v9558_v29 = vcombine.high %v9126_v63, %v9128_v27 }
 0xa46   : > { %9705 = vst.msk [vmem:[%s14781_s28 + $0xe0] sm:$0xff] %vm1254_vm0, %v9539_v56  ;;  %9707 = vst.msk [vmem:[%s14781_s28 + $0xf0] sm:$0xff] %vm1254_vm0, %v9540_v22  ;;  %v11611_v25 = vpop.eup %11610  ;;  %v9541_v28 = vcombine.low %v9125_v18, %v9127_v54  ;;  %v9542_v17 = vcombine.high %v9125_v18, %v9127_v54  ;;  %v9130_v36 = vmul.f32 %v11609_v2, %v14731_v23 }
 0xa47   : > { %v9565_v7 = vrot.slane %v9557_v1, %v15170_v11  ;;  %v9129_v10 = vmul.f32 %v11611_v25, %v14735_v49  ;;  %v9572_v39 = vrot.slane %v9558_v29, %v15170_v11 }
 0xa48   : > { %v11613_v9 = vpop.eup %11612  ;;  %v9549_v8 = vrot.slane %v9541_v28, %v15170_v11  ;;  %v9556_v31 = vrot.slane %v9542_v17, %v15170_v11 }
 0xa49   : > { %v9132_v0 = vmul.f32 %v11613_v9, %v14743_v38 }
 0xa4a   : > { %v11615_v58 = vpop.eup %11614  ;;  %v9605_v24 = vcombine.low %v9549_v8, %v9565_v7  ;;  %v9606_v16 = vcombine.high %v9549_v8, %v9565_v7  ;;  %v9621_v51 = vcombine.low %v9556_v31, %v9572_v39 }
 0xa4b   : > { %v9589_v15 = vcombine.low %v9130_v36, %v9132_v0  ;;  %v9590_v48 = vcombine.high %v9130_v36, %v9132_v0  ;;  %v9131_v52 = vmul.f32 %v11615_v58, %v14747_v45  ;;  %v9622_v45 = vcombine.high %v9556_v31, %v9572_v39 }
 0xa4c   : > { %v9613_v59 = vrot.slane %v9605_v24, %v15171_v3  ;;  %v9620_v4 = vrot.slane %v9606_v16, %v15171_v3  ;;  %v9629_v40 = vrot.slane %v9621_v51, %v15171_v3 }
 0xa4d   : > { %v9597_v47 = vrot.slane %v9589_v15, %v15170_v11  ;;  %v9604_v38 = vrot.slane %v9590_v48, %v15170_v11  ;;  %v9573_v23 = vcombine.low %v9129_v10, %v9131_v52  ;;  %v9574_v32 = vcombine.high %v9129_v10, %v9131_v52 }
 0xa4e   : > { %v9636_v20 = vrot.slane %v9622_v45, %v15171_v3 }
 0xa4f   : > { %v9581_v49 = vrot.slane %v9573_v23, %v15170_v11  ;;  %v9588_v35 = vrot.slane %v9574_v32, %v15170_v11 }
 0xa51   : > { %v9637_v43 = vcombine.low %v9581_v49, %v9597_v47  ;;  %v9638_v26 = vcombine.high %v9581_v49, %v9597_v47  ;;  %v9653_v30 = vcombine.low %v9588_v35, %v9604_v38  ;;  %v9654_v41 = vcombine.high %v9588_v35, %v9604_v38 }
 0xa53   : > { %v9645_v61 = vrot.slane %v9637_v43, %v15171_v3  ;;  %v9652_v21 = vrot.slane %v9638_v26, %v15171_v3  ;;  %v9661_v11 = vrot.slane %v9653_v30, %v15171_v3  ;;  %v9668_v53 = vrot.slane %v9654_v41, %v15171_v3 }
 0xa55   : > { %v9669_v37 = vcombine.low %v9613_v59, %v9645_v61  ;;  %v9670_v44 = vcombine.high %v9613_v59, %v9645_v61  ;;  %v9671_v33 = vcombine.low %v9620_v4, %v9652_v21  ;;  %v9672_v57 = vcombine.high %v9620_v4, %v9652_v21 }
 0xa56   : > { %v9673_v50 = vcombine.low %v9629_v40, %v9661_v11  ;;  %v9674_v3 = vcombine.high %v9629_v40, %v9661_v11  ;;  %v9675_v12 = vcombine.low %v9636_v20, %v9668_v53  ;;  %v9676_v6 = vcombine.high %v9636_v20, %v9668_v53 }
 0xa57   : > { %9694 = vst.msk [vmem:[%s14781_s28 + $0x88] sm:$0xff] %vm1254_vm0, %v9669_v37  ;;  %9696 = vst.msk [vmem:[%s14781_s28 + $0x98] sm:$0xff] %vm1254_vm0, %v9670_v44 }
 0xa58   : > { %9698 = vst.msk [vmem:[%s14781_s28 + $0xa8] sm:$0xff] %vm1254_vm0, %v9671_v33  ;;  %9700 = vst.msk [vmem:[%s14781_s28 + $0xb8] sm:$0xff] %vm1254_vm0, %v9672_v57 }
 0xa59   : > { %9702 = vst.msk [vmem:[%s14781_s28 + $0xc8] sm:$0xff] %vm1254_vm0, %v9673_v50  ;;  %9704 = vst.msk [vmem:[%s14781_s28 + $0xd8] sm:$0xff] %vm1254_vm0, %v9674_v3 }
 0xa5a   : > { %9706 = vst.msk [vmem:[%s14781_s28 + $0xe8] sm:$0xff] %vm1254_vm0, %v9675_v12  ;;  %9708 = vst.msk [vmem:[%s14781_s28 + $0xf8] sm:$0xff] %vm1254_vm0, %v9676_v6 }
 0xa5b   : > { %11829 = shalt.err (!%p11826_p8)
}
 0xa5c   : > { %s11830_s11 = scalar_lea.hbm %s14908_s23, 4096  ;;  %s11834_s7 = scalar_lea.hbm %s15172_s10, 8192 }
 0xa5d   : > { %p11831_p11 = scmp.ne.s32.totalorder %s14908_s23, %s11830_s11  ;;  %p11835_p1 = scmp.lt.u32.totalorder %s14908_s23, %s15172_s10 }
 0xa5e   : > { %p11836_p13 = scmp.lt.u32.totalorder %s11834_s7, %s11830_s11  ;;  %p11838_p7 = scmp.lt.u32.totalorder %s11830_s11, %s14908_s23 }
 0xa5f   : > { %p11832_p3 = pnand %p11831_p11, %p15173_p2 }
 0xa60   : > { %p11837_p0 = por %p11836_p13, %p11835_p1 }
 0xa61   : > { %p11833_p12 = pneg %p11832_p3 }
 0xa62   : > { %p11839_p6 = por %p11838_p7, %p11837_p0 }
 0xa64   : > { %p11840_p10 = pnand %p11839_p6, %p11833_p12 }
 0xa66   : > { %11843 = shalt.err (!%p11840_p10)
}
 0xa67   : > { %s11914_s4 = smov 128   ;;  %s11915_s28 = smov 8  }
 0xa68   : > { %11274 = dma.vmem_to_hbm [thread:$0]  (%p15173_p2), %s14910_s8, 4096, %s14908_s23, %s9710_s2, %s11914_s4, %s11914_s4, %s11915_s28  }
 0xa69 PF: > { %s9739_s18 = sand.u32 1, %s11886_s29   ;;  %p15174_p5 = scmp.ne.s32.totalorder %s15057_s17, 0 }
 0xa6a   : > { %p15175_p9 = scmp.ge.s32.totalorder %s11898_s16, 2  ;;  %s9740_s19 = scalar_lea.sflag [#allocation4], %s9739_s18 }
 0xa6c   : > { %p11300_p4 = pnand %p15175_p9, %p15174_p5 }
 0xa6e   : > { %11881 = dma.done.wait (!%p11300_p4), %s9740_s19, 4096  }
 0xa6f   : > { %11883 = vsyncadd (!%p11300_p4), %s9740_s19, 4294963200  ;;  %s15176_s24 = sld [smem:[#allocation21_spill]]  ;;  %p32_p8 = scmp.ge.s32.totalorder %s12164_s21, 4  }
 0xa70   : > { %s15177_s29 = smov %s11890_s30  ;;  %s15178_s30 = smov %s11894_s15 }
 0xa71   : > { %s15180_s16 = smov %s12164_s21  ;;  %34 = sbr.rel (!%p32_p8) target bundleno = 22 (0x16), region = 154 }
 0xa75   : > { %s15179_s15 = smov %s15176_s24 }
 0xa78   :  { %9745 = vsyncpa [#allocation3], 1 }
 0xa79   :  { %9747 = vsyncpa [#allocation3 + $0x1], 1 }
 0xa7a   :  { %9748 = vsyncpa [#allocation6], 1 }
 0xa7b   :  { %9750 = vsyncpa [#allocation6 + $0x1], 1 }
 0xa7c   :  { %9751 = vsyncpa [#allocation9], 1 }
 0xa7d   :  { %9752 = vsyncpa [#allocation12], 1 }
 0xa7e   :  { %9753 = vsyncpa [#allocation4], 1 }
 0xa7f   :  { %9755 = vsyncpa [#allocation4 + $0x1], 1 }

</bundles_post_ra>
